<compile_context>
chip_gen: v6e
topology: v6e:2x2x1
jax: 0.10.0
libtpu: 0.0.40
codegen_flags: <defaults>
</compile_context>

<pallas_src>
import jax
import jax.numpy as jnp
from jax.experimental import pallas as pl
from jax.experimental.pallas import tpu as pltpu

HID = 1024  # conv1 output channels (nn.Conv2d(in_c, 1024, 1, 1))


def spatial_attention_kernel(x_ref, w1_ref, w2_ref, b2_ref, out_ref, att_ref):
    # x_ref : (1, K, T)   spatial tile, channels-first; last channel is constant 1
    #                     (conv1 bias + BN folded into the matmul -> no (HID,T) vadd)
    # w1_ref: (HID, K)    conv1 weight with BN scale folded in, last column = folded bias
    # w2_ref: (1, HID)    conv2 weight
    # b2_ref: (1, 1) SMEM conv2 bias (scalar)
    x = x_ref[0]                                                       # (K, T)

    # --- conv1 (1x1) + BatchNorm + bias as a single MXU matmul ---
    h = jnp.dot(w1_ref[...], x, preferred_element_type=jnp.float32)   # (HID, T)

    # --- F.normalize(p=2, dim=channels), eps=1e-12: sum-of-squares on the MXU, rsqrt on EUP ---
    hh = h * h
    ss = jnp.dot(jnp.ones((1, HID), jnp.float32), hh,
                 preferred_element_type=jnp.float32)                  # (1, T)
    inv_norm = jax.lax.rsqrt(jnp.maximum(ss, 1e-24))

    # --- ReLU then conv2 (1x1, HID -> 1) on the MXU ---
    r = jnp.maximum(h, 0.0)
    s = jnp.dot(w2_ref[...], r, preferred_element_type=jnp.float32) + b2_ref[0, 0]  # (1, T)

    # --- Softplus(beta=1, threshold=20) ---
    att = jnp.where(s > 20.0, s, jnp.log1p(jnp.exp(jnp.minimum(s, 20.0))))

    # --- fused scale: att * normalize(h) == h * (att * inv_norm) -> single (HID,T) multiply ---
    scale = att * inv_norm                                             # (1, T)
    out_ref[0] = (h * scale).astype(out_ref.dtype)                     # (HID, T), NCHW layout
    att_ref[0] = att.astype(att_ref.dtype)                             # (1, T), lane-dense


def _pick_tile(hw, max_tile, batch):
    # Largest lane-friendly tile dividing the spatial extent, keeping >= 2 total grid
    # steps on the parallel axes so both v7x TensorCores get work.
    for t in (2048, 1024, 512, 256, 128):
        if t <= max_tile and hw % t == 0 and (batch >= 2 or hw // t >= 2):
            return t
    # TODO(synk): pad the spatial axis when H*W is not a multiple of 128 (this fallback
    # produces masked partial stores on the lane axis -- slow but correct).
    return hw


def spatial_attention_2d(x_nchw, params, max_tile=1024, out_dtype=jnp.bfloat16):
    B, Cin, H, W = x_nchw.shape
    HW = H * W
    K = Cin + 1
    tile = _pick_tile(HW, max_tile, B)

    # Keep NCHW: reshape only (no HBM transpose of the big output on either side).
    # Skip the f32 upcast if the input is already f32/bf16; the one small wrapper pass
    # appends the constant-ones channel used for the bias fold.
    in_dtype = jnp.bfloat16 if x_nchw.dtype == jnp.bfloat16 else jnp.float32
    x_flat = x_nchw.reshape(B, Cin, HW).astype(in_dtype)
    x_aug = jnp.concatenate([x_flat, jnp.ones((B, 1, HW), in_dtype)], axis=1)  # (B, K, HW)

    # Fold BatchNorm (inference, running stats) + conv1 bias into the conv1 weight.
    inv_std = jax.lax.rsqrt(params["rvar"] + 1e-5)
    bn_scale = params["gamma"] * inv_std                               # (HID,)
    bn_bias = params["beta"] - params["rmean"] * bn_scale              # (HID,)
    w1f = params["w1"].T * bn_scale[:, None]                           # (HID, Cin)
    b1f = params["b1"] * bn_scale + bn_bias                            # (HID,)
    w1_aug = jnp.concatenate([w1f, b1f[:, None]], axis=1).astype(jnp.float32)  # (HID, K)
    w2 = params["w2"].reshape(1, HID).astype(jnp.float32)
    b2 = params["b2"].reshape(1, 1).astype(jnp.float32)

    grid = (B, HW // tile)
    N = B * HW
    out_itemsize = 2 if out_dtype == jnp.bfloat16 else 4
    cost = pl.CostEstimate(
        flops=2 * N * HID * (K + 2),
        transcendentals=3 * N,
        bytes_accessed=(x_aug.dtype.itemsize * N * K
                        + out_itemsize * N * HID
                        + 4 * N
                        + 4 * (HID * K + HID + 1)),
    )

    out, att = pl.pallas_call(
        spatial_attention_kernel,
        out_shape=(jax.ShapeDtypeStruct((B, HID, HW), out_dtype),
                   jax.ShapeDtypeStruct((B, 1, HW), jnp.float32)),
        grid_spec=pltpu.PrefetchScalarGridSpec(
            num_scalar_prefetch=0,
            grid=grid,
            in_specs=[
                pl.BlockSpec((1, K, tile), lambda b, j: (b, 0, j)),     # x tile (+ ones ch)
                pl.BlockSpec((HID, K), lambda b, j: (0, 0)),            # w1 (BN+bias folded)
                pl.BlockSpec((1, HID), lambda b, j: (0, 0)),            # w2
                pl.BlockSpec(memory_space=pltpu.MemorySpace.SMEM),      # b2 scalar
            ],
            out_specs=[
                pl.BlockSpec((1, HID, tile), lambda b, j: (b, 0, j)),   # out, NCHW blocks
                pl.BlockSpec((1, 1, tile), lambda b, j: (b, 0, j)),     # att, lane-dense
            ],
        ),
        compiler_params=pltpu.CompilerParams(
            dimension_semantics=("parallel", "parallel"),
            # fits T=1024 tiles with headroom; stays inside v7x's 64 MiB per-TC VMEM
            vmem_limit_bytes=48 * 1024 * 1024,
        ),
        cost_estimate=cost,
    )(x_aug, w1_aug, w2, b2)

    return out.reshape(B, HID, H, W), att.reshape(B, 1, H, W)


def _reference(x_nchw, params):
    # pure-JAX reference with identical semantics, for a sanity check
    B, Cin, H, W = x_nchw.shape
    xf = jnp.transpose(x_nchw, (0, 2, 3, 1)).reshape(-1, Cin).astype(jnp.float32)
    h = xf @ params["w1"] + params["b1"][None, :]
    inv_std = 1.0 / jnp.sqrt(params["rvar"] + 1e-5)
    h = (h - params["rmean"][None, :]) * (params["gamma"] * inv_std)[None, :] + params["beta"][None, :]
    nrm = jnp.sqrt(jnp.sum(h * h, axis=-1, keepdims=True))
    fmn = h / jnp.maximum(nrm, 1e-12)
    r = jnp.maximum(h, 0.0)
    s = r @ params["w2"].reshape(HID, 1) + params["b2"]
    att = jnp.where(s > 20.0, s, jnp.log1p(jnp.exp(jnp.minimum(s, 20.0))))
    out = att * fmn
    out = jnp.transpose(out.reshape(B, H, W, HID), (0, 3, 1, 2))
    att = jnp.transpose(att.reshape(B, H, W, 1), (0, 3, 1, 2))
    return out, att


if __name__ == "__main__":
    key = jax.random.PRNGKey(0)
    B, Cin, H, W = 2, 4, 16, 16
    ks = jax.random.split(key, 8)

    x = jax.random.normal(ks[0], (B, Cin, H, W), dtype=jnp.float32)

    params = {
        # conv1: Conv2d(Cin, 1024, 1) -> weight (Cin, HID) for channels-last matmul
        "w1": jax.random.normal(ks[1], (Cin, HID), dtype=jnp.float32) * 0.1,
        "b1": jax.random.normal(ks[2], (HID,), dtype=jnp.float32) * 0.1,
        # BatchNorm2d(1024): affine + running stats (inference mode)
        "gamma": 1.0 + 0.1 * jax.random.normal(ks[3], (HID,), dtype=jnp.float32),
        "beta": 0.1 * jax.random.normal(ks[4], (HID,), dtype=jnp.float32),
        "rmean": 0.1 * jax.random.normal(ks[5], (HID,), dtype=jnp.float32),
        "rvar": jnp.abs(1.0 + 0.1 * jax.random.normal(ks[6], (HID,), dtype=jnp.float32)),
        # conv2: Conv2d(1024, 1, 1)
        "w2": jax.random.normal(ks[7], (HID,), dtype=jnp.float32) * 0.05,
        "b2": jnp.array([0.01], dtype=jnp.float32),
    }

    out_ref, att_ref = _reference(x, params)

    # default: bf16 feature-map output (halves the dominant HBM writeback); att stays f32
    out_bf16, att = spatial_attention_2d(x, params)
    jax.block_until_ready((out_bf16, att))
    assert out_bf16.shape == (B, HID, H, W) and att.shape == (B, 1, H, W)
    assert out_bf16.dtype == jnp.bfloat16
    assert jnp.allclose(out_bf16.astype(jnp.float32), out_ref, atol=1e-2, rtol=3e-2)
    assert jnp.allclose(att, att_ref, atol=1e-4, rtol=1e-4)

    # f32 output path keeps the exact original semantics
    out_f32, att2 = spatial_attention_2d(x, params, out_dtype=jnp.float32)
    jax.block_until_ready((out_f32, att2))
    assert jnp.allclose(out_f32, out_ref, atol=1e-4, rtol=1e-4)
    assert jnp.allclose(att2, att_ref, atol=1e-4, rtol=1e-4)

    print("KERNEL_OK")
</pallas_src>

<mosaic_0001>
module attributes {stable_mosaic.version = 11 : i64} {
  func.func @spatial_attention_kernel(%arg0: i32, %arg1: i32, %arg2: memref<1x5x256xf32, #tpu.memory_space<vmem>>, %arg3: memref<1024x5xf32, #tpu.memory_space<vmem>>, %arg4: memref<1x1024xf32, #tpu.memory_space<vmem>>, %arg5: memref<1x1xf32, #tpu.memory_space<smem>>, %arg6: memref<1x1024x256xbf16, #tpu.memory_space<vmem>>, %arg7: memref<1x1x256xf32, #tpu.memory_space<vmem>>) attributes {dimension_semantics = [#tpu.dimension_semantics<parallel>, #tpu.dimension_semantics<parallel>], iteration_bounds = array<i64: 2, 1>, scalar_prefetch = 0 : i64, scratch_operands = 0 : i64, tpu.core_type = #tpu.core_type<tc>, window_params = [{transform_indices = @transform_0, window_bounds = array<i64: 1, 5, 256>}, {pipeline_mode = #tpu.pipeline_mode<synchronous>, transform_indices = @transform_1, window_bounds = array<i64: 1024, 5>}, {pipeline_mode = #tpu.pipeline_mode<synchronous>, transform_indices = @transform_2, window_bounds = array<i64: 1, 1024>}, {transform_indices = @transform_3, window_bounds = array<i64: 1, 1>}, {transform_indices = @transform_4, window_bounds = array<i64: 1, 1024, 256>}, {transform_indices = @transform_5, window_bounds = array<i64: 1, 1, 256>}]} {
    %c0 = arith.constant 0 : index
    %c0_0 = arith.constant 0 : index
    %c0_1 = arith.constant 0 : index
    %0 = vector.load %arg2[%c0, %c0_0, %c0_1] : memref<1x5x256xf32, #tpu.memory_space<vmem>>, vector<1x5x256xf32>
    %1 = vector.shape_cast %0 : vector<1x5x256xf32> to vector<5x256xf32>
    %c0_2 = arith.constant 0 : index
    %c0_3 = arith.constant 0 : index
    %2 = vector.load %arg3[%c0_2, %c0_3] : memref<1024x5xf32, #tpu.memory_space<vmem>>, vector<1024x5xf32>
    %cst = arith.constant dense<0.000000e+00> : vector<1024x256xf32>
    %3 = tpu.matmul %2, %1, %cst {dimension_numbers = #tpu.dot_dimension_numbers<[1], [0], [0], [1], [0, 0, 1, 1], [], []>} : vector<1024x5xf32>, vector<5x256xf32>, vector<1024x256xf32> -> vector<1024x256xf32>
    %4 = arith.mulf %3, %3 : vector<1024x256xf32>
    %cst_4 = arith.constant 1.000000e+00 : f32
    %5 = vector.broadcast %cst_4 : f32 to vector<1x1024xf32>
    %cst_5 = arith.constant dense<0.000000e+00> : vector<1x256xf32>
    %6 = tpu.matmul %5, %4, %cst_5 {dimension_numbers = #tpu.dot_dimension_numbers<[1], [0], [0], [1], [0, 0, 1, 1], [], []>} : vector<1x1024xf32>, vector<1024x256xf32>, vector<1x256xf32> -> vector<1x256xf32>
    %cst_6 = arith.constant 1.000000e-24 : f32
    %7 = vector.broadcast %cst_6 : f32 to vector<1x256xf32>
    %8 = arith.maximumf %6, %7 : vector<1x256xf32>
    %9 = math.rsqrt %8 : vector<1x256xf32>
    %cst_7 = arith.constant 0.000000e+00 : f32
    %10 = vector.broadcast %cst_7 : f32 to vector<1024x256xf32>
    %11 = arith.maximumf %3, %10 : vector<1024x256xf32>
    %c0_8 = arith.constant 0 : index
    %c0_9 = arith.constant 0 : index
    %12 = vector.load %arg4[%c0_8, %c0_9] : memref<1x1024xf32, #tpu.memory_space<vmem>>, vector<1x1024xf32>
    %cst_10 = arith.constant dense<0.000000e+00> : vector<1x256xf32>
    %13 = tpu.matmul %12, %11, %cst_10 {dimension_numbers = #tpu.dot_dimension_numbers<[1], [0], [0], [1], [0, 0, 1, 1], [], []>} : vector<1x1024xf32>, vector<1024x256xf32>, vector<1x256xf32> -> vector<1x256xf32>
    %c0_11 = arith.constant 0 : index
    %c0_12 = arith.constant 0 : index
    %14 = memref.load %arg5[%c0_11, %c0_12] : memref<1x1xf32, #tpu.memory_space<smem>>
    %15 = vector.broadcast %14 : f32 to vector<1x256xf32>
    %16 = arith.addf %13, %15 : vector<1x256xf32>
    %cst_13 = arith.constant 2.000000e+01 : f32
    %17 = vector.broadcast %cst_13 : f32 to vector<1x256xf32>
    %18 = arith.cmpf ogt, %16, %17 : vector<1x256xf32>
    %cst_14 = arith.constant 2.000000e+01 : f32
    %19 = vector.broadcast %cst_14 : f32 to vector<1x256xf32>
    %20 = arith.minimumf %16, %19 : vector<1x256xf32>
    %21 = math.exp %20 : vector<1x256xf32>
    %22 = math.log1p %21 : vector<1x256xf32>
    %23 = arith.select %18, %16, %22 : vector<1x256xi1>, vector<1x256xf32>
    %24 = arith.mulf %23, %9 : vector<1x256xf32>
    %25 = vector.broadcast %24 : vector<1x256xf32> to vector<1024x256xf32>
    %26 = arith.mulf %3, %25 : vector<1024x256xf32>
    %27 = arith.truncf %26 : vector<1024x256xf32> to vector<1024x256xbf16>
    %c0_15 = arith.constant 0 : index
    %c0_16 = arith.constant 0 : index
    %c0_17 = arith.constant 0 : index
    %28 = vector.load %arg6[%c0_15, %c0_16, %c0_17] : memref<1x1024x256xbf16, #tpu.memory_space<vmem>>, vector<1x1024x256xbf16>
    %29 = vector.shape_cast %28 : vector<1x1024x256xbf16> to vector<1024x256xbf16>
    %30 = vector.shape_cast %27 : vector<1024x256xbf16> to vector<1x1024x256xbf16>
    tpu.vector_store %arg6[%c0_15, %c0_16, %c0_17], %30 {strides = array<i32>} : memref<1x1024x256xbf16, #tpu.memory_space<vmem>>, vector<1x1024x256xbf16>,
    %c0_18 = arith.constant 0 : index
    %c0_19 = arith.constant 0 : index
    %c0_20 = arith.constant 0 : index
    %31 = vector.load %arg7[%c0_18, %c0_19, %c0_20] : memref<1x1x256xf32, #tpu.memory_space<vmem>>, vector<1x1x256xf32>
    %32 = vector.shape_cast %31 : vector<1x1x256xf32> to vector<1x256xf32>
    %33 = vector.shape_cast %23 : vector<1x256xf32> to vector<1x1x256xf32>
    tpu.vector_store %arg7[%c0_18, %c0_19, %c0_20], %33 {strides = array<i32>} : memref<1x1x256xf32, #tpu.memory_space<vmem>>, vector<1x1x256xf32>,
    return
  }
  func.func @transform_0(%arg0: i32, %arg1: i32) -> (i32, i32, i32) {
    %c0_i32 = arith.constant 0 : i32
    %c0_i32_0 = arith.constant 0 : i32
    return %arg0, %c0_i32, %arg1 : i32, i32, i32
  }
  func.func @transform_1(%arg0: i32, %arg1: i32) -> (i32, i32) {
    %c0_i32 = arith.constant 0 : i32
    %c0_i32_0 = arith.constant 0 : i32
    %c0_i32_1 = arith.constant 0 : i32
    return %c0_i32, %c0_i32_0 : i32, i32
  }
  func.func @transform_2(%arg0: i32, %arg1: i32) -> (i32, i32) {
    %c0_i32 = arith.constant 0 : i32
    %c0_i32_0 = arith.constant 0 : i32
    %c0_i32_1 = arith.constant 0 : i32
    return %c0_i32, %c0_i32_0 : i32, i32
  }
  func.func @transform_3(%arg0: i32, %arg1: i32) -> (i32, i32) {
    %c0_i32 = arith.constant 0 : i32
    %c0_i32_0 = arith.constant 0 : i32
    %c0_i32_1 = arith.constant 0 : i32
    return %c0_i32, %c0_i32_0 : i32, i32
  }
  func.func @transform_4(%arg0: i32, %arg1: i32) -> (i32, i32, i32) {
    %c0_i32 = arith.constant 0 : i32
    %c0_i32_0 = arith.constant 0 : i32
    return %arg0, %c0_i32, %arg1 : i32, i32, i32
  }
  func.func @transform_5(%arg0: i32, %arg1: i32) -> (i32, i32, i32) {
    %c0_i32 = arith.constant 0 : i32
    %c0_i32_0 = arith.constant 0 : i32
    return %arg0, %c0_i32, %arg1 : i32, i32, i32
  }
}

</mosaic_0001>

<bundles_post_ra>
// kernel: tpu_custom_call.1
= control target key start
LH: loop header
LB: loop body
LE: loop exit
PB: predicated region body
PF: predicated region fallthrough
CT: control target
= control target key end

     0   :  { %s8304_s0 = inlined_call_operand.vmem [shape: f32[2,5,256], index: 0, kind: input, shape index: {}]   ;;  %s8305_s1 = inlined_call_operand.vmem [shape: f32[1024,5], index: 1, kind: input, shape index: {}]   ;;  %s8306_s2 = inlined_call_operand.vmem [shape: f32[1,1024], index: 2, kind: input, shape index: {}]   ;;  %s8307_s3 = inlined_call_operand.<no memory space> [shape: f32[1,1], index: 3, kind: input, shape index: {}]   ;;  %s8308_s4 = inlined_call_operand.hbm [shape: bf16[2,1024,256], index: 4, kind: output, shape index: {0}]   ;;  %s8309_s5 = inlined_call_operand.hbm [shape: f32[2,1,256], index: 5, kind: output, shape index: {1}]  }
   0x1   :  { %11 = sst [smem:[#allocation2]] %s8307_s3 }
   0x2   :  { %12 = vsyncpa [#allocation4], 0 }
   0x3   :  { %14 = vsyncpa [#allocation4 + $0x1], 0 }
   0x4   :  { %15 = vsyncpa [#allocation6], 0 }
   0x5   :  { %17 = vsyncpa [#allocation6 + $0x1], 0  ;;  %s4748_s20 = smov 0   ;;  %s4750_s21 = smov 0  }
   0x6   :  { %s4752_s22 = smov 0   ;;  %s4754_s23 = smov 0  }
   0x7   :  { %s4756_s24 = smov 0   ;;  %s4758_s25 = smov 0  }
   0x8 LB: > { %s4116_s3 = sadd.s32 4294967295, %s4706_s25   ;;  %s4117_s26 = sadd.s32 4294967294, %s4706_s25   ;;  %s4706_s25 = sphi %s4758_s25, %s23_s25   ;;  %s4702_s24 = sphi %s4756_s24, %s9848_s24   ;;  %s4698_s23 = sphi %s4754_s23, %s9847_s23   ;;  %s4694_s22 = sphi %s4752_s22, %s9846_s22   ;;  %s4690_s21 = sphi %s4750_s21, %s9845_s21   ;;  %s4686_s20 = sphi %s4748_s20, %s9844_s20  }
   0x9   : > { %s35_s27 = sadd.s32 1, %s4702_s24  ;;  %s135_s28 = sadd.s32 1, %s4694_s22 }
   0xa   : > { %p37_p0 = scmp.ge.s32.totalorder %s35_s27, 2  ;;  %p145_p1 = scmp.ne.s32.totalorder %s4694_s22, %s4690_s21 }
   0xb   : > { %p146_p2 = scmp.eq.s32.totalorder %s4116_s3, 1  ;;  %p151_p3 = scmp.ne.s32.totalorder %s4690_s21, %s4686_s20 }
   0xc   : > { %s9850_s27 = smov (%p37_p0, %s35_s27), 0  ;;  %p152_p5 = scmp.eq.s32.totalorder %s4117_s26, 1 }
   0xd   : > { %p4788_p4 = por %p146_p2, %p145_p1  ;;  %s130_s30 = ssub.s32 %s4702_s24, %s9850_s27 }
   0xe   : > { %p4120_p6 = scmp.ge.s32.totalorder %s4706_s25, 1  ;;  %p133_p7 = scmp.eq.s32.totalorder %s130_s30, 0 }
   0xf   : > { %p4795_p8 = por %p152_p5, %p151_p3  ;;  %p220_p9 = scmp.lt.s32.totalorder %s4706_s25, 3 }
  0x10   : > { %s4801_s7 = scalar_select %p133_p7, %s4694_s22, %s135_s28  }
  0x11   : > { %p221_p10 = pnand %p4120_p6, %p220_p9 }
  0x13   : > { %224 = sbr.rel (%p221_p10) target bundleno = 1498 (0x5da), region = 36 }
  0x18   : > { %p258_p11 = scmp.lt.s32.totalorder %s4698_s23, 1  ;;  %v8330_v0 = vmov 0.0   ;;  %vm784_vm0 = vcmask 1044480   ;;  %v271_v3 = vld [vmem:[%s8305_s1] sm:$0xff]  ;;  %vm399_vm1 = vcmask 39936   ;;  %v272_v4 = vld [vmem:[%s8305_s1 + $0x8] sm:$0xff] }
  0x19   : > { %855 = vmatprep.mubr.f32.mxu0 %v8330_v0  ;;  %v273_v5 = vld [vmem:[%s8305_s1 + $0x10] sm:$0xff]  ;;  %v274_v6 = vld [vmem:[%s8305_s1 + $0x18] sm:$0xff]  ;;  %v275_v7 = vld [vmem:[%s8305_s1 + $0x20] sm:$0xff]  ;;  %s2425_s17 = sld [smem:[#allocation2]]  ;;  %s7704_s18 = sand.u32 1, %s4690_s21  }
  0x1a   : > { %s259_s8 = scalar_select %p258_p11, %s4698_s23, 1  ;;  %v276_v8 = vld [vmem:[%s8305_s1 + $0x28] sm:$0xff]  ;;  %v277_v9 = vld [vmem:[%s8305_s1 + $0x30] sm:$0xff]  ;;  %v278_v10 = vld [vmem:[%s8305_s1 + $0x38] sm:$0xff] }
  0x1b   : > { %v279_v11 = vld [vmem:[%s8305_s1 + $0x40] sm:$0xff]  ;;  %v280_v12 = vld [vmem:[%s8305_s1 + $0x48] sm:$0xff]  ;;  %v281_v13 = vld [vmem:[%s8305_s1 + $0x50] sm:$0xff]  ;;  %s4121_s19 = sshll.u32 %s7704_s18, 10  ;;  %s4122_s26 = sshll.u32 %s7704_s18, 1 }
  0x1c   : > { %s4391_s9 = sshll.u32 %s259_s8, 4  ;;  %v282_v14 = vld [vmem:[%s8305_s1 + $0x58] sm:$0xff]  ;;  %v283_v15 = vld [vmem:[%s8305_s1 + $0x60] sm:$0xff]  ;;  %v284_v16 = vld [vmem:[%s8305_s1 + $0x68] sm:$0xff]  ;;  %s7843_s3 = scalar_lea.vmem [#allocation3], %s4121_s19 }
  0x1d   : > { %s265_s12 = scalar_lea.vmem %s8304_s0, %s4391_s9  ;;  %v285_v17 = vld [vmem:[%s8305_s1 + $0x70] sm:$0xff]  ;;  %v286_v18 = vld [vmem:[%s8305_s1 + $0x78] sm:$0xff]  ;;  %v287_v19 = vld [vmem:[%s8305_s1 + $0x80] sm:$0xff]  ;;  %s4520_s28 = sshll.u32 %s4698_s23, 14 }
  0x1e   : > { %v270_v1 = vld [vmem:[%s265_s12 + $0x8] sm:$0x1f]  ;;  %v269_v2 = vld [vmem:[%s265_s12] sm:$0x1f]  ;;  %v289_v21 = vld [vmem:[%s8305_s1 + $0x90] sm:$0xff]  ;;  %s3986_s30 = sshll.u32 %s7843_s3, 4  ;;  %s8172_s10 = scalar_lea.hbm %s8308_s4, %s4520_s28  ;;  %s8204_s30 = int_to_ptr.vmem [resolvable:$true] %s3986_s30 }
  0x1f   : > { %4125 = vmatprep.subr.msk.mxu0 %vm784_vm0, %v270_v1  ;;  %v288_v20 = vld [vmem:[%s8305_s1 + $0x88] sm:$0xff]  ;;  %v290_v22 = vld [vmem:[%s8305_s1 + $0x98] sm:$0xff]  ;;  %v291_v23 = vld [vmem:[%s8305_s1 + $0xa0] sm:$0xff]  ;;  %s4521_s11 = sshll.u32 %s4698_s23, 5  ;;  %s8189_s12 = scalar_lea.vmem [#allocation5], %s4122_s26 }
  0x20   : > { %4126 = vmatpush1.msk.msra.mxu0 %vm784_vm0, %v269_v2  ;;  %v292_v24 = vld [vmem:[%s8305_s1 + $0xa8] sm:$0xff]  ;;  %v293_v25 = vld [vmem:[%s8305_s1 + $0xb0] sm:$0xff]  ;;  %v294_v26 = vld [vmem:[%s8305_s1 + $0xb8] sm:$0xff]  ;;  %s4005_s13 = sshll.u32 %s8189_s12, 4  ;;  %s8227_s15 = scalar_lea.hbm %s8309_s5, %s4521_s11  ;;  %s8229_s13 = int_to_ptr.vmem [resolvable:$true] %s4005_s13 }
  0x21   : > { %4127 = vmatmul.mubr.msk.f32.vlgmr.msra.gmra.mxu0 %vm399_vm1, %v271_v3  ;;  %v295_v27 = vld [vmem:[%s8305_s1 + $0xc0] sm:$0xff]  ;;  %v296_v28 = vld [vmem:[%s8305_s1 + $0xc8] sm:$0xff]  ;;  %v297_v29 = vld [vmem:[%s8305_s1 + $0xd0] sm:$0xff]  ;;  %s3966_s16 = scalar_lea.sflag [#allocation4], %s7704_s18  ;;  %s4711_s19 = smov [#allocation3]  }
  0x22   : > { %861 = vmatprep.mubr.f32.mxu0 %v8330_v0  ;;  %v298_v30 = vld [vmem:[%s8305_s1 + $0xd8] sm:$0xff]  ;;  %v299_v31 = vld [vmem:[%s8305_s1 + $0xe0] sm:$0xff]  ;;  %v300_v32 = vld [vmem:[%s8305_s1 + $0xe8] sm:$0xff]  ;;  %s4604_s26 = sshll.u32 %s4711_s19, 4  ;;  %s4605_s26 = int_to_ptr.vmem [resolvable:$false] %s4604_s26 }
  0x23   : > { %v301_v33 = vld [vmem:[%s8305_s1 + $0xf0] sm:$0xff]  ;;  %v302_v34 = vld [vmem:[%s8305_s1 + $0xf8] sm:$0xff]  ;;  %v303_v35 = vld [vmem:[%s8305_s1 + $0x100] sm:$0xff]  ;;  %s4606_s28 = scalar_lea.vmem %s4605_s26, 32768  ;;  %p4607_p1 = scmp.lt.s32.totalorder %s8204_s30, %s4605_s26 }
  0x24   : > { %v304_v36 = vld [vmem:[%s8305_s1 + $0x108] sm:$0xff]  ;;  %v305_v37 = vld [vmem:[%s8305_s1 + $0x110] sm:$0xff]  ;;  %v306_v38 = vld [vmem:[%s8305_s1 + $0x118] sm:$0xff] }
  0x25   : > { %4128 = vmatmul.mubr.msk.f32.gmra.mxu0 %vm399_vm1, %v272_v4  ;;  %v307_v39 = vld [vmem:[%s8305_s1 + $0x120] sm:$0xff]  ;;  %v308_v40 = vld [vmem:[%s8305_s1 + $0x128] sm:$0xff]  ;;  %v309_v41 = vld [vmem:[%s8305_s1 + $0x130] sm:$0xff] }
  0x26   : > { %867 = vmatprep.mubr.f32.mxu0 %v8330_v0  ;;  %v310_v42 = vld [vmem:[%s8305_s1 + $0x138] sm:$0xff]  ;;  %v311_v43 = vld [vmem:[%s8305_s1 + $0x140] sm:$0xff]  ;;  %v312_v44 = vld [vmem:[%s8305_s1 + $0x148] sm:$0xff] }
  0x27   : > { %v313_v45 = vld [vmem:[%s8305_s1 + $0x150] sm:$0xff]  ;;  %v314_v46 = vld [vmem:[%s8305_s1 + $0x158] sm:$0xff]  ;;  %v315_v47 = vld [vmem:[%s8305_s1 + $0x160] sm:$0xff] }
  0x28   : > { %v316_v48 = vld [vmem:[%s8305_s1 + $0x168] sm:$0xff]  ;;  %v317_v49 = vld [vmem:[%s8305_s1 + $0x170] sm:$0xff]  ;;  %v318_v50 = vld [vmem:[%s8305_s1 + $0x178] sm:$0xff] }
  0x29   : > { %4129 = vmatmul.mubr.msk.f32.gmra.mxu0 %vm399_vm1, %v273_v5  ;;  %v319_v51 = vld [vmem:[%s8305_s1 + $0x180] sm:$0xff]  ;;  %v320_v53 = vld [vmem:[%s8305_s1 + $0x188] sm:$0xff]  ;;  %v321_v56 = vld [vmem:[%s8305_s1 + $0x190] sm:$0xff] }
  0x2a   : > { %873 = vmatprep.mubr.f32.mxu0 %v8330_v0  ;;  %v322_v59 = vld [vmem:[%s8305_s1 + $0x198] sm:$0xff]  ;;  %v323_v62 = vld [vmem:[%s8305_s1 + $0x1a0] sm:$0xff]  ;;  %v324_v2 = vld [vmem:[%s8305_s1 + $0x1a8] sm:$0xff] }
  0x2b   : > { %v325_v5 = vld [vmem:[%s8305_s1 + $0x1b0] sm:$0xff] }
  0x2d   : > { %4130 = vmatmul.mubr.msk.f32.gmra.mxu0 %vm399_vm1, %v274_v6 }
  0x2e   : > { %879 = vmatprep.mubr.f32.mxu0 %v8330_v0 }
  0x31   : > { %4131 = vmatmul.mubr.msk.f32.gmra.mxu0 %vm399_vm1, %v275_v7 }
  0x32   : > { %885 = vmatprep.mubr.f32.mxu0 %v8330_v0 }
  0x35   : > { %4132 = vmatmul.mubr.msk.f32.gmra.mxu0 %vm399_vm1, %v276_v8  ;;  %v326_v8 = vld [vmem:[%s8305_s1 + $0x1b8] sm:$0xff] }
  0x36   : > { %891 = vmatprep.mubr.f32.mxu0 %v8330_v0 }
  0x39   : > { %4133 = vmatmul.mubr.msk.f32.gmra.mxu0 %vm399_vm1, %v277_v9 }
  0x3a   : > { %897 = vmatprep.mubr.f32.mxu0 %v8330_v0 }
  0x3d   : > { %4134 = vmatmul.mubr.msk.f32.gmra.mxu0 %vm399_vm1, %v278_v10 }
  0x3e   : > { %903 = vmatprep.mubr.f32.mxu0 %v8330_v0 }
  0x41   : > { %4135 = vmatmul.mubr.msk.f32.gmra.mxu0 %vm399_vm1, %v279_v11  ;;  %v327_v11 = vld [vmem:[%s8305_s1 + $0x1c0] sm:$0xff] }
  0x42   : > { %909 = vmatprep.mubr.f32.mxu0 %v8330_v0 }
  0x45   : > { %4136 = vmatmul.mubr.msk.f32.gmra.mxu0 %vm399_vm1, %v280_v12 }
  0x46   : > { %915 = vmatprep.mubr.f32.mxu0 %v8330_v0 }
  0x49   : > { %4137 = vmatmul.mubr.msk.f32.gmra.mxu0 %vm399_vm1, %v281_v13 }
  0x4a   : > { %921 = vmatprep.mubr.f32.mxu0 %v8330_v0 }
  0x4d   : > { %4138 = vmatmul.mubr.msk.f32.gmra.mxu0 %vm399_vm1, %v282_v14  ;;  %v328_v14 = vld [vmem:[%s8305_s1 + $0x1c8] sm:$0xff] }
  0x4e   : > { %927 = vmatprep.mubr.f32.mxu0 %v8330_v0 }
  0x51   : > { %4139 = vmatmul.mubr.msk.f32.gmra.mxu0 %vm399_vm1, %v283_v15 }
  0x52   : > { %933 = vmatprep.mubr.f32.mxu0 %v8330_v0 }
  0x55   : > { %4140 = vmatmul.mubr.msk.f32.gmra.mxu0 %vm399_vm1, %v284_v16 }
  0x56   : > { %939 = vmatprep.mubr.f32.mxu0 %v8330_v0 }
  0x59   : > { %4141 = vmatmul.mubr.msk.f32.gmra.mxu0 %vm399_vm1, %v285_v17  ;;  %v329_v17 = vld [vmem:[%s8305_s1 + $0x1d0] sm:$0xff] }
  0x5a   : > { %945 = vmatprep.mubr.f32.mxu0 %v8330_v0 }
  0x5d   : > { %4142 = vmatmul.mubr.msk.f32.gmra.mxu0 %vm399_vm1, %v286_v18 }
  0x5e   : > { %951 = vmatprep.mubr.f32.mxu0 %v8330_v0 }
  0x61   : > { %4143 = vmatmul.mubr.msk.f32.gmra.mxu0 %vm399_vm1, %v287_v19 }
  0x62   : > { %957 = vmatprep.mubr.f32.mxu0 %v8330_v0 }
  0x65   : > { %4144 = vmatmul.mubr.msk.f32.gmra.mxu0 %vm399_vm1, %v288_v20  ;;  %v330_v20 = vld [vmem:[%s8305_s1 + $0x1d8] sm:$0xff] }
  0x66   : > { %963 = vmatprep.mubr.f32.mxu0 %v8330_v0 }
  0x69   : > { %4145 = vmatmul.mubr.msk.f32.gmra.mxu0 %vm399_vm1, %v289_v21 }
  0x6a   : > { %969 = vmatprep.mubr.f32.mxu0 %v8330_v0 }
  0x6d   : > { %4146 = vmatmul.mubr.msk.f32.gmra.mxu0 %vm399_vm1, %v290_v22 }
  0x6e   : > { %975 = vmatprep.mubr.f32.mxu0 %v8330_v0 }
  0x71   : > { %4147 = vmatmul.mubr.msk.f32.gmra.mxu0 %vm399_vm1, %v291_v23  ;;  %v331_v23 = vld [vmem:[%s8305_s1 + $0x1e0] sm:$0xff] }
  0x72   : > { %981 = vmatprep.mubr.f32.mxu0 %v8330_v0 }
  0x75   : > { %4148 = vmatmul.mubr.msk.f32.gmra.mxu0 %vm399_vm1, %v292_v24 }
  0x76   : > { %987 = vmatprep.mubr.f32.mxu0 %v8330_v0 }
  0x79   : > { %4149 = vmatmul.mubr.msk.f32.gmra.mxu0 %vm399_vm1, %v293_v25 }
  0x7a   : > { %993 = vmatprep.mubr.f32.mxu0 %v8330_v0 }
  0x7d   : > { %4150 = vmatmul.mubr.msk.f32.gmra.mxu0 %vm399_vm1, %v294_v26  ;;  %v332_v26 = vld [vmem:[%s8305_s1 + $0x1e8] sm:$0xff] }
  0x7e   : > { %999 = vmatprep.mubr.f32.mxu0 %v8330_v0 }
  0x81   : > { %4151 = vmatmul.mubr.msk.f32.gmra.mxu0 %vm399_vm1, %v295_v27 }
  0x82   : > { %1005 = vmatprep.mubr.f32.mxu0 %v8330_v0 }
  0x85   : > { %4152 = vmatmul.mubr.msk.f32.gmra.mxu0 %vm399_vm1, %v296_v28 }
  0x86   : > { %1011 = vmatprep.mubr.f32.mxu0 %v8330_v0 }
  0x89   : > { %4153 = vmatmul.mubr.msk.f32.gmra.mxu0 %vm399_vm1, %v297_v29  ;;  %v333_v29 = vld [vmem:[%s8305_s1 + $0x1f0] sm:$0xff] }
  0x8a   : > { %1017 = vmatprep.mubr.f32.mxu0 %v8330_v0 }
  0x8d   : > { %4154 = vmatmul.mubr.msk.f32.gmra.mxu0 %vm399_vm1, %v298_v30 }
  0x8e   : > { %1023 = vmatprep.mubr.f32.mxu0 %v8330_v0 }
  0x91   : > { %4155 = vmatmul.mubr.msk.f32.gmra.mxu0 %vm399_vm1, %v299_v31 }
  0x92   : > { %1029 = vmatprep.mubr.f32.mxu0 %v8330_v0 }
  0x95   : > { %4156 = vmatmul.mubr.msk.f32.gmra.mxu0 %vm399_vm1, %v300_v32  ;;  %v334_v32 = vld [vmem:[%s8305_s1 + $0x1f8] sm:$0xff] }
  0x96   : > { %1035 = vmatprep.mubr.f32.mxu0 %v8330_v0 }
  0x99   : > { %4157 = vmatmul.mubr.msk.f32.gmra.mxu0 %vm399_vm1, %v301_v33 }
  0x9a   : > { %1041 = vmatprep.mubr.f32.mxu0 %v8330_v0 }
  0x9d   : > { %4158 = vmatmul.mubr.msk.f32.gmra.mxu0 %vm399_vm1, %v302_v34 }
  0x9e   : > { %1047 = vmatprep.mubr.f32.mxu0 %v8330_v0 }
  0xa1   : > { %4159 = vmatmul.mubr.msk.f32.gmra.mxu0 %vm399_vm1, %v303_v35  ;;  %v335_v35 = vld [vmem:[%s8305_s1 + $0x200] sm:$0xff] }
  0xa2   : > { %1053 = vmatprep.mubr.f32.mxu0 %v8330_v0 }
  0xa5   : > { %4160 = vmatmul.mubr.msk.f32.gmra.mxu0 %vm399_vm1, %v304_v36 }
  0xa6   : > { %1059 = vmatprep.mubr.f32.mxu0 %v8330_v0 }
  0xa9   : > { %4161 = vmatmul.mubr.msk.f32.gmra.mxu0 %vm399_vm1, %v305_v37 }
  0xaa   : > { %1065 = vmatprep.mubr.f32.mxu0 %v8330_v0 }
  0xad   : > { %4162 = vmatmul.mubr.msk.f32.gmra.mxu0 %vm399_vm1, %v306_v38 }
  0xae   : > { %1071 = vmatprep.mubr.f32.mxu0 %v8330_v0 }
  0xb1   : > { %4163 = vmatmul.mubr.msk.f32.gmra.mxu0 %vm399_vm1, %v307_v39 }
  0xb2   : > { %1077 = vmatprep.mubr.f32.mxu0 %v8330_v0 }
  0xb5   : > { %4164 = vmatmul.mubr.msk.f32.gmra.mxu0 %vm399_vm1, %v308_v40 }
  0xb6   : > { %1083 = vmatprep.mubr.f32.mxu0 %v8330_v0 }
  0xb9   : > { %4165 = vmatmul.mubr.msk.f32.gmra.mxu0 %vm399_vm1, %v309_v41  ;;  %v336_v41 = vld [vmem:[%s8305_s1 + $0x208] sm:$0xff] }
  0xba   : > { %1089 = vmatprep.mubr.f32.mxu0 %v8330_v0 }
  0xbd   : > { %4166 = vmatmul.mubr.msk.f32.gmra.mxu0 %vm399_vm1, %v310_v42 }
  0xbe   : > { %1095 = vmatprep.mubr.f32.mxu0 %v8330_v0 }
  0xc1   : > { %4167 = vmatmul.mubr.msk.f32.gmra.mxu0 %vm399_vm1, %v311_v43 }
  0xc2   : > { %1101 = vmatprep.mubr.f32.mxu0 %v8330_v0 }
  0xc5   : > { %4168 = vmatmul.mubr.msk.f32.gmra.mxu0 %vm399_vm1, %v312_v44  ;;  %v8310_v44 = vmov 1.0  }
  0xc6   : > { %1107 = vmatprep.mubr.f32.mxu0 %v8330_v0  ;;  %1944 = vmatprep.mubr.f32.mxu1 %v8310_v44 }
  0xc9   : > { %4169 = vmatmul.mubr.msk.f32.gmra.mxu0 %vm399_vm1, %v313_v45 }
  0xca   : > { %1113 = vmatprep.mubr.f32.mxu0 %v8330_v0 }
  0xcd   : > { %4170 = vmatmul.mubr.msk.f32.gmra.mxu0 %vm399_vm1, %v314_v46 }
  0xce   : > { %1119 = vmatprep.mubr.f32.mxu0 %v8330_v0 }
  0xd1   : > { %4171 = vmatmul.mubr.msk.f32.gmra.mxu0 %vm399_vm1, %v315_v47 }
  0xd2   : > { %1125 = vmatprep.mubr.f32.mxu0 %v8330_v0 }
  0xd5   : > { %4172 = vmatmul.mubr.msk.f32.gmra.mxu0 %vm399_vm1, %v316_v48 }
  0xd6   : > { %1131 = vmatprep.mubr.f32.mxu0 %v8330_v0 }
  0xd9   : > { %4173 = vmatmul.mubr.msk.f32.gmra.mxu0 %vm399_vm1, %v317_v49  ;;  %v337_v49 = vld [vmem:[%s8305_s1 + $0x210] sm:$0xff] }
  0xda   : > { %1137 = vmatprep.mubr.f32.mxu0 %v8330_v0 }
  0xdd   : > { %4174 = vmatmul.mubr.msk.f32.gmra.mxu0 %vm399_vm1, %v318_v50 }
  0xde   : > { %1143 = vmatprep.mubr.f32.mxu0 %v8330_v0 }
  0xe1   : > { %v5052_v52 = vpop.f32.mrf.mxu0  ;;  %4175 = vmatmul.mubr.msk.f32.gmra.mxu0 %vm399_vm1, %v319_v51 }
  0xe2   : > { %8763 = vst [vmem:[#allocation9_spill] sm:$0xff] %v5052_v52  ;;  %1149 = vmatprep.mubr.f32.mxu0 %v8330_v0 }
  0xe3   : > { %v5059_v54 = vpop.f32.mrf.mxu0 }
  0xe4   : > { %8764 = vst [vmem:[#allocation10_spill] sm:$0xff] %v5059_v54 }
  0xe5   : > { %v5061_v55 = vpop.f32.mrf.mxu0  ;;  %4176 = vmatmul.mubr.msk.f32.gmra.mxu0 %vm399_vm1, %v320_v53 }
  0xe6   : > { %8765 = vst [vmem:[#allocation11_spill] sm:$0xff] %v5061_v55  ;;  %1155 = vmatprep.mubr.f32.mxu0 %v8330_v0 }
  0xe7   : > { %v5068_v57 = vpop.f32.mrf.mxu0 }
  0xe8   : > { %8766 = vst [vmem:[#allocation12_spill] sm:$0xff] %v5068_v57 }
  0xe9   : > { %v5070_v58 = vpop.f32.mrf.mxu0  ;;  %4177 = vmatmul.mubr.msk.f32.gmra.mxu0 %vm399_vm1, %v321_v56 }
  0xea   : > { %8767 = vst [vmem:[#allocation13_spill] sm:$0xff] %v5070_v58  ;;  %1161 = vmatprep.mubr.f32.mxu0 %v8330_v0 }
  0xeb   : > { %v5077_v60 = vpop.f32.mrf.mxu0 }
  0xec   : > { %8768 = vst [vmem:[#allocation14_spill] sm:$0xff] %v5077_v60 }
  0xed   : > { %v5079_v61 = vpop.f32.mrf.mxu0  ;;  %4178 = vmatmul.mubr.msk.f32.gmra.mxu0 %vm399_vm1, %v322_v59 }
  0xee   : > { %8769 = vst [vmem:[#allocation15_spill] sm:$0xff] %v5079_v61  ;;  %1167 = vmatprep.mubr.f32.mxu0 %v8330_v0 }
  0xef   : > { %v5086_v63 = vpop.f32.mrf.mxu0 }
  0xf0   : > { %8770 = vst [vmem:[#allocation16_spill] sm:$0xff] %v5086_v63 }
  0xf1   : > { %v5088_v1 = vpop.f32.mrf.mxu0  ;;  %4179 = vmatmul.mubr.msk.f32.gmra.mxu0 %vm399_vm1, %v323_v62 }
  0xf2   : > { %8771 = vst [vmem:[#allocation17_spill] sm:$0xff] %v5088_v1  ;;  %1173 = vmatprep.mubr.f32.mxu0 %v8330_v0 }
  0xf3   : > { %v5095_v3 = vpop.f32.mrf.mxu0 }
  0xf4   : > { %8772 = vst [vmem:[#allocation18_spill] sm:$0xff] %v5095_v3 }
  0xf5   : > { %v5097_v4 = vpop.f32.mrf.mxu0  ;;  %4180 = vmatmul.mubr.msk.f32.gmra.mxu0 %vm399_vm1, %v324_v2  ;;  %v338_v2 = vld [vmem:[%s8305_s1 + $0x218] sm:$0xff] }
  0xf6   : > { %1179 = vmatprep.mubr.f32.mxu0 %v8330_v0 }
  0xf7   : > { %v5104_v6 = vpop.f32.mrf.mxu0 }
  0xf8   : > { %8773 = vst [vmem:[#allocation19_spill] sm:$0xff] %v5104_v6 }
  0xf9   : > { %v5106_v7 = vpop.f32.mrf.mxu0  ;;  %4181 = vmatmul.mubr.msk.f32.gmra.mxu0 %vm399_vm1, %v325_v5 }
  0xfa   : > { %1185 = vmatprep.mubr.f32.mxu0 %v8330_v0 }
  0xfb   : > { %v5113_v9 = vpop.f32.mrf.mxu0 }
  0xfc   : > { %8774 = vst [vmem:[#allocation20_spill] sm:$0xff] %v5113_v9 }
  0xfd   : > { %v5115_v10 = vpop.f32.mrf.mxu0  ;;  %4182 = vmatmul.mubr.msk.f32.gmra.mxu0 %vm399_vm1, %v326_v8 }
  0xfe   : > { %1191 = vmatprep.mubr.f32.mxu0 %v8330_v0 }
  0xff   : > { %v5122_v12 = vpop.f32.mrf.mxu0 }
 0x100   : > { %8775 = vst [vmem:[#allocation21_spill] sm:$0xff] %v5122_v12 }
 0x101   : > { %v5124_v13 = vpop.f32.mrf.mxu0  ;;  %4183 = vmatmul.mubr.msk.f32.gmra.mxu0 %vm399_vm1, %v327_v11 }
 0x102   : > { %1197 = vmatprep.mubr.f32.mxu0 %v8330_v0 }
 0x103   : > { %v5131_v15 = vpop.f32.mrf.mxu0 }
 0x104   : > { %8776 = vst [vmem:[#allocation22_spill] sm:$0xff] %v5131_v15 }
 0x105   : > { %v5133_v16 = vpop.f32.mrf.mxu0  ;;  %4184 = vmatmul.mubr.msk.f32.gmra.mxu0 %vm399_vm1, %v328_v14 }
 0x106   : > { %1203 = vmatprep.mubr.f32.mxu0 %v8330_v0  ;;  %v1642_v14 = vmul.f32 %v5133_v16, %v5133_v16 }
 0x107   : > { %v5140_v18 = vpop.f32.mrf.mxu0 }
 0x108   : > { %8777 = vst [vmem:[#allocation23_spill] sm:$0xff] %v5140_v18  ;;  %v1643_v11 = vmul.f32 %v5140_v18, %v5140_v18 }
 0x109   : > { %v5142_v19 = vpop.f32.mrf.mxu0  ;;  %4185 = vmatmul.mubr.msk.f32.gmra.mxu0 %vm399_vm1, %v329_v17 }
 0x10a   : > { %1209 = vmatprep.mubr.f32.mxu0 %v8330_v0  ;;  %v1644_v5 = vmul.f32 %v5142_v19, %v5142_v19 }
 0x10b   : > { %v5149_v21 = vpop.f32.mrf.mxu0 }
 0x10c   : > { %8778 = vst [vmem:[#allocation24_spill] sm:$0xff] %v5149_v21  ;;  %v1645_v62 = vmul.f32 %v5149_v21, %v5149_v21 }
 0x10d   : > { %v5151_v22 = vpop.f32.mrf.mxu0  ;;  %4186 = vmatmul.mubr.msk.f32.gmra.mxu0 %vm399_vm1, %v330_v20  ;;  %v1641_v20 = vmul.f32 %v5131_v15, %v5131_v15 }
 0x10e   : > { %1215 = vmatprep.mubr.f32.mxu0 %v8330_v0  ;;  %v1646_v56 = vmul.f32 %v5151_v22, %v5151_v22 }
 0x10f   : > { %v5158_v24 = vpop.f32.mrf.mxu0 }
 0x110   : > { %8779 = vst [vmem:[#allocation25_spill] sm:$0xff] %v5158_v24  ;;  %v1647_v53 = vmul.f32 %v5158_v24, %v5158_v24 }
 0x111   : > { %v5160_v25 = vpop.f32.mrf.mxu0  ;;  %4187 = vmatmul.mubr.msk.f32.gmra.mxu0 %vm399_vm1, %v331_v23  ;;  %v339_v23 = vld [vmem:[%s8305_s1 + $0x220] sm:$0xff] }
 0x112   : > { %1221 = vmatprep.mubr.f32.mxu0 %v8330_v0  ;;  %v1648_v50 = vmul.f32 %v5160_v25, %v5160_v25 }
 0x113   : > { %v5167_v27 = vpop.f32.mrf.mxu0 }
 0x114   : > { %8780 = vst [vmem:[#allocation26_spill] sm:$0xff] %v5167_v27  ;;  %v1649_v48 = vmul.f32 %v5167_v27, %v5167_v27 }
 0x115   : > { %v5169_v28 = vpop.f32.mrf.mxu0  ;;  %4188 = vmatmul.mubr.msk.f32.gmra.mxu0 %vm399_vm1, %v332_v26  ;;  %v1640_v26 = vmul.f32 %v5124_v13, %v5124_v13 }
 0x116   : > { %1227 = vmatprep.mubr.f32.mxu0 %v8330_v0  ;;  %v1650_v46 = vmul.f32 %v5169_v28, %v5169_v28 }
 0x117   : > { %v5176_v30 = vpop.f32.mrf.mxu0 }
 0x118   : > { %8781 = vst [vmem:[#allocation27_spill] sm:$0xff] %v5176_v30  ;;  %v1651_v45 = vmul.f32 %v5176_v30, %v5176_v30 }
 0x119   : > { %v5178_v31 = vpop.f32.mrf.mxu0  ;;  %4189 = vmatmul.mubr.msk.f32.gmra.mxu0 %vm399_vm1, %v333_v29 }
 0x11a   : > { %1233 = vmatprep.mubr.f32.mxu0 %v8330_v0  ;;  %v1652_v42 = vmul.f32 %v5178_v31, %v5178_v31 }
 0x11b   : > { %v5185_v33 = vpop.f32.mrf.mxu0 }
 0x11c   : > { %8782 = vst [vmem:[#allocation28_spill] sm:$0xff] %v5185_v33  ;;  %v1653_v40 = vmul.f32 %v5185_v33, %v5185_v33 }
 0x11d   : > { %v5187_v34 = vpop.f32.mrf.mxu0  ;;  %4190 = vmatmul.mubr.msk.f32.gmra.mxu0 %vm399_vm1, %v334_v32  ;;  %v1639_v32 = vmul.f32 %v5122_v12, %v5122_v12 }
 0x11e   : > { %1239 = vmatprep.mubr.f32.mxu0 %v8330_v0  ;;  %v1654_v39 = vmul.f32 %v5187_v34, %v5187_v34 }
 0x11f   : > { %v5194_v36 = vpop.f32.mrf.mxu0 }
 0x120   : > { %8783 = vst [vmem:[#allocation29_spill] sm:$0xff] %v5194_v36  ;;  %v1655_v37 = vmul.f32 %v5194_v36, %v5194_v36 }
 0x121   : > { %v5198_v38 = vpop.f32.mrf.mxu0  ;;  %4191 = vmatmul.mubr.msk.f32.gmra.mxu0 %vm399_vm1, %v335_v35  ;;  %v1638_v35 = vmul.f32 %v5115_v10, %v5115_v10 }
 0x122   : > { %8784 = vst [vmem:[#allocation30_spill] sm:$0xff] %v5198_v38  ;;  %1880 = vmatprep.subr.mxu1 %v1655_v37  ;;  %1245 = vmatprep.mubr.f32.mxu0 %v8330_v0 }
 0x123   : > { %v5211_v43 = vpop.f32.mrf.mxu0  ;;  %1881 = vmatpush1.msra.mxu1 %v1654_v39  ;;  %v1637_v39 = vmul.f32 %v5113_v9, %v5113_v9 }
 0x124   : > { %8785 = vst [vmem:[#allocation31_spill] sm:$0xff] %v5211_v43  ;;  %1882 = vmatprep.subr.mxu1 %v1653_v40  ;;  %v340_v40 = vld [vmem:[%s8305_s1 + $0x228] sm:$0xff] }
 0x125   : > { %v5218_v47 = vpop.f32.mrf.mxu0  ;;  %4192 = vmatmul.mubr.msk.f32.gmra.mxu0 %vm399_vm1, %v336_v41  ;;  %1883 = vmatpush1.msra.mxu1 %v1652_v42  ;;  %v1636_v41 = vmul.f32 %v5106_v7, %v5106_v7 }
 0x126   : > { %8786 = vst [vmem:[#allocation32_spill] sm:$0xff] %v5218_v47  ;;  %1884 = vmatprep.subr.mxu1 %v1651_v45  ;;  %1251 = vmatprep.mubr.f32.mxu0 %v8330_v0  ;;  %v1635_v45 = vmul.f32 %v5104_v6, %v5104_v6 }
 0x127   : > { %v5229_v51 = vpop.f32.mrf.mxu0  ;;  %1885 = vmatpush1.msra.mxu1 %v1650_v46  ;;  %v1634_v46 = vmul.f32 %v5097_v4, %v5097_v4 }
 0x128   : > { %8787 = vst [vmem:[#allocation33_spill] sm:$0xff] %v5229_v51  ;;  %1886 = vmatprep.subr.mxu1 %v1649_v48 }
 0x129   : > { %v5235_v59 = vpop.f32.mrf.mxu0  ;;  %4193 = vmatmul.mubr.msk.f32.gmra.mxu0 %vm399_vm1, %v337_v49  ;;  %1887 = vmatpush1.msra.mxu1 %v1648_v50  ;;  %v1633_v49 = vmul.f32 %v5095_v3, %v5095_v3  ;;  %v341_v50 = vld [vmem:[%s8305_s1 + $0x230] sm:$0xff] }
 0x12a   : > { %8788 = vst [vmem:[#allocation34_spill] sm:$0xff] %v5235_v59  ;;  %1888 = vmatprep.subr.mxu1 %v1647_v53  ;;  %1257 = vmatprep.mubr.f32.mxu0 %v8330_v0  ;;  %v1632_v53 = vmul.f32 %v5088_v1, %v5088_v1 }
 0x12b   : > { %v5246_v8 = vpop.f32.mrf.mxu0  ;;  %1889 = vmatpush1.msra.mxu1 %v1646_v56 }
 0x12c   : > { %8789 = vst [vmem:[#allocation35_spill] sm:$0xff] %v5246_v8  ;;  %1890 = vmatprep.subr.mxu1 %v1645_v62  ;;  %v1631_v62 = vmul.f32 %v5086_v63, %v5086_v63 }
 0x12d   : > { %v5252_v17 = vpop.f32.mrf.mxu0  ;;  %4194 = vmatmul.mubr.msk.f32.gmra.mxu0 %vm399_vm1, %v338_v2  ;;  %1891 = vmatpush1.msra.mxu1 %v1644_v5  ;;  %v1630_v2 = vmul.f32 %v5079_v61, %v5079_v61  ;;  %v352_v61 = vld [vmem:[%s8305_s1 + $0x288] sm:$0xff] }
 0x12e   : > { %8790 = vst [vmem:[#allocation36_spill] sm:$0xff] %v5252_v17  ;;  %1892 = vmatprep.subr.mxu1 %v1643_v11  ;;  %1263 = vmatprep.mubr.f32.mxu0 %v8330_v0  ;;  %v1629_v11 = vmul.f32 %v5077_v60, %v5077_v60 }
 0x12f   : > { %v5263_v29 = vpop.f32.mrf.mxu0  ;;  %1893 = vmatpush1.msra.mxu1 %v1642_v14  ;;  %v342_v14 = vld [vmem:[%s8305_s1 + $0x238] sm:$0xff] }
 0x130   : > { %8791 = vst [vmem:[#allocation37_spill] sm:$0xff] %v5263_v29  ;;  %1894 = vmatprep.subr.mxu1 %v1641_v20  ;;  %v1628_v20 = vmul.f32 %v5070_v58, %v5070_v58 }
 0x131   : > { %v5269_v37 = vpop.f32.mrf.mxu0  ;;  %4195 = vmatmul.mubr.msk.f32.gmra.mxu0 %vm399_vm1, %v339_v23  ;;  %1895 = vmatpush1.msra.mxu1 %v1640_v26  ;;  %v1627_v26 = vmul.f32 %v5068_v57, %v5068_v57 }
 0x132   : > { %8792 = vst [vmem:[#allocation38_spill] sm:$0xff] %v5269_v37  ;;  %1896 = vmatprep.subr.mxu1 %v1639_v32  ;;  %1269 = vmatprep.mubr.f32.mxu0 %v8330_v0  ;;  %v1626_v32 = vmul.f32 %v5061_v55, %v5061_v55  ;;  %v351_v55 = vld [vmem:[%s8305_s1 + $0x280] sm:$0xff] }
 0x133   : > { %v5280_v42 = vpop.f32.mrf.mxu0  ;;  %1897 = vmatpush1.msra.mxu1 %v1638_v35 }
 0x134   : > { %8793 = vst [vmem:[#allocation39_spill] sm:$0xff] %v5280_v42  ;;  %1898 = vmatprep.subr.mxu1 %v1637_v39  ;;  %v1625_v39 = vmul.f32 %v5059_v54, %v5059_v54 }
 0x135   : > { %v5286_v48 = vpop.f32.mrf.mxu0  ;;  %4196 = vmatmul.mubr.msk.f32.gmra.mxu0 %vm399_vm1, %v340_v40  ;;  %1899 = vmatpush1.msra.mxu1 %v1636_v41  ;;  %v343_v40 = vld [vmem:[%s8305_s1 + $0x240] sm:$0xff]  ;;  %v1624_v41 = vmul.f32 %v5052_v52, %v5052_v52  ;;  %v350_v52 = vld [vmem:[%s8305_s1 + $0x278] sm:$0xff] }
 0x136   : > { %8794 = vst [vmem:[#allocation40_spill] sm:$0xff] %v5286_v48  ;;  %1900 = vmatprep.subr.mxu1 %v1635_v45  ;;  %1275 = vmatprep.mubr.f32.mxu0 %v8330_v0 }
 0x137   : > { %v5297_v56 = vpop.f32.mrf.mxu0  ;;  %1901 = vmatpush1.msra.mxu1 %v1634_v46 }
 0x138   : > { %8795 = vst [vmem:[#allocation41_spill] sm:$0xff] %v5297_v56  ;;  %1902 = vmatprep.subr.mxu1 %v1633_v49  ;;  %v344_v49 = vld [vmem:[%s8305_s1 + $0x248] sm:$0xff] }
 0x139   : > { %v5303_v5 = vpop.f32.mrf.mxu0  ;;  %4197 = vmatmul.mubr.msk.f32.gmra.mxu0 %vm399_vm1, %v341_v50  ;;  %1903 = vmatpush1.msra.mxu1 %v1632_v53 }
 0x13a   : > { %8796 = vst [vmem:[#allocation42_spill] sm:$0xff] %v5303_v5  ;;  %1904 = vmatprep.subr.mxu1 %v1631_v62  ;;  %1281 = vmatprep.mubr.f32.mxu0 %v8330_v0  ;;  %v345_v62 = vld [vmem:[%s8305_s1 + $0x250] sm:$0xff] }
 0x13b   : > { %v5314_v23 = vpop.f32.mrf.mxu0  ;;  %1905 = vmatpush1.msra.mxu1 %v1630_v2 }
 0x13c   : > { %8797 = vst [vmem:[#allocation43_spill] sm:$0xff] %v5314_v23  ;;  %1906 = vmatprep.subr.mxu1 %v1629_v11 }
 0x13d   : > { %v5320_v35 = vpop.f32.mrf.mxu0  ;;  %4198 = vmatmul.mubr.msk.f32.gmra.mxu0 %vm399_vm1, %v342_v14  ;;  %1907 = vmatpush1.msra.mxu1 %v1628_v20  ;;  %v346_v14 = vld [vmem:[%s8305_s1 + $0x258] sm:$0xff] }
 0x13e   : > { %8798 = vst [vmem:[#allocation44_spill] sm:$0xff] %v5320_v35  ;;  %1908 = vmatprep.subr.mxu1 %v1627_v26  ;;  %1287 = vmatprep.mubr.f32.mxu0 %v8330_v0 }
 0x13f   : > { %v5331_v45 = vpop.f32.mrf.mxu0  ;;  %1909 = vmatpush1.msra.mxu1 %v1626_v32  ;;  %v347_v32 = vld [vmem:[%s8305_s1 + $0x260] sm:$0xff] }
 0x140   : > { %8799 = vst [vmem:[#allocation45_spill] sm:$0xff] %v5331_v45  ;;  %1910 = vmatprep.subr.mxu1 %v1625_v39 }
 0x141   : > { %v5333_v46 = vpop.f32.mrf.mxu0  ;;  %4199 = vmatmul.mubr.msk.f32.gmra.mxu0 %vm399_vm1, %v343_v40  ;;  %1911 = vmatpush1.msra.mxu1 %v1624_v41  ;;  %v348_v41 = vld [vmem:[%s8305_s1 + $0x268] sm:$0xff] }
 0x142   : > { %8800 = vst [vmem:[#allocation46_spill] sm:$0xff] %v5333_v46  ;;  %1293 = vmatprep.mubr.f32.mxu0 %v8330_v0 }
 0x143   : > { %v5340_v50 = vpop.f32.mrf.mxu0 }
 0x144   : > { %8801 = vst [vmem:[#allocation47_spill] sm:$0xff] %v5340_v50 }
 0x145   : > { %v5342_v53 = vpop.f32.mrf.mxu0  ;;  %4200 = vmatmul.mubr.msk.f32.gmra.mxu0 %vm399_vm1, %v344_v49 }
 0x146   : > { %8802 = vst [vmem:[#allocation48_spill] sm:$0xff] %v5342_v53  ;;  %1299 = vmatprep.mubr.f32.mxu0 %v8330_v0 }
 0x147   : > { %v5349_v2 = vpop.f32.mrf.mxu0 }
 0x148   : > { %8803 = vst [vmem:[#allocation49_spill] sm:$0xff] %v5349_v2 }
 0x149   : > { %v5351_v11 = vpop.f32.mrf.mxu0  ;;  %4201 = vmatmul.mubr.msk.f32.gmra.mxu0 %vm399_vm1, %v345_v62 }
 0x14a   : > { %8804 = vst [vmem:[#allocation50_spill] sm:$0xff] %v5351_v11  ;;  %1305 = vmatprep.mubr.f32.mxu0 %v8330_v0 }
 0x14b   : > { %v5358_v20 = vpop.f32.mrf.mxu0 }
 0x14c   : > { %8805 = vst [vmem:[#allocation51_spill] sm:$0xff] %v5358_v20 }
 0x14d   : > { %v5360_v26 = vpop.f32.mrf.mxu0  ;;  %4202 = vmatmul.mubr.msk.f32.gmra.mxu0 %vm399_vm1, %v346_v14  ;;  %v349_v14 = vld [vmem:[%s8305_s1 + $0x270] sm:$0xff] }
 0x14e   : > { %8806 = vst [vmem:[#allocation52_spill] sm:$0xff] %v5360_v26  ;;  %1311 = vmatprep.mubr.f32.mxu0 %v8330_v0 }
 0x14f   : > { %v5367_v39 = vpop.f32.mrf.mxu0 }
 0x150   : > { %8807 = vst [vmem:[#allocation53_spill] sm:$0xff] %v5367_v39 }
 0x151   : > { %v5369_v40 = vpop.f32.mrf.mxu0  ;;  %4203 = vmatmul.mubr.msk.f32.gmra.mxu0 %vm399_vm1, %v347_v32 }
 0x152   : > { %8808 = vst [vmem:[#allocation54_spill] sm:$0xff] %v5369_v40  ;;  %1317 = vmatprep.mubr.f32.mxu0 %v8330_v0 }
 0x153   : > { %v5376_v49 = vpop.f32.mrf.mxu0 }
 0x154   : > { %8809 = vst [vmem:[#allocation55_spill] sm:$0xff] %v5376_v49 }
 0x155   : > { %v5378_v62 = vpop.f32.mrf.mxu0  ;;  %4204 = vmatmul.mubr.msk.f32.gmra.mxu0 %vm399_vm1, %v348_v41 }
 0x156   : > { %8810 = vst [vmem:[#allocation56_spill] sm:$0xff] %v5378_v62  ;;  %1323 = vmatprep.mubr.f32.mxu0 %v8330_v0 }
 0x157   : > { %v5385_v44 = vpop.f32.mrf.mxu0 }
 0x158   : > { %8811 = vst [vmem:[#allocation57_spill] sm:$0xff] %v5385_v44 }
 0x159   : > { %v5387_v32 = vpop.f32.mrf.mxu0  ;;  %4205 = vmatmul.mubr.msk.f32.gmra.mxu0 %vm399_vm1, %v349_v14 }
 0x15a   : > { %8812 = vst [vmem:[#allocation58_spill] sm:$0xff] %v5387_v32  ;;  %1329 = vmatprep.mubr.f32.mxu0 %v8330_v0 }
 0x15b   : > { %v5394_v54 = vpop.f32.mrf.mxu0 }
 0x15c   : > { %8813 = vst [vmem:[#allocation59_spill] sm:$0xff] %v5394_v54 }
 0x15d   : > { %v5396_v41 = vpop.f32.mrf.mxu0  ;;  %4206 = vmatmul.mubr.msk.f32.gmra.mxu0 %vm399_vm1, %v350_v52  ;;  %v1685_v52 = vmul.f32 %v5394_v54, %v5394_v54  ;;  %v8819_v54 = vmov 0.0  }
 0x15e   : > { %8814 = vst [vmem:[#allocation60_spill] sm:$0xff] %v5396_v41  ;;  %1335 = vmatprep.mubr.f32.mxu0 %v8330_v0  ;;  %v1686_v58 = vmul.f32 %v5396_v41, %v5396_v41  ;;  %v368_v41 = vld [vmem:[%s8305_s1 + $0x308] sm:$0xff] }
 0x15f   : > { %v5403_v57 = vpop.f32.mrf.mxu0 }
 0x160   : > { %8815 = vst [vmem:[#allocation61_spill] sm:$0xff] %v5403_v57  ;;  %v1687_v14 = vmul.f32 %v5403_v57, %v5403_v57  ;;  %v1684_v57 = vmul.f32 %v5387_v32, %v5387_v32  ;;  %v1681_v32 = vmul.f32 %v5376_v49, %v5376_v49 }
 0x161   : > { %v5409_v60 = vpop.f32.mrf.mxu0  ;;  %4207 = vmatmul.mubr.msk.f32.gmra.mxu0 %vm399_vm1, %v351_v55  ;;  %v1683_v55 = vmul.f32 %v5385_v44, %v5385_v44 }
 0x162   : > { %8816 = vst [vmem:[#allocation62_spill] sm:$0xff] %v5409_v60  ;;  %1912 = vmatprep.subr.mxu1 %v1687_v14  ;;  %1341 = vmatprep.mubr.f32.mxu0 %v8330_v0  ;;  %v1682_v14 = vmul.f32 %v5378_v62, %v5378_v62 }
 0x163   : > { %v5420_v63 = vpop.f32.mrf.mxu0  ;;  %1913 = vmatpush2.msra.mxu1 %v1686_v58  ;;  %v353_v58 = vld [vmem:[%s8305_s1 + $0x290] sm:$0xff] }
 0x164   : > { %8817 = vst [vmem:[#allocation63_spill] sm:$0xff] %v5420_v63  ;;  %1914 = vmatprep.subr.mxu1 %v1685_v52  ;;  %v1680_v52 = vmul.f32 %v5369_v40, %v5369_v40  ;;  %v1677_v40 = vmul.f32 %v5358_v20, %v5358_v20  ;;  %v367_v20 = vld [vmem:[%s8305_s1 + $0x300] sm:$0xff] }
 0x165   : > { %v5426_v0 = vpop.f32.mrf.mxu0  ;;  %4208 = vmatmul.mubr.msk.f32.gmra.mxu0 %vm399_vm1, %v352_v61  ;;  %1915 = vmatpush2.msra.mxu1 %v1684_v57  ;;  %v1679_v57 = vmul.f32 %v5367_v39, %v5367_v39  ;;  %v1678_v61 = vmul.f32 %v5360_v26, %v5360_v26 }
 0x166   : > { %8818 = vst [vmem:[#allocation64_spill] sm:$0xff] %v5426_v0  ;;  %1916 = vmatprep.subr.mxu1 %v1683_v55  ;;  %1347 = vmatprep.mubr.f32.mxu0 %v8819_v54 }
 0x167   : > { %v5437_v44 = vpop.f32.mrf.mxu0  ;;  %1917 = vmatpush2.msra.mxu1 %v1682_v14  ;;  %v1676_v14 = vmul.f32 %v5351_v11, %v5351_v11  ;;  %v1673_v11 = vmul.f32 %v5340_v50, %v5340_v50  ;;  %v366_v50 = vld [vmem:[%s8305_s1 + $0x2f8] sm:$0xff] }
 0x168   : > { %8820 = vst [vmem:[#allocation65_spill] sm:$0xff] %v5437_v44  ;;  %1918 = vmatprep.subr.mxu1 %v1681_v32  ;;  %v354_v32 = vld [vmem:[%s8305_s1 + $0x298] sm:$0xff] }
 0x169   : > { %v5443_v55 = vpop.f32.mrf.mxu0  ;;  %4209 = vmatmul.mubr.msk.f32.gmra.mxu0 %vm399_vm1, %v353_v58  ;;  %1919 = vmatpush2.msra.mxu1 %v1680_v52  ;;  %v1675_v58 = vmul.f32 %v5349_v2, %v5349_v2  ;;  %v1674_v52 = vmul.f32 %v5342_v53, %v5342_v53 }
 0x16a   : > { %8821 = vst [vmem:[#allocation66_spill] sm:$0xff] %v5443_v55  ;;  %1920 = vmatprep.subr.mxu1 %v1679_v57  ;;  %1353 = vmatprep.mubr.f32.mxu0 %v8819_v54 }
 0x16b   : > { %v5454_v39 = vpop.f32.mrf.mxu0  ;;  %1921 = vmatpush2.msra.mxu1 %v1678_v61  ;;  %v1672_v61 = vmul.f32 %v5333_v46, %v5333_v46  ;;  %v1669_v46 = vmul.f32 %v5314_v23, %v5314_v23  ;;  %v365_v23 = vld [vmem:[%s8305_s1 + $0x2f0] sm:$0xff] }
 0x16c   : > { %8822 = vst [vmem:[#allocation67_spill] sm:$0xff] %v5454_v39  ;;  %1922 = vmatprep.subr.mxu1 %v1677_v40  ;;  %v355_v40 = vld [vmem:[%s8305_s1 + $0x2a0] sm:$0xff] }
 0x16d   : > { %v5460_v57 = vpop.f32.mrf.mxu0  ;;  %4210 = vmatmul.mubr.msk.f32.gmra.mxu0 %vm399_vm1, %v354_v32  ;;  %1923 = vmatpush2.msra.mxu1 %v1676_v14  ;;  %v1671_v32 = vmul.f32 %v5331_v45, %v5331_v45  ;;  %v1670_v14 = vmul.f32 %v5320_v35, %v5320_v35 }
 0x16e   : > { %8823 = vst [vmem:[#allocation68_spill] sm:$0xff] %v5460_v57  ;;  %1924 = vmatprep.subr.mxu1 %v1675_v58  ;;  %1359 = vmatprep.mubr.f32.mxu0 %v8819_v54 }
 0x16f   : > { %v5471_v2 = vpop.f32.mrf.mxu0  ;;  %1925 = vmatpush2.msra.mxu1 %v1674_v52  ;;  %v1668_v52 = vmul.f32 %v5303_v5, %v5303_v5  ;;  %v1665_v5 = vmul.f32 %v5280_v42, %v5280_v42  ;;  %v364_v42 = vld [vmem:[%s8305_s1 + $0x2e8] sm:$0xff] }
 0x170   : > { %8824 = vst [vmem:[#allocation69_spill] sm:$0xff] %v5471_v2  ;;  %1926 = vmatprep.subr.mxu1 %v1673_v11  ;;  %v356_v11 = vld [vmem:[%s8305_s1 + $0x2a8] sm:$0xff] }
 0x171   : > { %v5477_v58 = vpop.f32.mrf.mxu0  ;;  %4211 = vmatmul.mubr.msk.f32.gmra.mxu0 %vm399_vm1, %v355_v40  ;;  %1927 = vmatpush2.msra.mxu1 %v1672_v61  ;;  %v1667_v40 = vmul.f32 %v5297_v56, %v5297_v56  ;;  %v1666_v61 = vmul.f32 %v5286_v48, %v5286_v48 }
 0x172   : > { %8825 = vst [vmem:[#allocation70_spill] sm:$0xff] %v5477_v58  ;;  %1928 = vmatprep.subr.mxu1 %v1671_v32  ;;  %1365 = vmatprep.mubr.f32.mxu0 %v8819_v54 }
 0x173   : > { %v5488_v45 = vpop.f32.mrf.mxu0  ;;  %1929 = vmatpush2.msra.mxu1 %v1670_v14  ;;  %v1664_v14 = vmul.f32 %v5269_v37, %v5269_v37  ;;  %v1661_v37 = vmul.f32 %v5246_v8, %v5246_v8  ;;  %v363_v8 = vld [vmem:[%s8305_s1 + $0x2e0] sm:$0xff] }
 0x174   : > { %8826 = vst [vmem:[#allocation71_spill] sm:$0xff] %v5488_v45  ;;  %1930 = vmatprep.subr.mxu1 %v1669_v46  ;;  %v357_v46 = vld [vmem:[%s8305_s1 + $0x2b0] sm:$0xff] }
 0x175   : > { %v5494_v32 = vpop.f32.mrf.mxu0  ;;  %4212 = vmatmul.mubr.msk.f32.gmra.mxu0 %vm399_vm1, %v356_v11  ;;  %1931 = vmatpush2.msra.mxu1 %v1668_v52  ;;  %v1663_v11 = vmul.f32 %v5263_v29, %v5263_v29  ;;  %v1662_v52 = vmul.f32 %v5252_v17, %v5252_v17 }
 0x176   : > { %8827 = vst [vmem:[#allocation72_spill] sm:$0xff] %v5494_v32  ;;  %1932 = vmatprep.subr.mxu1 %v1667_v40  ;;  %1371 = vmatprep.mubr.f32.mxu0 %v8819_v54 }
 0x177   : > { %v5505_v56 = vpop.f32.mrf.mxu0  ;;  %1933 = vmatpush2.msra.mxu1 %v1666_v61  ;;  %v1660_v61 = vmul.f32 %v5235_v59, %v5235_v59  ;;  %v1657_v59 = vmul.f32 %v5211_v43, %v5211_v43 }
 0x178   : > { %8828 = vst [vmem:[#allocation73_spill] sm:$0xff] %v5505_v56  ;;  %1934 = vmatprep.subr.mxu1 %v1665_v5  ;;  %v358_v5 = vld [vmem:[%s8305_s1 + $0x2b8] sm:$0xff] }
 0x179   : > { %v5511_v40 = vpop.f32.mrf.mxu0  ;;  %4213 = vmatmul.mubr.msk.f32.gmra.mxu0 %vm399_vm1, %v357_v46  ;;  %1935 = vmatpush2.msra.mxu1 %v1664_v14  ;;  %v1659_v46 = vmul.f32 %v5229_v51, %v5229_v51  ;;  %v1658_v14 = vmul.f32 %v5218_v47, %v5218_v47 }
 0x17a   : > { %8829 = vst [vmem:[#allocation74_spill] sm:$0xff] %v5511_v40  ;;  %1936 = vmatprep.subr.mxu1 %v1663_v11  ;;  %1377 = vmatprep.mubr.f32.mxu0 %v8819_v54 }
 0x17b   : > { %v5522_v29 = vpop.f32.mrf.mxu0  ;;  %1937 = vmatpush2.msra.mxu1 %v1662_v52  ;;  %v1656_v52 = vmul.f32 %v5198_v38, %v5198_v38 }
 0x17c   : > { %8830 = vst [vmem:[#allocation75_spill] sm:$0xff] %v5522_v29  ;;  %1938 = vmatprep.subr.mxu1 %v1661_v37  ;;  %v359_v37 = vld [vmem:[%s8305_s1 + $0x2c0] sm:$0xff] }
 0x17d   : > { %v5528_v11 = vpop.f32.mrf.mxu0  ;;  %4214 = vmatmul.mubr.msk.f32.gmra.mxu0 %vm399_vm1, %v358_v5  ;;  %1939 = vmatpush2.msra.mxu1 %v1660_v61  ;;  %v360_v5 = vld [vmem:[%s8305_s1 + $0x2c8] sm:$0xff]  ;;  %v8834_v61 = vmov 1.0  }
 0x17e   : > { %8831 = vst [vmem:[#allocation76_spill] sm:$0xff] %v5528_v11  ;;  %1940 = vmatprep.subr.mxu1 %v1659_v46  ;;  %1383 = vmatprep.mubr.f32.mxu0 %v8819_v54 }
 0x17f   : > { %v5539_v51 = vpop.f32.mrf.mxu0  ;;  %1941 = vmatpush2.msra.mxu1 %v1658_v14 }
 0x180   : > { %8832 = vst [vmem:[#allocation77_spill] sm:$0xff] %v5539_v51  ;;  %1942 = vmatprep.subr.mxu1 %v1657_v59  ;;  %v361_v59 = vld [vmem:[%s8305_s1 + $0x2d0] sm:$0xff] }
 0x181   : > { %v5541_v47 = vpop.f32.mrf.mxu0  ;;  %4215 = vmatmul.mubr.msk.f32.gmra.mxu0 %vm399_vm1, %v359_v37  ;;  %1943 = vmatpush2.msra.mxu1 %v1656_v52  ;;  %v362_v52 = vld [vmem:[%s8305_s1 + $0x2d8] sm:$0xff] }
 0x182   : > { %8833 = vst [vmem:[#allocation78_spill] sm:$0xff] %v5541_v47  ;;  %1389 = vmatprep.mubr.f32.mxu0 %v8819_v54  ;;  %1945 = vmatmul.mubr.f32.vlgmr.msra.gmra.mxu1 %v8834_v61 }
 0x183   : > { %v5549_v46 = vpop.f32.mrf.mxu0  ;;  %2015 = vmatprep.mubr.f32.mxu1 %v8834_v61 }
 0x184   : > { %8835 = vst [vmem:[#allocation79_spill] sm:$0xff] %v5549_v46 }
 0x185   : > { %v5552_v38 = vpop.f32.mrf.mxu0  ;;  %4216 = vmatmul.mubr.msk.f32.gmra.mxu0 %vm399_vm1, %v360_v5 }
 0x186   : > { %8836 = vst [vmem:[#allocation80_spill] sm:$0xff] %v5552_v38  ;;  %1395 = vmatprep.mubr.f32.mxu0 %v8819_v54 }
 0x187   : > { %v5559_v14 = vpop.f32.mrf.mxu0 }
 0x188   : > { %8837 = vst [vmem:[#allocation81_spill] sm:$0xff] %v5559_v14 }
 0x189   : > { %v5561_v37 = vpop.f32.mrf.mxu0  ;;  %4217 = vmatmul.mubr.msk.f32.gmra.mxu0 %vm399_vm1, %v361_v59 }
 0x18a   : > { %8838 = vst [vmem:[#allocation82_spill] sm:$0xff] %v5561_v37  ;;  %1401 = vmatprep.mubr.f32.mxu0 %v8819_v54 }
 0x18b   : > { %v5568_v43 = vpop.f32.mrf.mxu0 }
 0x18c   : > { %8839 = vst [vmem:[#allocation83_spill] sm:$0xff] %v5568_v43 }
 0x18d   : > { %v5570_v5 = vpop.f32.mrf.mxu0  ;;  %4218 = vmatmul.mubr.msk.f32.gmra.mxu0 %vm399_vm1, %v362_v52 }
 0x18e   : > { %8840 = vst [vmem:[#allocation84_spill] sm:$0xff] %v5570_v5  ;;  %1407 = vmatprep.mubr.f32.mxu0 %v8819_v54 }
 0x18f   : > { %v5577_v17 = vpop.f32.mrf.mxu0 }
 0x190   : > { %8841 = vst [vmem:[#allocation85_spill] sm:$0xff] %v5577_v17 }
 0x191   : > { %v5579_v59 = vpop.f32.mrf.mxu0  ;;  %4219 = vmatmul.mubr.msk.f32.gmra.mxu0 %vm399_vm1, %v363_v8 }
 0x192   : > { %8842 = vst [vmem:[#allocation86_spill] sm:$0xff] %v5579_v59  ;;  %1413 = vmatprep.mubr.f32.mxu0 %v8819_v54 }
 0x193   : > { %v5586_v48 = vpop.f32.mrf.mxu0 }
 0x194   : > { %8843 = vst [vmem:[#allocation87_spill] sm:$0xff] %v5586_v48 }
 0x195   : > { %v5588_v52 = vpop.f32.mrf.mxu0  ;;  %4220 = vmatmul.mubr.msk.f32.gmra.mxu0 %vm399_vm1, %v364_v42 }
 0x196   : > { %8844 = vst [vmem:[#allocation88_spill] sm:$0xff] %v5588_v52  ;;  %1419 = vmatprep.mubr.f32.mxu0 %v8819_v54 }
 0x197   : > { %v5595_v35 = vpop.f32.mrf.mxu0 }
 0x198   : > { %8845 = vst [vmem:[#allocation89_spill] sm:$0xff] %v5595_v35 }
 0x199   : > { %v5597_v8 = vpop.f32.mrf.mxu0  ;;  %4221 = vmatmul.mubr.msk.f32.gmra.mxu0 %vm399_vm1, %v365_v23 }
 0x19a   : > { %8846 = vst [vmem:[#allocation90_spill] sm:$0xff] %v5597_v8  ;;  %1425 = vmatprep.mubr.f32.mxu0 %v8819_v54 }
 0x19b   : > { %v5604_v53 = vpop.f32.mrf.mxu0 }
 0x19c   : > { %8847 = vst [vmem:[#allocation91_spill] sm:$0xff] %v5604_v53 }
 0x19d   : > { %v5606_v42 = vpop.f32.mrf.mxu0  ;;  %4222 = vmatmul.mubr.msk.f32.gmra.mxu0 %vm399_vm1, %v366_v50  ;;  %v1717_v50 = vmul.f32 %v5604_v53, %v5604_v53 }
 0x19e   : > { %8848 = vst [vmem:[#allocation92_spill] sm:$0xff] %v5606_v42  ;;  %1431 = vmatprep.mubr.f32.mxu0 %v8819_v54  ;;  %v1718_v49 = vmul.f32 %v5606_v42, %v5606_v42 }
 0x19f   : > { %v5613_v26 = vpop.f32.mrf.mxu0 }
 0x1a0   : > { %8849 = vst [vmem:[#allocation93_spill] sm:$0xff] %v5613_v26  ;;  %v1719_v23 = vmul.f32 %v5613_v26, %v5613_v26  ;;  %v1716_v26 = vmul.f32 %v5597_v8, %v5597_v8  ;;  %v1713_v8 = vmul.f32 %v5586_v48, %v5586_v48 }
 0x1a1   : > { %v5619_v62 = vpop.f32.mrf.mxu0  ;;  %4223 = vmatmul.mubr.msk.f32.gmra.mxu0 %vm399_vm1, %v367_v20  ;;  %v1715_v20 = vmul.f32 %v5595_v35, %v5595_v35 }
 0x1a2   : > { %8850 = vst [vmem:[#allocation94_spill] sm:$0xff] %v5619_v62  ;;  %1951 = vmatprep.subr.mxu1 %v1719_v23  ;;  %1437 = vmatprep.mubr.f32.mxu0 %v8819_v54  ;;  %v1714_v23 = vmul.f32 %v5588_v52, %v5588_v52  ;;  %v384_v52 = vld [vmem:[%s8305_s1 + $0x388] sm:$0xff] }
 0x1a3   : > { %v5630_v1 = vpop.f32.mrf.mxu0  ;;  %1952 = vmatpush1.msra.mxu1 %v1718_v49  ;;  %v369_v49 = vld [vmem:[%s8305_s1 + $0x310] sm:$0xff] }
 0x1a4   : > { %8851 = vst [vmem:[#allocation95_spill] sm:$0xff] %v5630_v1  ;;  %1953 = vmatprep.subr.mxu1 %v1717_v50  ;;  %v1712_v50 = vmul.f32 %v5579_v59, %v5579_v59  ;;  %v1709_v59 = vmul.f32 %v5568_v43, %v5568_v43 }
 0x1a5   : > { %v5636_v42 = vpop.f32.mrf.mxu0  ;;  %4224 = vmatmul.mubr.msk.f32.gmra.mxu0 %vm399_vm1, %v368_v41  ;;  %1954 = vmatpush1.msra.mxu1 %v1716_v26  ;;  %v1711_v26 = vmul.f32 %v5577_v17, %v5577_v17  ;;  %v1710_v41 = vmul.f32 %v5570_v5, %v5570_v5 }
 0x1a6   : > { %8852 = vst [vmem:[#allocation96_spill] sm:$0xff] %v5636_v42  ;;  %1955 = vmatprep.subr.mxu1 %v1715_v20  ;;  %1443 = vmatprep.mubr.f32.mxu0 %v8819_v54 }
 0x1a7   : > { %v5647_v35 = vpop.f32.mrf.mxu0  ;;  %1956 = vmatpush1.msra.mxu1 %v1714_v23  ;;  %v1708_v23 = vmul.f32 %v5561_v37, %v5561_v37  ;;  %v1705_v37 = vmul.f32 %v5549_v46, %v5549_v46 }
 0x1a8   : > { %8853 = vst [vmem:[#allocation97_spill] sm:$0xff] %v5647_v35  ;;  %1957 = vmatprep.subr.mxu1 %v1713_v8  ;;  %v370_v8 = vld [vmem:[%s8305_s1 + $0x318] sm:$0xff] }
 0x1a9   : > { %v5653_v20 = vpop.f32.mrf.mxu0  ;;  %4225 = vmatmul.mubr.msk.f32.gmra.mxu0 %vm399_vm1, %v369_v49  ;;  %1958 = vmatpush1.msra.mxu1 %v1712_v50  ;;  %v1707_v49 = vmul.f32 %v5559_v14, %v5559_v14  ;;  %v1706_v50 = vmul.f32 %v5552_v38, %v5552_v38  ;;  %v383_v38 = vld [vmem:[%s8305_s1 + $0x380] sm:$0xff] }
 0x1aa   : > { %8854 = vst [vmem:[#allocation98_spill] sm:$0xff] %v5653_v20  ;;  %1959 = vmatprep.subr.mxu1 %v1711_v26  ;;  %1449 = vmatprep.mubr.f32.mxu0 %v8819_v54 }
 0x1ab   : > { %v5664_v17 = vpop.f32.mrf.mxu0  ;;  %1960 = vmatpush1.msra.mxu1 %v1710_v41  ;;  %v1704_v41 = vmul.f32 %v5541_v47, %v5541_v47  ;;  %v1701_v47 = vmul.f32 %v5522_v29, %v5522_v29 }
 0x1ac   : > { %8855 = vst [vmem:[#allocation99_spill] sm:$0xff] %v5664_v17  ;;  %1961 = vmatprep.subr.mxu1 %v1709_v59  ;;  %v371_v59 = vld [vmem:[%s8305_s1 + $0x320] sm:$0xff] }
 0x1ad   : > { %v5670_v26 = vpop.f32.mrf.mxu0  ;;  %4226 = vmatmul.mubr.msk.f32.gmra.mxu0 %vm399_vm1, %v370_v8  ;;  %1962 = vmatpush1.msra.mxu1 %v1708_v23  ;;  %v1703_v8 = vmul.f32 %v5539_v51, %v5539_v51  ;;  %v1702_v23 = vmul.f32 %v5528_v11, %v5528_v11  ;;  %v382_v11 = vld [vmem:[%s8305_s1 + $0x378] sm:$0xff] }
 0x1ae   : > { %8856 = vst [vmem:[#allocation100_spill] sm:$0xff] %v5670_v26  ;;  %1963 = vmatprep.subr.mxu1 %v1707_v49  ;;  %1455 = vmatprep.mubr.f32.mxu0 %v8819_v54 }
 0x1af   : > { %v5681_v14 = vpop.f32.mrf.mxu0  ;;  %1964 = vmatpush1.msra.mxu1 %v1706_v50  ;;  %v1700_v50 = vmul.f32 %v5511_v40, %v5511_v40  ;;  %v1697_v40 = vmul.f32 %v5488_v45, %v5488_v45 }
 0x1b0   : > { %8857 = vst [vmem:[#allocation101_spill] sm:$0xff] %v5681_v14  ;;  %1965 = vmatprep.subr.mxu1 %v1705_v37  ;;  %v372_v37 = vld [vmem:[%s8305_s1 + $0x328] sm:$0xff] }
 0x1b1   : > { %v5687_v49 = vpop.f32.mrf.mxu0  ;;  %4227 = vmatmul.mubr.msk.f32.gmra.mxu0 %vm399_vm1, %v371_v59  ;;  %1966 = vmatpush1.msra.mxu1 %v1704_v41  ;;  %v1699_v59 = vmul.f32 %v5505_v56, %v5505_v56  ;;  %v1698_v41 = vmul.f32 %v5494_v32, %v5494_v32  ;;  %v381_v32 = vld [vmem:[%s8305_s1 + $0x370] sm:$0xff] }
 0x1b2   : > { %8858 = vst [vmem:[#allocation102_spill] sm:$0xff] %v5687_v49  ;;  %1967 = vmatprep.subr.mxu1 %v1703_v8  ;;  %1461 = vmatprep.mubr.f32.mxu0 %v8819_v54 }
 0x1b3   : > { %v5698_v51 = vpop.f32.mrf.mxu0  ;;  %1968 = vmatpush1.msra.mxu1 %v1702_v23  ;;  %v1696_v23 = vmul.f32 %v5477_v58, %v5477_v58  ;;  %v1693_v58 = vmul.f32 %v5454_v39, %v5454_v39 }
 0x1b4   : > { %8859 = vst [vmem:[#allocation103_spill] sm:$0xff] %v5698_v51  ;;  %1969 = vmatprep.subr.mxu1 %v1701_v47  ;;  %v373_v47 = vld [vmem:[%s8305_s1 + $0x330] sm:$0xff] }
 0x1b5   : > { %v5704_v8 = vpop.f32.mrf.mxu0  ;;  %4228 = vmatmul.mubr.msk.f32.gmra.mxu0 %vm399_vm1, %v372_v37  ;;  %1970 = vmatpush1.msra.mxu1 %v1700_v50  ;;  %v1695_v37 = vmul.f32 %v5471_v2, %v5471_v2  ;;  %v1694_v50 = vmul.f32 %v5460_v57, %v5460_v57  ;;  %v380_v57 = vld [vmem:[%s8305_s1 + $0x368] sm:$0xff] }
 0x1b6   : > { %8860 = vst [vmem:[#allocation104_spill] sm:$0xff] %v5704_v8  ;;  %1971 = vmatprep.subr.mxu1 %v1699_v59  ;;  %1467 = vmatprep.mubr.f32.mxu0 %v8819_v54 }
 0x1b7   : > { %v5715_v56 = vpop.f32.mrf.mxu0  ;;  %1972 = vmatpush1.msra.mxu1 %v1698_v41  ;;  %v1692_v41 = vmul.f32 %v5443_v55, %v5443_v55  ;;  %v1689_v55 = vmul.f32 %v5420_v63, %v5420_v63  ;;  %v379_v63 = vld [vmem:[%s8305_s1 + $0x360] sm:$0xff] }
 0x1b8   : > { %8861 = vst [vmem:[#allocation105_spill] sm:$0xff] %v5715_v56  ;;  %1973 = vmatprep.subr.mxu1 %v1697_v40  ;;  %v374_v40 = vld [vmem:[%s8305_s1 + $0x338] sm:$0xff] }
 0x1b9   : > { %v5721_v59 = vpop.f32.mrf.mxu0  ;;  %4229 = vmatmul.mubr.msk.f32.gmra.mxu0 %vm399_vm1, %v373_v47  ;;  %1974 = vmatpush1.msra.mxu1 %v1696_v23  ;;  %v1691_v47 = vmul.f32 %v5437_v44, %v5437_v44  ;;  %v1690_v23 = vmul.f32 %v5426_v0, %v5426_v0 }
 0x1ba   : > { %8862 = vst [vmem:[#allocation106_spill] sm:$0xff] %v5721_v59  ;;  %1975 = vmatprep.subr.mxu1 %v1695_v37  ;;  %1473 = vmatprep.mubr.f32.mxu0 %v8819_v54 }
 0x1bb   : > { %v5732_v2 = vpop.f32.mrf.mxu0  ;;  %1976 = vmatpush1.msra.mxu1 %v1694_v50  ;;  %v1688_v50 = vmul.f32 %v5409_v60, %v5409_v60 }
 0x1bc   : > { %8863 = vst [vmem:[#allocation107_spill] sm:$0xff] %v5732_v2  ;;  %1977 = vmatprep.subr.mxu1 %v1693_v58  ;;  %v375_v58 = vld [vmem:[%s8305_s1 + $0x340] sm:$0xff] }
 0x1bd   : > { %v5738_v37 = vpop.f32.mrf.mxu0  ;;  %4230 = vmatmul.mubr.msk.f32.gmra.mxu0 %vm399_vm1, %v374_v40  ;;  %1978 = vmatpush1.msra.mxu1 %v1692_v41  ;;  %v376_v40 = vld [vmem:[%s8305_s1 + $0x348] sm:$0xff] }
 0x1be   : > { %8864 = vst [vmem:[#allocation108_spill] sm:$0xff] %v5738_v37  ;;  %1979 = vmatprep.subr.mxu1 %v1691_v47  ;;  %1479 = vmatprep.mubr.f32.mxu0 %v8819_v54 }
 0x1bf   : > { %v5749_v44 = vpop.f32.mrf.mxu0  ;;  %1980 = vmatpush1.msra.mxu1 %v1690_v23 }
 0x1c0   : > { %8865 = vst [vmem:[#allocation109_spill] sm:$0xff] %v5749_v44  ;;  %1981 = vmatprep.subr.mxu1 %v1689_v55  ;;  %v377_v55 = vld [vmem:[%s8305_s1 + $0x350] sm:$0xff] }
 0x1c1   : > { %v5751_v0 = vpop.f32.mrf.mxu0  ;;  %4231 = vmatmul.mubr.msk.f32.gmra.mxu0 %vm399_vm1, %v375_v58  ;;  %1982 = vmatpush1.msra.mxu1 %v1688_v50  ;;  %v378_v50 = vld [vmem:[%s8305_s1 + $0x358] sm:$0xff] }
 0x1c2   : > { %8866 = vst [vmem:[#allocation110_spill] sm:$0xff] %v5751_v0  ;;  %1485 = vmatprep.mubr.f32.mxu0 %v8819_v54 }
 0x1c3   : > { %v5758_v41 = vpop.f32.mrf.mxu0 }
 0x1c4   : > { %8867 = vst [vmem:[#allocation111_spill] sm:$0xff] %v5758_v41 }
 0x1c5   : > { %v5760_v47 = vpop.f32.mrf.mxu0  ;;  %4232 = vmatmul.mubr.msk.f32.gmra.mxu0 %vm399_vm1, %v376_v40 }
 0x1c6   : > { %8868 = vst [vmem:[#allocation112_spill] sm:$0xff] %v5760_v47  ;;  %1491 = vmatprep.mubr.f32.mxu0 %v8819_v54 }
 0x1c7   : > { %v5767_v23 = vpop.f32.mrf.mxu0 }
 0x1c8   : > { %8869 = vst [vmem:[#allocation113_spill] sm:$0xff] %v5767_v23 }
 0x1c9   : > { %v5769_v58 = vpop.f32.mrf.mxu0  ;;  %4233 = vmatmul.mubr.msk.f32.gmra.mxu0 %vm399_vm1, %v377_v55 }
 0x1ca   : > { %8870 = vst [vmem:[#allocation114_spill] sm:$0xff] %v5769_v58  ;;  %1497 = vmatprep.mubr.f32.mxu0 %v8819_v54 }
 0x1cb   : > { %v5776_v60 = vpop.f32.mrf.mxu0 }
 0x1cc   : > { %8871 = vst [vmem:[#allocation115_spill] sm:$0xff] %v5776_v60 }
 0x1cd   : > { %v5778_v40 = vpop.f32.mrf.mxu0  ;;  %4234 = vmatmul.mubr.msk.f32.gmra.mxu0 %vm399_vm1, %v378_v50 }
 0x1ce   : > { %8872 = vst [vmem:[#allocation116_spill] sm:$0xff] %v5778_v40  ;;  %1503 = vmatprep.mubr.f32.mxu0 %v8819_v54 }
 0x1cf   : > { %v5785_v39 = vpop.f32.mrf.mxu0 }
 0x1d0   : > { %8873 = vst [vmem:[#allocation117_spill] sm:$0xff] %v5785_v39 }
 0x1d1   : > { %v5787_v55 = vpop.f32.mrf.mxu0  ;;  %4235 = vmatmul.mubr.msk.f32.gmra.mxu0 %vm399_vm1, %v379_v63 }
 0x1d2   : > { %8874 = vst [vmem:[#allocation118_spill] sm:$0xff] %v5787_v55  ;;  %1509 = vmatprep.mubr.f32.mxu0 %v8819_v54 }
 0x1d3   : > { %v5794_v45 = vpop.f32.mrf.mxu0 }
 0x1d4   : > { %8875 = vst [vmem:[#allocation119_spill] sm:$0xff] %v5794_v45 }
 0x1d5   : > { %v5796_v50 = vpop.f32.mrf.mxu0  ;;  %4236 = vmatmul.mubr.msk.f32.gmra.mxu0 %vm399_vm1, %v380_v57 }
 0x1d6   : > { %8876 = vst [vmem:[#allocation120_spill] sm:$0xff] %v5796_v50  ;;  %1515 = vmatprep.mubr.f32.mxu0 %v8819_v54 }
 0x1d7   : > { %v5803_v29 = vpop.f32.mrf.mxu0 }
 0x1d8   : > { %8877 = vst [vmem:[#allocation121_spill] sm:$0xff] %v5803_v29 }
 0x1d9   : > { %v5805_v63 = vpop.f32.mrf.mxu0  ;;  %4237 = vmatmul.mubr.msk.f32.gmra.mxu0 %vm399_vm1, %v381_v32 }
 0x1da   : > { %8878 = vst [vmem:[#allocation122_spill] sm:$0xff] %v5805_v63  ;;  %1521 = vmatprep.mubr.f32.mxu0 %v8819_v54 }
 0x1db   : > { %v5812_v46 = vpop.f32.mrf.mxu0 }
 0x1dc   : > { %8879 = vst [vmem:[#allocation123_spill] sm:$0xff] %v5812_v46 }
 0x1dd   : > { %v5814_v57 = vpop.f32.mrf.mxu0  ;;  %4238 = vmatmul.mubr.msk.f32.gmra.mxu0 %vm399_vm1, %v382_v11  ;;  %v1749_v11 = vmul.f32 %v5812_v46, %v5812_v46 }
 0x1de   : > { %8880 = vst [vmem:[#allocation124_spill] sm:$0xff] %v5814_v57  ;;  %1527 = vmatprep.mubr.f32.mxu0 %v8819_v54  ;;  %v1750_v5 = vmul.f32 %v5814_v57, %v5814_v57 }
 0x1df   : > { %v5821_v43 = vpop.f32.mrf.mxu0 }
 0x1e0   : > { %8881 = vst [vmem:[#allocation125_spill] sm:$0xff] %v5821_v43  ;;  %v1751_v32 = vmul.f32 %v5821_v43, %v5821_v43  ;;  %v1748_v43 = vmul.f32 %v5805_v63, %v5805_v63  ;;  %v1745_v63 = vmul.f32 %v5794_v45, %v5794_v45 }
 0x1e1   : > { %v5827_v48 = vpop.f32.mrf.mxu0  ;;  %4239 = vmatmul.mubr.msk.f32.gmra.mxu0 %vm399_vm1, %v383_v38  ;;  %v1747_v38 = vmul.f32 %v5803_v29, %v5803_v29 }
 0x1e2   : > { %8882 = vst [vmem:[#allocation126_spill] sm:$0xff] %v5827_v48  ;;  %1983 = vmatprep.subr.mxu1 %v1751_v32  ;;  %1533 = vmatprep.mubr.f32.mxu0 %v8819_v54  ;;  %v1746_v32 = vmul.f32 %v5796_v50, %v5796_v50 }
 0x1e3   : > { %v5838_v53 = vpop.f32.mrf.mxu0  ;;  %1984 = vmatpush2.msra.mxu1 %v1750_v5  ;;  %v385_v5 = vld [vmem:[%s8305_s1 + $0x390] sm:$0xff] }
 0x1e4   : > { %8883 = vst [vmem:[#allocation127_spill] sm:$0xff] %v5838_v53  ;;  %1985 = vmatprep.subr.mxu1 %v1749_v11  ;;  %v1744_v11 = vmul.f32 %v5787_v55, %v5787_v55  ;;  %v1741_v55 = vmul.f32 %v5776_v60, %v5776_v60 }
 0x1e5   : > { %v5844_v57 = vpop.f32.mrf.mxu0  ;;  %4240 = vmatmul.mubr.msk.f32.gmra.mxu0 %vm399_vm1, %v384_v52  ;;  %1986 = vmatpush2.msra.mxu1 %v1748_v43  ;;  %v1743_v43 = vmul.f32 %v5785_v39, %v5785_v39  ;;  %v1742_v52 = vmul.f32 %v5778_v40, %v5778_v40 }
 0x1e6   : > { %8884 = vst [vmem:[#allocation128_spill] sm:$0xff] %v5844_v57  ;;  %1987 = vmatprep.subr.mxu1 %v1747_v38  ;;  %1539 = vmatprep.mubr.f32.mxu0 %v8819_v54 }
 0x1e7   : > { %v5855_v29 = vpop.f32.mrf.mxu0  ;;  %1988 = vmatpush2.msra.mxu1 %v1746_v32  ;;  %v1740_v32 = vmul.f32 %v5769_v58, %v5769_v58  ;;  %v1737_v58 = vmul.f32 %v5758_v41, %v5758_v41 }
 0x1e8   : > { %8885 = vst [vmem:[#allocation129_spill] sm:$0xff] %v5855_v29  ;;  %1989 = vmatprep.subr.mxu1 %v1745_v63  ;;  %v386_v63 = vld [vmem:[%s8305_s1 + $0x398] sm:$0xff] }
 0x1e9   : > { %v5861_v38 = vpop.f32.mrf.mxu0  ;;  %4241 = vmatmul.mubr.msk.f32.gmra.mxu0 %vm399_vm1, %v385_v5  ;;  %1990 = vmatpush2.msra.mxu1 %v1744_v11  ;;  %v1739_v5 = vmul.f32 %v5767_v23, %v5767_v23  ;;  %v1738_v11 = vmul.f32 %v5760_v47, %v5760_v47 }
 0x1ea   : > { %8886 = vst [vmem:[#allocation130_spill] sm:$0xff] %v5861_v38  ;;  %1991 = vmatprep.subr.mxu1 %v1743_v43  ;;  %1545 = vmatprep.mubr.f32.mxu0 %v8819_v54 }
 0x1eb   : > { %v5872_v39 = vpop.f32.mrf.mxu0  ;;  %1992 = vmatpush2.msra.mxu1 %v1742_v52  ;;  %v1736_v52 = vmul.f32 %v5751_v0, %v5751_v0  ;;  %v1733_v0 = vmul.f32 %v5732_v2, %v5732_v2 }
 0x1ec   : > { %8887 = vst [vmem:[#allocation131_spill] sm:$0xff] %v5872_v39  ;;  %1993 = vmatprep.subr.mxu1 %v1741_v55  ;;  %v387_v55 = vld [vmem:[%s8305_s1 + $0x3a0] sm:$0xff] }
 0x1ed   : > { %v5878_v43 = vpop.f32.mrf.mxu0  ;;  %4242 = vmatmul.mubr.msk.f32.gmra.mxu0 %vm399_vm1, %v386_v63  ;;  %1994 = vmatpush2.msra.mxu1 %v1740_v32  ;;  %v1735_v63 = vmul.f32 %v5749_v44, %v5749_v44  ;;  %v1734_v32 = vmul.f32 %v5738_v37, %v5738_v37  ;;  %v398_v37 = vld [vmem:[%s8305_s1 + $0x3f8] sm:$0xff] }
 0x1ee   : > { %8888 = vst [vmem:[#allocation132_spill] sm:$0xff] %v5878_v43  ;;  %1995 = vmatprep.subr.mxu1 %v1739_v5  ;;  %1551 = vmatprep.mubr.f32.mxu0 %v8819_v54 }
 0x1ef   : > { %v5889_v23 = vpop.f32.mrf.mxu0  ;;  %1996 = vmatpush2.msra.mxu1 %v1738_v11  ;;  %v1732_v11 = vmul.f32 %v5721_v59, %v5721_v59  ;;  %v1729_v59 = vmul.f32 %v5698_v51, %v5698_v51 }
 0x1f0   : > { %8889 = vst [vmem:[#allocation133_spill] sm:$0xff] %v5889_v23  ;;  %1997 = vmatprep.subr.mxu1 %v1737_v58  ;;  %v388_v58 = vld [vmem:[%s8305_s1 + $0x3a8] sm:$0xff] }
 0x1f1   : > { %v5895_v5 = vpop.f32.mrf.mxu0  ;;  %4243 = vmatmul.mubr.msk.f32.gmra.mxu0 %vm399_vm1, %v387_v55  ;;  %1998 = vmatpush2.msra.mxu1 %v1736_v52  ;;  %v1731_v55 = vmul.f32 %v5715_v56, %v5715_v56  ;;  %v1730_v52 = vmul.f32 %v5704_v8, %v5704_v8  ;;  %v397_v8 = vld [vmem:[%s8305_s1 + $0x3f0] sm:$0xff] }
 0x1f2   : > { %8890 = vst [vmem:[#allocation134_spill] sm:$0xff] %v5895_v5  ;;  %1999 = vmatprep.subr.mxu1 %v1735_v63  ;;  %1557 = vmatprep.mubr.f32.mxu0 %v8819_v54 }
 0x1f3   : > { %v5906_v44 = vpop.f32.mrf.mxu0  ;;  %2000 = vmatpush2.msra.mxu1 %v1734_v32  ;;  %v1728_v32 = vmul.f32 %v5687_v49, %v5687_v49  ;;  %v1725_v49 = vmul.f32 %v5664_v17, %v5664_v17 }
 0x1f4   : > { %8891 = vst [vmem:[#allocation135_spill] sm:$0xff] %v5906_v44  ;;  %2001 = vmatprep.subr.mxu1 %v1733_v0  ;;  %v389_v0 = vld [vmem:[%s8305_s1 + $0x3b0] sm:$0xff] }
 0x1f5   : > { %v5912_v63 = vpop.f32.mrf.mxu0  ;;  %4244 = vmatmul.mubr.msk.f32.gmra.mxu0 %vm399_vm1, %v388_v58  ;;  %2002 = vmatpush2.msra.mxu1 %v1732_v11  ;;  %v1727_v58 = vmul.f32 %v5681_v14, %v5681_v14  ;;  %v1726_v11 = vmul.f32 %v5670_v26, %v5670_v26  ;;  %v396_v26 = vld [vmem:[%s8305_s1 + $0x3e8] sm:$0xff] }
 0x1f6   : > { %8892 = vst [vmem:[#allocation136_spill] sm:$0xff] %v5912_v63  ;;  %2003 = vmatprep.subr.mxu1 %v1731_v55  ;;  %1563 = vmatprep.mubr.f32.mxu0 %v8819_v54 }
 0x1f7   : > { %v5923_v56 = vpop.f32.mrf.mxu0  ;;  %2004 = vmatpush2.msra.mxu1 %v1730_v52  ;;  %v1724_v52 = vmul.f32 %v5653_v20, %v5653_v20  ;;  %v1721_v20 = vmul.f32 %v5630_v1, %v5630_v1  ;;  %v395_v1 = vld [vmem:[%s8305_s1 + $0x3e0] sm:$0xff] }
 0x1f8   : > { %8893 = vst [vmem:[#allocation137_spill] sm:$0xff] %v5923_v56  ;;  %2005 = vmatprep.subr.mxu1 %v1729_v59  ;;  %v390_v59 = vld [vmem:[%s8305_s1 + $0x3b8] sm:$0xff] }
 0x1f9   : > { %v5929_v55 = vpop.f32.mrf.mxu0  ;;  %4245 = vmatmul.mubr.msk.f32.gmra.mxu0 %vm399_vm1, %v389_v0  ;;  %2006 = vmatpush2.msra.mxu1 %v1728_v32  ;;  %v1723_v0 = vmul.f32 %v5647_v35, %v5647_v35  ;;  %v1722_v32 = vmul.f32 %v5636_v42, %v5636_v42 }
 0x1fa   : > { %8894 = vst [vmem:[#allocation138_spill] sm:$0xff] %v5929_v55  ;;  %2007 = vmatprep.subr.mxu1 %v1727_v58  ;;  %1569 = vmatprep.mubr.f32.mxu0 %v8819_v54 }
 0x1fb   : > { %v5940_v14 = vpop.f32.mrf.mxu0  ;;  %2008 = vmatpush2.msra.mxu1 %v1726_v11  ;;  %v1720_v11 = vmul.f32 %v5619_v62, %v5619_v62 }
 0x1fc   : > { %8895 = vst [vmem:[#allocation139_spill] sm:$0xff] %v5940_v14  ;;  %2009 = vmatprep.subr.mxu1 %v1725_v49  ;;  %v391_v49 = vld [vmem:[%s8305_s1 + $0x3c0] sm:$0xff] }
 0x1fd   : > { %v5946_v58 = vpop.f32.mrf.mxu0  ;;  %4246 = vmatmul.mubr.msk.f32.gmra.mxu0 %vm399_vm1, %v390_v59  ;;  %2010 = vmatpush2.msra.mxu1 %v1724_v52  ;;  %v392_v59 = vld [vmem:[%s8305_s1 + $0x3c8] sm:$0xff] }
 0x1fe   : > { %8896 = vst [vmem:[#allocation140_spill] sm:$0xff] %v5946_v58  ;;  %2011 = vmatprep.subr.mxu1 %v1723_v0  ;;  %1575 = vmatprep.mubr.f32.mxu0 %v8819_v54 }
 0x1ff   : > { %v5957_v35 = vpop.f32.mrf.mxu0  ;;  %2012 = vmatpush2.msra.mxu1 %v1722_v32 }
 0x200   : > { %8897 = vst [vmem:[#allocation141_spill] sm:$0xff] %v5957_v35  ;;  %2013 = vmatprep.subr.mxu1 %v1721_v20  ;;  %v393_v20 = vld [vmem:[%s8305_s1 + $0x3d0] sm:$0xff] }
 0x201   : > { %v5959_v42 = vpop.f32.mrf.mxu0  ;;  %4247 = vmatmul.mubr.msk.f32.gmra.mxu0 %vm399_vm1, %v391_v49  ;;  %2014 = vmatpush2.msra.mxu1 %v1720_v11  ;;  %v394_v11 = vld [vmem:[%s8305_s1 + $0x3d8] sm:$0xff] }
 0x202   : > { %8898 = vst [vmem:[#allocation142_spill] sm:$0xff] %v5959_v42  ;;  %1581 = vmatprep.mubr.f32.mxu0 %v8819_v54  ;;  %2016 = vmatmul.mubr.f32.vlgmr.msra.gmra.mxu1 %v8834_v61 }
 0x203   : > { %v5967_v52 = vpop.f32.mrf.mxu0  ;;  %2086 = vmatprep.mubr.f32.mxu1 %v8834_v61 }
 0x204   : > { %8899 = vst [vmem:[#allocation143_spill] sm:$0xff] %v5967_v52 }
 0x205   : > { %v5970_v0 = vpop.f32.mrf.mxu0  ;;  %4248 = vmatmul.mubr.msk.f32.gmra.mxu0 %vm399_vm1, %v392_v59 }
 0x206   : > { %8900 = vst [vmem:[#allocation144_spill] sm:$0xff] %v5970_v0  ;;  %1587 = vmatprep.mubr.f32.mxu0 %v8819_v54 }
 0x207   : > { %v5977_v32 = vpop.f32.mrf.mxu0 }
 0x208   : > { %8901 = vst [vmem:[#allocation145_spill] sm:$0xff] %v5977_v32 }
 0x209   : > { %v5979_v49 = vpop.f32.mrf.mxu0  ;;  %4249 = vmatmul.mubr.msk.f32.gmra.mxu0 %vm399_vm1, %v393_v20 }
 0x20a   : > { %8902 = vst [vmem:[#allocation146_spill] sm:$0xff] %v5979_v49  ;;  %1593 = vmatprep.mubr.f32.mxu0 %v8819_v54 }
 0x20b   : > { %v5986_v62 = vpop.f32.mrf.mxu0 }
 0x20c   : > { %8903 = vst [vmem:[#allocation147_spill] sm:$0xff] %v5986_v62 }
 0x20d   : > { %v5988_v59 = vpop.f32.mrf.mxu0  ;;  %4250 = vmatmul.mubr.msk.f32.gmra.mxu0 %vm399_vm1, %v394_v11 }
 0x20e   : > { %8904 = vst [vmem:[#allocation148_spill] sm:$0xff] %v5988_v59  ;;  %1599 = vmatprep.mubr.f32.mxu0 %v8819_v54 }
 0x20f   : > { %v5995_v17 = vpop.f32.mrf.mxu0 }
 0x210   : > { %8905 = vst [vmem:[#allocation149_spill] sm:$0xff] %v5995_v17 }
 0x211   : > { %v5997_v20 = vpop.f32.mrf.mxu0  ;;  %4251 = vmatmul.mubr.msk.f32.gmra.mxu0 %vm399_vm1, %v395_v1 }
 0x212   : > { %8906 = vst [vmem:[#allocation150_spill] sm:$0xff] %v5997_v20  ;;  %1605 = vmatprep.mubr.f32.mxu0 %v8819_v54 }
 0x213   : > { %v6004_v51 = vpop.f32.mrf.mxu0 }
 0x214   : > { %8907 = vst [vmem:[#allocation151_spill] sm:$0xff] %v6004_v51 }
 0x215   : > { %v6006_v11 = vpop.f32.mrf.mxu0  ;;  %4252 = vmatmul.mubr.msk.f32.gmra.mxu0 %vm399_vm1, %v396_v26 }
 0x216   : > { %8908 = vst [vmem:[#allocation152_spill] sm:$0xff] %v6006_v11  ;;  %1611 = vmatprep.mubr.f32.mxu0 %v8819_v54 }
 0x217   : > { %v6013_v2 = vpop.f32.mrf.mxu0 }
 0x218   : > { %8909 = vst [vmem:[#allocation153_spill] sm:$0xff] %v6013_v2 }
 0x219   : > { %v6015_v1 = vpop.f32.mrf.mxu0  ;;  %4253 = vmatmul.mubr.msk.f32.gmra.mxu0 %vm399_vm1, %v397_v8 }
 0x21a   : > { %8910 = vst [vmem:[#allocation154_spill] sm:$0xff] %v6015_v1  ;;  %1617 = vmatprep.mubr.f32.mxu0 %v8819_v54  ;;  %v1780_v45 = vmul.f32 %v6015_v1, %v6015_v1 }
 0x21b   : > { %v6022_v41 = vpop.f32.mrf.mxu0 }
 0x21c   : > { %8911 = vst [vmem:[#allocation155_spill] sm:$0xff] %v6022_v41  ;;  %v1781_v54 = vmul.f32 %v6022_v41, %v6022_v41  ;;  %v1777_v41 = vmul.f32 %v6004_v51, %v6004_v51 }
 0x21d   : > { %v6024_v26 = vpop.f32.mrf.mxu0  ;;  %4254 = vmatmul.mubr.msk.f32.gmra.mxu0 %vm399_vm1, %v398_v37  ;;  %v1779_v37 = vmul.f32 %v6013_v2, %v6013_v2 }
 0x21e   : > { %8912 = vst [vmem:[#allocation156_spill] sm:$0xff] %v6024_v26  ;;  %v1782_v8 = vmul.f32 %v6024_v26, %v6024_v26 }
 0x21f   : > { %v6027_v47 = vpop.f32.mrf.mxu0 }
 0x220   : > { %8913 = vst [vmem:[#allocation157_spill] sm:$0xff] %v6027_v47  ;;  %v1783_v60 = vmul.f32 %v6027_v47, %v6027_v47  ;;  %v1778_v47 = vmul.f32 %v6006_v11, %v6006_v11 }
 0x221   : > { %v6033_v40 = vpop.f32.mrf.mxu0 }
 0x222   : > { %8914 = vst [vmem:[#allocation158_spill] sm:$0xff] %v6033_v40  ;;  %2022 = vmatprep.subr.mxu1 %v1783_v60  ;;  %v1776_v60 = vmul.f32 %v5997_v20, %v5997_v20 }
 0x223   : > { %v6039_v50 = vpop.f32.mrf.mxu0  ;;  %2023 = vmatpush1.msra.mxu1 %v1782_v8  ;;  %v1775_v8 = vmul.f32 %v5995_v17, %v5995_v17 }
 0x224   : > { %8915 = vst [vmem:[#allocation159_spill] sm:$0xff] %v6039_v50  ;;  %2024 = vmatprep.subr.mxu1 %v1781_v54  ;;  %v1774_v54 = vmul.f32 %v5988_v59, %v5988_v59 }
 0x225   : > { %v6045_v26 = vpop.f32.mrf.mxu0  ;;  %2025 = vmatpush1.msra.mxu1 %v1780_v45  ;;  %v1773_v45 = vmul.f32 %v5986_v62, %v5986_v62 }
 0x226   : > { %8916 = vst [vmem:[#allocation160_spill] sm:$0xff] %v6045_v26  ;;  %2026 = vmatprep.subr.mxu1 %v1779_v37  ;;  %v1772_v37 = vmul.f32 %v5979_v49, %v5979_v49 }
 0x227   : > { %v6051_v1 = vpop.f32.mrf.mxu0  ;;  %2027 = vmatpush1.msra.mxu1 %v1778_v47  ;;  %v1771_v47 = vmul.f32 %v5977_v32, %v5977_v32 }
 0x228   : > { %8917 = vst [vmem:[#allocation161_spill] sm:$0xff] %v6051_v1  ;;  %2028 = vmatprep.subr.mxu1 %v1777_v41  ;;  %v1770_v41 = vmul.f32 %v5970_v0, %v5970_v0 }
 0x229   : > { %v6057_v11 = vpop.f32.mrf.mxu0  ;;  %2029 = vmatpush1.msra.mxu1 %v1776_v60  ;;  %v1769_v60 = vmul.f32 %v5967_v52, %v5967_v52 }
 0x22a   : > { %8918 = vst [vmem:[#allocation162_spill] sm:$0xff] %v6057_v11  ;;  %2030 = vmatprep.subr.mxu1 %v1775_v8  ;;  %v1768_v8 = vmul.f32 %v5959_v42, %v5959_v42 }
 0x22b   : > { %v6063_v20 = vpop.f32.mrf.mxu0  ;;  %2031 = vmatpush1.msra.mxu1 %v1774_v54  ;;  %v1767_v54 = vmul.f32 %v5957_v35, %v5957_v35 }
 0x22c   : > { %8919 = vst [vmem:[#allocation163_spill] sm:$0xff] %v6063_v20  ;;  %2032 = vmatprep.subr.mxu1 %v1773_v45  ;;  %v1766_v45 = vmul.f32 %v5946_v58, %v5946_v58 }
 0x22d   : > { %v6069_v59 = vpop.f32.mrf.mxu0  ;;  %2033 = vmatpush1.msra.mxu1 %v1772_v37  ;;  %v1765_v37 = vmul.f32 %v5940_v14, %v5940_v14 }
 0x22e   : > { %8920 = vst [vmem:[#allocation164_spill] sm:$0xff] %v6069_v59  ;;  %2034 = vmatprep.subr.mxu1 %v1771_v47  ;;  %v1764_v47 = vmul.f32 %v5929_v55, %v5929_v55 }
 0x22f   : > { %v6075_v49 = vpop.f32.mrf.mxu0  ;;  %2035 = vmatpush1.msra.mxu1 %v1770_v41  ;;  %v1763_v41 = vmul.f32 %v5923_v56, %v5923_v56 }
 0x230   : > { %8921 = vst [vmem:[#allocation165_spill] sm:$0xff] %v6075_v49  ;;  %2036 = vmatprep.subr.mxu1 %v1769_v60  ;;  %v1762_v60 = vmul.f32 %v5912_v63, %v5912_v63 }
 0x231   : > { %v6081_v0 = vpop.f32.mrf.mxu0  ;;  %2037 = vmatpush1.msra.mxu1 %v1768_v8  ;;  %v1761_v8 = vmul.f32 %v5906_v44, %v5906_v44 }
 0x232   : > { %8922 = vst [vmem:[#allocation166_spill] sm:$0xff] %v6081_v0  ;;  %2038 = vmatprep.subr.mxu1 %v1767_v54  ;;  %v1760_v54 = vmul.f32 %v5895_v5, %v5895_v5 }
 0x233   : > { %v6087_v42 = vpop.f32.mrf.mxu0  ;;  %2039 = vmatpush1.msra.mxu1 %v1766_v45  ;;  %v1759_v45 = vmul.f32 %v5889_v23, %v5889_v23 }
 0x234   : > { %8923 = vst [vmem:[#allocation167_spill] sm:$0xff] %v6087_v42  ;;  %2040 = vmatprep.subr.mxu1 %v1765_v37  ;;  %v1758_v37 = vmul.f32 %v5878_v43, %v5878_v43 }
 0x235   : > { %v6093_v58 = vpop.f32.mrf.mxu0  ;;  %2041 = vmatpush1.msra.mxu1 %v1764_v47  ;;  %v1757_v47 = vmul.f32 %v5872_v39, %v5872_v39 }
 0x236   : > { %8924 = vst [vmem:[#allocation168_spill] sm:$0xff] %v6093_v58  ;;  %2042 = vmatprep.subr.mxu1 %v1763_v41  ;;  %v1756_v41 = vmul.f32 %v5861_v38, %v5861_v38 }
 0x237   : > { %v6099_v55 = vpop.f32.mrf.mxu0  ;;  %2043 = vmatpush1.msra.mxu1 %v1762_v60  ;;  %v1755_v60 = vmul.f32 %v5855_v29, %v5855_v29 }
 0x238   : > { %8925 = vst [vmem:[#allocation169_spill] sm:$0xff] %v6099_v55  ;;  %2044 = vmatprep.subr.mxu1 %v1761_v8  ;;  %v1754_v8 = vmul.f32 %v5844_v57, %v5844_v57 }
 0x239   : > { %v6105_v63 = vpop.f32.mrf.mxu0  ;;  %2045 = vmatpush1.msra.mxu1 %v1760_v54  ;;  %v1753_v54 = vmul.f32 %v5838_v53, %v5838_v53 }
 0x23a   : > { %8926 = vst [vmem:[#allocation170_spill] sm:$0xff] %v6105_v63  ;;  %2046 = vmatprep.subr.mxu1 %v1759_v45  ;;  %v1752_v45 = vmul.f32 %v5827_v48, %v5827_v48 }
 0x23b   : > { %v6111_v5 = vpop.f32.mrf.mxu0  ;;  %2047 = vmatpush1.msra.mxu1 %v1758_v37 }
 0x23c   : > { %8927 = vst [vmem:[#allocation171_spill] sm:$0xff] %v6111_v5  ;;  %2048 = vmatprep.subr.mxu1 %v1757_v47 }
 0x23d   : > { %v6117_v43 = vpop.f32.mrf.mxu0  ;;  %2049 = vmatpush1.msra.mxu1 %v1756_v41 }
 0x23e   : > { %8928 = vst [vmem:[#allocation172_spill] sm:$0xff] %v6117_v43  ;;  %2050 = vmatprep.subr.mxu1 %v1755_v60 }
 0x23f   : > { %v6123_v38 = vpop.f32.mrf.mxu0  ;;  %2051 = vmatpush1.msra.mxu1 %v1754_v8 }
 0x240   : > { %8929 = vst [vmem:[#allocation173_spill] sm:$0xff] %v6123_v38  ;;  %2052 = vmatprep.subr.mxu1 %v1753_v54 }
 0x241   : > { %v6125_v37 = vpop.f32.mrf.mxu0  ;;  %2053 = vmatpush1.msra.mxu1 %v1752_v45 }
 0x242   : > { %8930 = vst [vmem:[#allocation174_spill] sm:$0xff] %v6125_v37 }
 0x243   : > { %v6127_v47 = vpop.f32.mrf.mxu0 }
 0x244   : > { %8931 = vst [vmem:[#allocation175_spill] sm:$0xff] %v6127_v47 }
 0x245   : > { %v6129_v57 = vpop.f32.mrf.mxu0 }
 0x246   : > { %8932 = vst [vmem:[#allocation176_spill] sm:$0xff] %v6129_v57 }
 0x247   : > { %v6131_v29 = vpop.f32.mrf.mxu0 }
 0x248   : > { %8933 = vst [vmem:[#allocation177_spill] sm:$0xff] %v6131_v29 }
 0x249   : > { %v6133_v41 = vpop.f32.mrf.mxu0 }
 0x24a   : > { %8934 = vst [vmem:[#allocation178_spill] sm:$0xff] %v6133_v41 }
 0x24b   : > { %v6135_v60 = vpop.f32.mrf.mxu0 }
 0x24c   : > { %8935 = vst [vmem:[#allocation179_spill] sm:$0xff] %v6135_v60 }
 0x24d   : > { %v6137_v53 = vpop.f32.mrf.mxu0 }
 0x24e   : > { %8936 = vst [vmem:[#allocation180_spill] sm:$0xff] %v6137_v53 }
 0x24f   : > { %v6139_v48 = vpop.f32.mrf.mxu0 }
 0x250   : > { %8937 = vst [vmem:[#allocation181_spill] sm:$0xff] %v6139_v48 }
 0x251   : > { %v6141_v39 = vpop.f32.mrf.mxu0 }
 0x252   : > { %8938 = vst [vmem:[#allocation182_spill] sm:$0xff] %v6141_v39 }
 0x253   : > { %v6143_v8 = vpop.f32.mrf.mxu0 }
 0x254   : > { %8939 = vst [vmem:[#allocation183_spill] sm:$0xff] %v6143_v8 }
 0x255   : > { %v6145_v54 = vpop.f32.mrf.mxu0 }
 0x256   : > { %8940 = vst [vmem:[#allocation184_spill] sm:$0xff] %v6145_v54 }
 0x257   : > { %v6147_v45 = vpop.f32.mrf.mxu0 }
 0x258   : > { %8941 = vst [vmem:[#allocation185_spill] sm:$0xff] %v6147_v45  ;;  %v1811_v2 = vmul.f32 %v6147_v45, %v6147_v45 }
 0x259   : > { %v6149_v23 = vpop.f32.mrf.mxu0 }
 0x25a   : > { %8942 = vst [vmem:[#allocation186_spill] sm:$0xff] %v6149_v23  ;;  %v1812_v17 = vmul.f32 %v6149_v23, %v6149_v23 }
 0x25b   : > { %v6151_v44 = vpop.f32.mrf.mxu0 }
 0x25c   : > { %8943 = vst [vmem:[#allocation187_spill] sm:$0xff] %v6151_v44  ;;  %v1813_v62 = vmul.f32 %v6151_v44, %v6151_v44  ;;  %v1809_v44 = vmul.f32 %v6143_v8, %v6143_v8 }
 0x25d   : > { %v6153_v56 = vpop.f32.mrf.mxu0 }
 0x25e   : > { %8944 = vst [vmem:[#allocation188_spill] sm:$0xff] %v6153_v56  ;;  %v1814_v52 = vmul.f32 %v6153_v56, %v6153_v56 }
 0x25f   : > { %v6155_v14 = vpop.f32.mrf.mxu0 }
 0x260   : > { %8945 = vst [vmem:[#allocation189_spill] sm:$0xff] %v6155_v14  ;;  %v1815_v35 = vmul.f32 %v6155_v14, %v6155_v14  ;;  %v1810_v14 = vmul.f32 %v6145_v54, %v6145_v54 }
 0x261   : > { %v6161_v32 = vpop.f32.mrf.mxu0 }
 0x262   : > { %8946 = vst [vmem:[#allocation190_spill] sm:$0xff] %v6161_v32  ;;  %2054 = vmatprep.subr.mxu1 %v1815_v35  ;;  %v1808_v35 = vmul.f32 %v6141_v39, %v6141_v39 }
 0x263   : > { %v6167_v51 = vpop.f32.mrf.mxu0  ;;  %2055 = vmatpush2.msra.mxu1 %v1814_v52  ;;  %v1807_v52 = vmul.f32 %v6139_v48, %v6139_v48 }
 0x264   : > { %8947 = vst [vmem:[#allocation191_spill] sm:$0xff] %v6167_v51  ;;  %2056 = vmatprep.subr.mxu1 %v1813_v62  ;;  %v1806_v62 = vmul.f32 %v6137_v53, %v6137_v53 }
 0x265   : > { %v6173_v56 = vpop.f32.mrf.mxu0  ;;  %2057 = vmatpush2.msra.mxu1 %v1812_v17  ;;  %v1805_v17 = vmul.f32 %v6135_v60, %v6135_v60 }
 0x266   : > { %8948 = vst [vmem:[#allocation192_spill] sm:$0xff] %v6173_v56  ;;  %2058 = vmatprep.subr.mxu1 %v1811_v2  ;;  %v1804_v2 = vmul.f32 %v6133_v41, %v6133_v41 }
 0x267   : > { %v6179_v23 = vpop.f32.mrf.mxu0  ;;  %2059 = vmatpush2.msra.mxu1 %v1810_v14  ;;  %v1803_v14 = vmul.f32 %v6131_v29, %v6131_v29 }
 0x268   : > { %8949 = vst [vmem:[#allocation193_spill] sm:$0xff] %v6179_v23  ;;  %2060 = vmatprep.subr.mxu1 %v1809_v44  ;;  %v1802_v44 = vmul.f32 %v6129_v57, %v6129_v57 }
 0x269   : > { %v6185_v54 = vpop.f32.mrf.mxu0  ;;  %2061 = vmatpush2.msra.mxu1 %v1808_v35  ;;  %v1801_v35 = vmul.f32 %v6127_v47, %v6127_v47 }
 0x26a   : > { %8950 = vst [vmem:[#allocation194_spill] sm:$0xff] %v6185_v54  ;;  %2062 = vmatprep.subr.mxu1 %v1807_v52  ;;  %v1800_v52 = vmul.f32 %v6125_v37, %v6125_v37 }
 0x26b   : > { %v6191_v39 = vpop.f32.mrf.mxu0  ;;  %2063 = vmatpush2.msra.mxu1 %v1806_v62  ;;  %v1799_v62 = vmul.f32 %v6123_v38, %v6123_v38 }
 0x26c   : > { %8951 = vst [vmem:[#allocation195_spill] sm:$0xff] %v6191_v39  ;;  %2064 = vmatprep.subr.mxu1 %v1805_v17  ;;  %v1798_v17 = vmul.f32 %v6117_v43, %v6117_v43 }
 0x26d   : > { %v6197_v53 = vpop.f32.mrf.mxu0  ;;  %2065 = vmatpush2.msra.mxu1 %v1804_v2  ;;  %v1797_v2 = vmul.f32 %v6111_v5, %v6111_v5 }
 0x26e   : > { %8952 = vst [vmem:[#allocation196_spill] sm:$0xff] %v6197_v53  ;;  %2066 = vmatprep.subr.mxu1 %v1803_v14  ;;  %v1796_v14 = vmul.f32 %v6105_v63, %v6105_v63 }
 0x26f   : > { %v6203_v41 = vpop.f32.mrf.mxu0  ;;  %2067 = vmatpush2.msra.mxu1 %v1802_v44  ;;  %v1795_v44 = vmul.f32 %v6099_v55, %v6099_v55 }
 0x270   : > { %8953 = vst [vmem:[#allocation197_spill] sm:$0xff] %v6203_v41  ;;  %2068 = vmatprep.subr.mxu1 %v1801_v35  ;;  %v1794_v35 = vmul.f32 %v6093_v58, %v6093_v58 }
 0x271   : > { %v6209_v57 = vpop.f32.mrf.mxu0  ;;  %2069 = vmatpush2.msra.mxu1 %v1800_v52  ;;  %v1793_v52 = vmul.f32 %v6087_v42, %v6087_v42 }
 0x272   : > { %8954 = vst [vmem:[#allocation198_spill] sm:$0xff] %v6209_v57  ;;  %2070 = vmatprep.subr.mxu1 %v1799_v62  ;;  %v1792_v62 = vmul.f32 %v6081_v0, %v6081_v0 }
 0x273   : > { %v6215_v37 = vpop.f32.mrf.mxu0  ;;  %2071 = vmatpush2.msra.mxu1 %v1798_v17  ;;  %v1791_v17 = vmul.f32 %v6075_v49, %v6075_v49 }
 0x274   : > { %8955 = vst [vmem:[#allocation199_spill] sm:$0xff] %v6215_v37  ;;  %2072 = vmatprep.subr.mxu1 %v1797_v2  ;;  %v1790_v2 = vmul.f32 %v6069_v59, %v6069_v59 }
 0x275   : > { %v6221_v43 = vpop.f32.mrf.mxu0  ;;  %2073 = vmatpush2.msra.mxu1 %v1796_v14  ;;  %v1789_v14 = vmul.f32 %v6063_v20, %v6063_v20 }
 0x276   : > { %8956 = vst [vmem:[#allocation200_spill] sm:$0xff] %v6221_v43  ;;  %2074 = vmatprep.subr.mxu1 %v1795_v44  ;;  %v1788_v44 = vmul.f32 %v6057_v11, %v6057_v11 }
 0x277   : > { %v6227_v63 = vpop.f32.mrf.mxu0  ;;  %2075 = vmatpush2.msra.mxu1 %v1794_v35  ;;  %v1787_v35 = vmul.f32 %v6051_v1, %v6051_v1 }
 0x278   : > { %8957 = vst [vmem:[#allocation201_spill] sm:$0xff] %v6227_v63  ;;  %2076 = vmatprep.subr.mxu1 %v1793_v52  ;;  %v1786_v52 = vmul.f32 %v6045_v26, %v6045_v26 }
 0x279   : > { %v6233_v58 = vpop.f32.mrf.mxu0  ;;  %2077 = vmatpush2.msra.mxu1 %v1792_v62  ;;  %v1785_v62 = vmul.f32 %v6039_v50, %v6039_v50 }
 0x27a   : > { %8958 = vst [vmem:[#allocation202_spill] sm:$0xff] %v6233_v58  ;;  %2078 = vmatprep.subr.mxu1 %v1791_v17  ;;  %v1784_v17 = vmul.f32 %v6033_v40, %v6033_v40 }
 0x27b   : > { %v6239_v0 = vpop.f32.mrf.mxu0  ;;  %2079 = vmatpush2.msra.mxu1 %v1790_v2 }
 0x27c   : > { %8959 = vst [vmem:[#allocation203_spill] sm:$0xff] %v6239_v0  ;;  %2080 = vmatprep.subr.mxu1 %v1789_v14 }
 0x27d   : > { %v6245_v59 = vpop.f32.mrf.mxu0  ;;  %2081 = vmatpush2.msra.mxu1 %v1788_v44 }
 0x27e   : > { %8960 = vst [vmem:[#allocation204_spill] sm:$0xff] %v6245_v59  ;;  %2082 = vmatprep.subr.mxu1 %v1787_v35 }
 0x27f   : > { %v6251_v11 = vpop.f32.mrf.mxu0  ;;  %2083 = vmatpush2.msra.mxu1 %v1786_v52 }
 0x280   : > { %8961 = vst [vmem:[#allocation205_spill] sm:$0xff] %v6251_v11  ;;  %2084 = vmatprep.subr.mxu1 %v1785_v62 }
 0x281   : > { %v6253_v2 = vpop.f32.mrf.mxu0  ;;  %2085 = vmatpush2.msra.mxu1 %v1784_v17 }
 0x282   : > { %8962 = vst [vmem:[#allocation206_spill] sm:$0xff] %v6253_v2  ;;  %2087 = vmatmul.mubr.f32.vlgmr.msra.gmra.mxu1 %v8834_v61 }
 0x283   : > { %v6256_v14 = vpop.f32.mrf.mxu0  ;;  %2157 = vmatprep.mubr.f32.mxu1 %v8834_v61 }
 0x284   : > { %8963 = vst [vmem:[#allocation207_spill] sm:$0xff] %v6256_v14 }
 0x285   : > { %v6259_v44 = vpop.f32.mrf.mxu0 }
 0x286   : > { %8964 = vst [vmem:[#allocation208_spill] sm:$0xff] %v6259_v44 }
 0x287   : > { %v6261_v50 = vpop.f32.mrf.mxu0 }
 0x288   : > { %8965 = vst [vmem:[#allocation209_spill] sm:$0xff] %v6261_v50 }
 0x289   : > { %v6263_v35 = vpop.f32.mrf.mxu0 }
 0x28a   : > { %8966 = vst [vmem:[#allocation210_spill] sm:$0xff] %v6263_v35 }
 0x28b   : > { %v6265_v40 = vpop.f32.mrf.mxu0 }
 0x28c   : > { %8967 = vst [vmem:[#allocation211_spill] sm:$0xff] %v6265_v40 }
 0x28d   : > { %v6267_v26 = vpop.f32.mrf.mxu0 }
 0x28e   : > { %8968 = vst [vmem:[#allocation212_spill] sm:$0xff] %v6267_v26 }
 0x28f   : > { %v6269_v52 = vpop.f32.mrf.mxu0 }
 0x290   : > { %8969 = vst [vmem:[#allocation213_spill] sm:$0xff] %v6269_v52 }
 0x291   : > { %v6271_v62 = vpop.f32.mrf.mxu0 }
 0x292   : > { %8970 = vst [vmem:[#allocation214_spill] sm:$0xff] %v6271_v62 }
 0x293   : > { %v6273_v17 = vpop.f32.mrf.mxu0 }
 0x294   : > { %8971 = vst [vmem:[#allocation215_spill] sm:$0xff] %v6273_v17 }
 0x295   : > { %v6275_v1 = vpop.f32.mrf.mxu0 }
 0x296   : > { %8972 = vst [vmem:[#allocation216_spill] sm:$0xff] %v6275_v1 }
 0x297   : > { %v6277_v20 = vpop.f32.mrf.mxu0 }
 0x298   : > { %8973 = vst [vmem:[#allocation217_spill] sm:$0xff] %v6277_v20  ;;  %v1843_v45 = vmul.f32 %v6277_v20, %v6277_v20 }
 0x299   : > { %v6279_v49 = vpop.f32.mrf.mxu0 }
 0x29a   : > { %8974 = vst [vmem:[#allocation218_spill] sm:$0xff] %v6279_v49  ;;  %v1844_v48 = vmul.f32 %v6279_v49, %v6279_v49 }
 0x29b   : > { %v6281_v42 = vpop.f32.mrf.mxu0 }
 0x29c   : > { %8975 = vst [vmem:[#allocation219_spill] sm:$0xff] %v6281_v42  ;;  %v1845_v60 = vmul.f32 %v6281_v42, %v6281_v42  ;;  %v1841_v42 = vmul.f32 %v6273_v17, %v6273_v17 }
 0x29d   : > { %v6283_v55 = vpop.f32.mrf.mxu0 }
 0x29e   : > { %8976 = vst [vmem:[#allocation220_spill] sm:$0xff] %v6283_v55  ;;  %v1846_v47 = vmul.f32 %v6283_v55, %v6283_v55 }
 0x29f   : > { %v6285_v5 = vpop.f32.mrf.mxu0 }
 0x2a0   : > { %8977 = vst [vmem:[#allocation221_spill] sm:$0xff] %v6285_v5  ;;  %v1847_v38 = vmul.f32 %v6285_v5, %v6285_v5  ;;  %v1842_v5 = vmul.f32 %v6275_v1, %v6275_v1 }
 0x2a1   : > { %v6291_v29 = vpop.f32.mrf.mxu0 }
 0x2a2   : > { %2093 = vmatprep.subr.mxu1 %v1847_v38  ;;  %v1840_v38 = vmul.f32 %v6271_v62, %v6271_v62 }
 0x2a3   : > { %v6297_v8 = vpop.f32.mrf.mxu0  ;;  %2094 = vmatpush1.msra.mxu1 %v1846_v47  ;;  %v1839_v47 = vmul.f32 %v6269_v52, %v6269_v52 }
 0x2a4   : > { %8978 = vst [vmem:[#allocation222_spill] sm:$0xff] %v6297_v8  ;;  %2095 = vmatprep.subr.mxu1 %v1845_v60  ;;  %v1838_v60 = vmul.f32 %v6267_v26, %v6267_v26 }
 0x2a5   : > { %v6303_v55 = vpop.f32.mrf.mxu0  ;;  %2096 = vmatpush1.msra.mxu1 %v1844_v48  ;;  %v1837_v48 = vmul.f32 %v6265_v40, %v6265_v40 }
 0x2a6   : > { %2097 = vmatprep.subr.mxu1 %v1843_v45  ;;  %v1836_v45 = vmul.f32 %v6263_v35, %v6263_v35 }
 0x2a7   : > { %v6309_v49 = vpop.f32.mrf.mxu0  ;;  %2098 = vmatpush1.msra.mxu1 %v1842_v5  ;;  %v1835_v5 = vmul.f32 %v6261_v50, %v6261_v50 }
 0x2a8   : > { %8979 = vst [vmem:[#allocation223_spill] sm:$0xff] %v6309_v49  ;;  %2099 = vmatprep.subr.mxu1 %v1841_v42  ;;  %v1834_v42 = vmul.f32 %v6259_v44, %v6259_v44 }
 0x2a9   : > { %v6315_v1 = vpop.f32.mrf.mxu0  ;;  %2100 = vmatpush1.msra.mxu1 %v1840_v38  ;;  %v1833_v38 = vmul.f32 %v6256_v14, %v6256_v14 }
 0x2aa   : > { %8980 = vst [vmem:[#allocation224_spill] sm:$0xff] %v6315_v1  ;;  %2101 = vmatprep.subr.mxu1 %v1839_v47  ;;  %v1832_v47 = vmul.f32 %v6253_v2, %v6253_v2 }
 0x2ab   : > { %v6321_v62 = vpop.f32.mrf.mxu0  ;;  %2102 = vmatpush1.msra.mxu1 %v1838_v60  ;;  %v1831_v60 = vmul.f32 %v6251_v11, %v6251_v11 }
 0x2ac   : > { %8981 = vst [vmem:[#allocation225_spill] sm:$0xff] %v6321_v62  ;;  %2103 = vmatprep.subr.mxu1 %v1837_v48  ;;  %v1830_v48 = vmul.f32 %v6245_v59, %v6245_v59 }
 0x2ad   : > { %v6327_v26 = vpop.f32.mrf.mxu0  ;;  %2104 = vmatpush1.msra.mxu1 %v1836_v45  ;;  %v1829_v45 = vmul.f32 %v6239_v0, %v6239_v0 }
 0x2ae   : > { %2105 = vmatprep.subr.mxu1 %v1835_v5  ;;  %v1828_v5 = vmul.f32 %v6233_v58, %v6233_v58 }
 0x2af   : > { %v6333_v35 = vpop.f32.mrf.mxu0  ;;  %2106 = vmatpush1.msra.mxu1 %v1834_v42  ;;  %v1827_v42 = vmul.f32 %v6227_v63, %v6227_v63 }
 0x2b0   : > { %8982 = vst [vmem:[#allocation226_spill] sm:$0xff] %v6333_v35  ;;  %2107 = vmatprep.subr.mxu1 %v1833_v38  ;;  %v1826_v38 = vmul.f32 %v6221_v43, %v6221_v43 }
 0x2b1   : > { %v6339_v44 = vpop.f32.mrf.mxu0  ;;  %2108 = vmatpush1.msra.mxu1 %v1832_v47  ;;  %v1825_v47 = vmul.f32 %v6215_v37, %v6215_v37 }
 0x2b2   : > { %2109 = vmatprep.subr.mxu1 %v1831_v60  ;;  %v1824_v60 = vmul.f32 %v6209_v57, %v6209_v57 }
 0x2b3   : > { %v6345_v2 = vpop.f32.mrf.mxu0  ;;  %2110 = vmatpush1.msra.mxu1 %v1830_v48  ;;  %v1823_v48 = vmul.f32 %v6203_v41, %v6203_v41 }
 0x2b4   : > { %8983 = vst [vmem:[#allocation227_spill] sm:$0xff] %v6345_v2  ;;  %2111 = vmatprep.subr.mxu1 %v1829_v45  ;;  %v1822_v45 = vmul.f32 %v6197_v53, %v6197_v53 }
 0x2b5   : > { %v6351_v59 = vpop.f32.mrf.mxu0  ;;  %2112 = vmatpush1.msra.mxu1 %v1828_v5  ;;  %v1821_v5 = vmul.f32 %v6191_v39, %v6191_v39 }
 0x2b6   : > { %2113 = vmatprep.subr.mxu1 %v1827_v42  ;;  %v1820_v42 = vmul.f32 %v6185_v54, %v6185_v54 }
 0x2b7   : > { %v6357_v58 = vpop.f32.mrf.mxu0  ;;  %2114 = vmatpush1.msra.mxu1 %v1826_v38  ;;  %v1819_v38 = vmul.f32 %v6179_v23, %v6179_v23 }
 0x2b8   : > { %8984 = vst [vmem:[#allocation228_spill] sm:$0xff] %v6357_v58  ;;  %2115 = vmatprep.subr.mxu1 %v1825_v47  ;;  %v1818_v47 = vmul.f32 %v6173_v56, %v6173_v56 }
 0x2b9   : > { %v6363_v43 = vpop.f32.mrf.mxu0  ;;  %2116 = vmatpush1.msra.mxu1 %v1824_v60  ;;  %v1817_v60 = vmul.f32 %v6167_v51, %v6167_v51 }
 0x2ba   : > { %8985 = vst [vmem:[#allocation229_spill] sm:$0xff] %v6363_v43  ;;  %2117 = vmatprep.subr.mxu1 %v1823_v48  ;;  %v1816_v48 = vmul.f32 %v6161_v32, %v6161_v32 }
 0x2bb   : > { %v6369_v57 = vpop.f32.mrf.mxu0  ;;  %2118 = vmatpush1.msra.mxu1 %v1822_v45 }
 0x2bc   : > { %8986 = vst [vmem:[#allocation230_spill] sm:$0xff] %v6369_v57  ;;  %2119 = vmatprep.subr.mxu1 %v1821_v5 }
 0x2bd   : > { %v6375_v53 = vpop.f32.mrf.mxu0  ;;  %2120 = vmatpush1.msra.mxu1 %v1820_v42 }
 0x2be   : > { %8987 = vst [vmem:[#allocation231_spill] sm:$0xff] %v6375_v53  ;;  %2121 = vmatprep.subr.mxu1 %v1819_v38 }
 0x2bf   : > { %v6381_v54 = vpop.f32.mrf.mxu0  ;;  %2122 = vmatpush1.msra.mxu1 %v1818_v47 }
 0x2c0   : > { %8988 = vst [vmem:[#allocation232_spill] sm:$0xff] %v6381_v54  ;;  %2123 = vmatprep.subr.mxu1 %v1817_v60 }
 0x2c1   : > { %v6383_v45 = vpop.f32.mrf.mxu0  ;;  %2124 = vmatpush1.msra.mxu1 %v1816_v48 }
 0x2c2   : > { %8989 = vst [vmem:[#allocation233_spill] sm:$0xff] %v6383_v45 }
 0x2c3   : > { %v6385_v5 = vpop.f32.mrf.mxu0 }
 0x2c4   : > { %8990 = vst [vmem:[#allocation234_spill] sm:$0xff] %v6385_v5 }
 0x2c5   : > { %v6387_v56 = vpop.f32.mrf.mxu0 }
 0x2c6   : > { %8991 = vst [vmem:[#allocation235_spill] sm:$0xff] %v6387_v56 }
 0x2c7   : > { %v6389_v23 = vpop.f32.mrf.mxu0 }
 0x2c8   : > { %8992 = vst [vmem:[#allocation236_spill] sm:$0xff] %v6389_v23 }
 0x2c9   : > { %v6391_v42 = vpop.f32.mrf.mxu0 }
 0x2ca   : > { %8993 = vst [vmem:[#allocation237_spill] sm:$0xff] %v6391_v42 }
 0x2cb   : > { %v6393_v51 = vpop.f32.mrf.mxu0 }
 0x2cc   : > { %8994 = vst [vmem:[#allocation238_spill] sm:$0xff] %v6393_v51 }
 0x2cd   : > { %v6395_v38 = vpop.f32.mrf.mxu0 }
 0x2ce   : > { %8995 = vst [vmem:[#allocation239_spill] sm:$0xff] %v6395_v38 }
 0x2cf   : > { %v6397_v32 = vpop.f32.mrf.mxu0 }
 0x2d0   : > { %8996 = vst [vmem:[#allocation240_spill] sm:$0xff] %v6397_v32 }
 0x2d1   : > { %v6399_v39 = vpop.f32.mrf.mxu0 }
 0x2d2   : > { %8997 = vst [vmem:[#allocation241_spill] sm:$0xff] %v6399_v39 }
 0x2d3   : > { %v6401_v47 = vpop.f32.mrf.mxu0 }
 0x2d4   : > { %8998 = vst [vmem:[#allocation242_spill] sm:$0xff] %v6401_v47 }
 0x2d5   : > { %v6403_v60 = vpop.f32.mrf.mxu0 }
 0x2d6   : > { %8999 = vst [vmem:[#allocation243_spill] sm:$0xff] %v6403_v60  ;;  %v1874_v17 = vmul.f32 %v6403_v60, %v6403_v60 }
 0x2d7   : > { %v6405_v48 = vpop.f32.mrf.mxu0 }
 0x2d8   : > { %9000 = vst [vmem:[#allocation244_spill] sm:$0xff] %v6405_v48  ;;  %v1875_v52 = vmul.f32 %v6405_v48, %v6405_v48 }
 0x2d9   : > { %v6407_v41 = vpop.f32.mrf.mxu0 }
 0x2da   : > { %9001 = vst [vmem:[#allocation245_spill] sm:$0xff] %v6407_v41  ;;  %v1876_v40 = vmul.f32 %v6407_v41, %v6407_v41 }
 0x2db   : > { %v6409_v37 = vpop.f32.mrf.mxu0 }
 0x2dc   : > { %9002 = vst [vmem:[#allocation246_spill] sm:$0xff] %v6409_v37  ;;  %v1877_v50 = vmul.f32 %v6409_v37, %v6409_v37  ;;  %v1872_v37 = vmul.f32 %v6399_v39, %v6399_v39 }
 0x2dd   : > { %v6411_v63 = vpop.f32.mrf.mxu0 }
 0x2de   : > { %9003 = vst [vmem:[#allocation247_spill] sm:$0xff] %v6411_v63  ;;  %v1878_v14 = vmul.f32 %v6411_v63, %v6411_v63 }
 0x2df   : > { %v6413_v0 = vpop.f32.mrf.mxu0 }
 0x2e0   : > { %9004 = vst [vmem:[#allocation248_spill] sm:$0xff] %v6413_v0  ;;  %v1879_v11 = vmul.f32 %v6413_v0, %v6413_v0  ;;  %v1873_v0 = vmul.f32 %v6401_v47, %v6401_v47 }
 0x2e2   : > { %2125 = vmatprep.subr.mxu1 %v1879_v11  ;;  %v1871_v11 = vmul.f32 %v6397_v32, %v6397_v32 }
 0x2e3   : > { %2126 = vmatpush2.msra.mxu1 %v1878_v14  ;;  %v1870_v14 = vmul.f32 %v6395_v38, %v6395_v38 }
 0x2e4   : > { %2127 = vmatprep.subr.mxu1 %v1877_v50  ;;  %v1869_v50 = vmul.f32 %v6393_v51, %v6393_v51 }
 0x2e5   : > { %2128 = vmatpush2.msra.mxu1 %v1876_v40  ;;  %v1868_v40 = vmul.f32 %v6391_v42, %v6391_v42 }
 0x2e6   : > { %2129 = vmatprep.subr.mxu1 %v1875_v52  ;;  %v1867_v52 = vmul.f32 %v6389_v23, %v6389_v23 }
 0x2e7   : > { %2130 = vmatpush2.msra.mxu1 %v1874_v17  ;;  %v1866_v17 = vmul.f32 %v6387_v56, %v6387_v56 }
 0x2e8   : > { %2131 = vmatprep.subr.mxu1 %v1873_v0  ;;  %v1865_v0 = vmul.f32 %v6385_v5, %v6385_v5 }
 0x2e9   : > { %2132 = vmatpush2.msra.mxu1 %v1872_v37  ;;  %v1864_v37 = vmul.f32 %v6383_v45, %v6383_v45 }
 0x2ea   : > { %2133 = vmatprep.subr.mxu1 %v1871_v11  ;;  %v1863_v11 = vmul.f32 %v6381_v54, %v6381_v54 }
 0x2eb   : > { %2134 = vmatpush2.msra.mxu1 %v1870_v14  ;;  %v1862_v14 = vmul.f32 %v6375_v53, %v6375_v53 }
 0x2ec   : > { %2135 = vmatprep.subr.mxu1 %v1869_v50  ;;  %v1861_v50 = vmul.f32 %v6369_v57, %v6369_v57 }
 0x2ed   : > { %2136 = vmatpush2.msra.mxu1 %v1868_v40  ;;  %v1860_v40 = vmul.f32 %v6363_v43, %v6363_v43 }
 0x2ee   : > { %2137 = vmatprep.subr.mxu1 %v1867_v52  ;;  %v8718_v52 = vlaneseq }
 0x2ef   : > { %2138 = vmatpush2.msra.mxu1 %v1866_v17  ;;  %v1859_v17 = vmul.f32 %v6357_v58, %v6357_v58 }
 0x2f0   : > { %2139 = vmatprep.subr.mxu1 %v1865_v0  ;;  %v1858_v0 = vmul.f32 %v6351_v59, %v6351_v59  ;;  %v6464_v43 = vshrl.u32 %v8718_v52, 7  ;;  %v1851_v52 = vmul.f32 %v6309_v49, %v6309_v49 }
 0x2f1   : > { %2140 = vmatpush2.msra.mxu1 %v1864_v37  ;;  %v1857_v37 = vmul.f32 %v6345_v2, %v6345_v2 }
 0x2f2   : > { %2141 = vmatprep.subr.mxu1 %v1863_v11  ;;  %v1856_v11 = vmul.f32 %v6339_v44, %v6339_v44 }
 0x2f3   : > { %2142 = vmatpush2.msra.mxu1 %v1862_v14  ;;  %v1855_v14 = vmul.f32 %v6333_v35, %v6333_v35 }
 0x2f4   : > { %2143 = vmatprep.subr.mxu1 %v1861_v50  ;;  %v1854_v50 = vmul.f32 %v6327_v26, %v6327_v26 }
 0x2f5   : > { %2144 = vmatpush2.msra.mxu1 %v1860_v40  ;;  %v1853_v40 = vmul.f32 %v6321_v62, %v6321_v62 }
 0x2f6   : > { %2145 = vmatprep.subr.mxu1 %v1859_v17  ;;  %v1852_v17 = vmul.f32 %v6315_v1, %v6315_v1  ;;  %v2198_v1 = vmax.f32 %v5187_v34, 0.0 }
 0x2f7   : > { %2146 = vmatpush2.msra.mxu1 %v1858_v0  ;;  %v2434_v0 = vsub.s32 1, %v6464_v43 }
 0x2f8   : > { %2147 = vmatprep.subr.mxu1 %v1857_v37  ;;  %v6480_v37 = vld [vmem:[%s8306_s2] sm:$0xff] }
 0x2f9   : > { %2148 = vmatpush2.msra.mxu1 %v1856_v11  ;;  %v1850_v11 = vmul.f32 %v6303_v55, %v6303_v55  ;;  %v2435_v49 = vrot.slane %v6480_v37, %v2434_v0  ;;  %v2194_v0 = vmax.f32 %v5169_v28, 0.0 }
 0x2fa   : > { %2149 = vmatprep.subr.mxu1 %v1855_v14  ;;  %v1849_v14 = vmul.f32 %v6297_v8, %v6297_v8  ;;  %v2196_v8 = vmax.f32 %v5178_v31, 0.0 }
 0x2fb   : > { %2150 = vmatpush2.msra.mxu1 %v1854_v50  ;;  %v1848_v50 = vmul.f32 %v6291_v29, %v6291_v29 }
 0x2fc   : > { %2151 = vmatprep.subr.mxu1 %v1853_v40  ;;  %v2199_v40 = vmax.f32 %v5194_v36, 0.0 }
 0x2fd   : > { %2152 = vmatpush2.msra.mxu1 %v1852_v17  ;;  %v2197_v17 = vmax.f32 %v5185_v33, 0.0  ;;  %v9009_v33 = vld [vmem:[#allocation13_spill] sm:$0xff] }
 0x2fe   : > { %2153 = vmatprep.subr.mxu1 %v1851_v52  ;;  %v2195_v52 = vmax.f32 %v5176_v30, 0.0  ;;  %v2172_v30 = vmax.f32 %v9009_v33, 0.0 }
 0x2ff   : > { %2154 = vmatpush2.msra.mxu1 %v1850_v11  ;;  %v2193_v11 = vmax.f32 %v5167_v27, 0.0  ;;  %v9011_v27 = vld [vmem:[#allocation11_spill] sm:$0xff] }
 0x300   : > { %2155 = vmatprep.subr.mxu1 %v1849_v14  ;;  %v2192_v14 = vmax.f32 %v5160_v25, 0.0 }
 0x301   : > { %2156 = vmatpush2.msra.mxu1 %v1848_v50  ;;  %v2190_v50 = vmax.f32 %v5151_v22, 0.0 }
 0x302   : > { %2158 = vmatmul.mubr.f32.vlgmr.msra.gmra.mxu1 %v8834_v61  ;;  %2468 = vmatprep.subr.mxu1 %v2199_v40  ;;  %v2191_v61 = vmax.f32 %v5158_v24, 0.0  ;;  %v2186_v40 = vmax.f32 %v5133_v16, 0.0  ;;  %v2170_v24 = vmax.f32 %v9011_v27, 0.0 }
 0x303   : > { %2469 = vmatpush1.msra.mxu1 %v2198_v1  ;;  %2532 = vmatprep.mubr.f32.mxu1 %v2435_v49  ;;  %v2189_v49 = vmax.f32 %v5149_v21, 0.0  ;;  %v2188_v1 = vmax.f32 %v5142_v19, 0.0  ;;  %v9013_v21 = vld [vmem:[#allocation9_spill] sm:$0xff] }
 0x304   : > { %2470 = vmatprep.subr.mxu1 %v2197_v17  ;;  %v2185_v17 = vmax.f32 %v5131_v15, 0.0  ;;  %v9015_v15 = vld [vmem:[#allocation60_spill] sm:$0xff] }
 0x305   : > { %2471 = vmatpush1.msra.mxu1 %v2196_v8  ;;  %v2187_v8 = vmax.f32 %v5140_v18, 0.0  ;;  %v2168_v18 = vmax.f32 %v9013_v21, 0.0 }
 0x306   : > { %2472 = vmatprep.subr.mxu1 %v2195_v52  ;;  %v2184_v52 = vmax.f32 %v5124_v13, 0.0 }
 0x307   : > { %2473 = vmatpush1.msra.mxu1 %v2194_v0  ;;  %v2183_v0 = vmax.f32 %v5122_v12, 0.0  ;;  %v2230_v12 = vmax.f32 %v9015_v15, 0.0  ;;  %v9027_v15 = vld [vmem:[#allocation48_spill] sm:$0xff] }
 0x308   : > { %2474 = vmatprep.subr.mxu1 %v2193_v11  ;;  %v2182_v11 = vmax.f32 %v5115_v10, 0.0 }
 0x309   : > { %2475 = vmatpush1.msra.mxu1 %v2192_v14  ;;  %v2181_v14 = vmax.f32 %v5113_v9, 0.0  ;;  %v9017_v9 = vld [vmem:[#allocation58_spill] sm:$0xff] }
 0x30a   : > { %2476 = vmatprep.subr.mxu1 %v2191_v61  ;;  %v2180_v61 = vmax.f32 %v5106_v7, 0.0 }
 0x30b   : > { %2477 = vmatpush1.msra.mxu1 %v2190_v50  ;;  %v2179_v50 = vmax.f32 %v5104_v6, 0.0  ;;  %v2228_v6 = vmax.f32 %v9017_v9, 0.0  ;;  %v9029_v9 = vld [vmem:[#allocation46_spill] sm:$0xff] }
 0x30c   : > { %2478 = vmatprep.subr.mxu1 %v2189_v49  ;;  %v2178_v49 = vmax.f32 %v5097_v4, 0.0 }
 0x30d   : > { %2479 = vmatpush1.msra.mxu1 %v2188_v1  ;;  %v2177_v1 = vmax.f32 %v5095_v3, 0.0  ;;  %v9019_v3 = vld [vmem:[#allocation56_spill] sm:$0xff] }
 0x30e   : > { %2480 = vmatprep.subr.mxu1 %v2187_v8  ;;  %v9005_v8 = vld [vmem:[#allocation17_spill] sm:$0xff] }
 0x30f   : > { %2481 = vmatpush1.msra.mxu1 %v2186_v40  ;;  %v2176_v40 = vmax.f32 %v9005_v8, 0.0 }
 0x310   : > { %2482 = vmatprep.subr.mxu1 %v2185_v17  ;;  %v9006_v17 = vld [vmem:[#allocation16_spill] sm:$0xff] }
 0x311   : > { %2483 = vmatpush1.msra.mxu1 %v2184_v52  ;;  %v2175_v52 = vmax.f32 %v9006_v17, 0.0  ;;  %v2226_v17 = vmax.f32 %v9019_v3, 0.0  ;;  %v9031_v3 = vld [vmem:[#allocation44_spill] sm:$0xff] }
 0x312   : > { %2484 = vmatprep.subr.mxu1 %v2183_v0  ;;  %v9007_v0 = vld [vmem:[#allocation15_spill] sm:$0xff] }
 0x313   : > { %2485 = vmatpush1.msra.mxu1 %v2182_v11  ;;  %v2174_v36 = vmax.f32 %v9007_v0, 0.0  ;;  %v9008_v11 = vld [vmem:[#allocation14_spill] sm:$0xff] }
 0x314   : > { %2486 = vmatprep.subr.mxu1 %v2181_v14  ;;  %v2173_v14 = vmax.f32 %v9008_v11, 0.0  ;;  %v9021_v11 = vld [vmem:[#allocation54_spill] sm:$0xff] }
 0x315   : > { %2487 = vmatpush1.msra.mxu1 %v2180_v61  ;;  %v9010_v61 = vld [vmem:[#allocation12_spill] sm:$0xff] }
 0x316   : > { %2488 = vmatprep.subr.mxu1 %v2179_v50  ;;  %v2171_v50 = vmax.f32 %v9010_v61, 0.0  ;;  %v9023_v61 = vld [vmem:[#allocation52_spill] sm:$0xff] }
 0x317   : > { %2489 = vmatpush1.msra.mxu1 %v2178_v49  ;;  %v9012_v49 = vld [vmem:[#allocation10_spill] sm:$0xff] }
 0x318   : > { %2490 = vmatprep.subr.mxu1 %v2177_v1  ;;  %v2169_v1 = vmax.f32 %v9012_v49, 0.0  ;;  %v9025_v49 = vld [vmem:[#allocation50_spill] sm:$0xff] }
 0x319   : > { %2491 = vmatpush1.msra.mxu1 %v2176_v40  ;;  %v9014_v40 = vld [vmem:[#allocation61_spill] sm:$0xff] }
 0x31a   : > { %2492 = vmatprep.subr.mxu1 %v2175_v52  ;;  %v2231_v52 = vmax.f32 %v9014_v40, 0.0  ;;  %v2224_v40 = vmax.f32 %v9021_v11, 0.0  ;;  %v9033_v11 = vld [vmem:[#allocation42_spill] sm:$0xff] }
 0x31b   : > { %2493 = vmatpush1.msra.mxu1 %v2174_v36  ;;  %v9016_v36 = vld [vmem:[#allocation59_spill] sm:$0xff] }
 0x31c   : > { %2494 = vmatprep.subr.mxu1 %v2173_v14  ;;  %v2229_v14 = vmax.f32 %v9016_v36, 0.0  ;;  %v2222_v36 = vmax.f32 %v9023_v61, 0.0  ;;  %v9035_v61 = vld [vmem:[#allocation40_spill] sm:$0xff] }
 0x31d   : > { %2495 = vmatpush1.msra.mxu1 %v2172_v30  ;;  %v9018_v30 = vld [vmem:[#allocation57_spill] sm:$0xff] }
 0x31e   : > { %2496 = vmatprep.subr.mxu1 %v2171_v50  ;;  %v2227_v50 = vmax.f32 %v9018_v30, 0.0  ;;  %v2220_v30 = vmax.f32 %v9025_v49, 0.0  ;;  %v9037_v49 = vld [vmem:[#allocation38_spill] sm:$0xff] }
 0x31f   : > { %2497 = vmatpush1.msra.mxu1 %v2170_v24  ;;  %v9020_v24 = vld [vmem:[#allocation55_spill] sm:$0xff] }
 0x320   : > { %2498 = vmatprep.subr.mxu1 %v2169_v1  ;;  %v2225_v1 = vmax.f32 %v9020_v24, 0.0  ;;  %v2218_v24 = vmax.f32 %v9027_v15, 0.0  ;;  %v9039_v15 = vld [vmem:[#allocation36_spill] sm:$0xff] }
 0x321   : > { %2499 = vmatpush1.msra.mxu1 %v2168_v18  ;;  %v9022_v18 = vld [vmem:[#allocation53_spill] sm:$0xff] }
 0x322   : > { %2500 = vmatprep.subr.mxu1 %v2231_v52  ;;  %v2223_v52 = vmax.f32 %v9022_v18, 0.0  ;;  %v2216_v18 = vmax.f32 %v9029_v9, 0.0  ;;  %v9041_v9 = vld [vmem:[#allocation34_spill] sm:$0xff] }
 0x323   : > { %2501 = vmatpush2.msra.mxu1 %v2230_v12  ;;  %v9024_v12 = vld [vmem:[#allocation51_spill] sm:$0xff] }
 0x324   : > { %2502 = vmatprep.subr.mxu1 %v2229_v14  ;;  %v2221_v14 = vmax.f32 %v9024_v12, 0.0  ;;  %v2214_v12 = vmax.f32 %v9031_v3, 0.0 }
 0x325   : > { %2503 = vmatpush2.msra.mxu1 %v2228_v6  ;;  %v9026_v6 = vld [vmem:[#allocation49_spill] sm:$0xff] }
 0x326   : > { %2504 = vmatprep.subr.mxu1 %v2227_v50  ;;  %v2219_v50 = vmax.f32 %v9026_v6, 0.0  ;;  %v2212_v6 = vmax.f32 %v9033_v11, 0.0 }
 0x327   : > { %2505 = vmatpush2.msra.mxu1 %v2226_v17  ;;  %v9028_v17 = vld [vmem:[#allocation47_spill] sm:$0xff] }
 0x328   : > { %2506 = vmatprep.subr.mxu1 %v2225_v1  ;;  %v2217_v1 = vmax.f32 %v9028_v17, 0.0  ;;  %v2210_v17 = vmax.f32 %v9035_v61, 0.0 }
 0x329   : > { %2507 = vmatpush2.msra.mxu1 %v2224_v40  ;;  %v9030_v40 = vld [vmem:[#allocation45_spill] sm:$0xff] }
 0x32a   : > { %2508 = vmatprep.subr.mxu1 %v2223_v52  ;;  %v2215_v52 = vmax.f32 %v9030_v40, 0.0  ;;  %v2208_v40 = vmax.f32 %v9037_v49, 0.0 }
 0x32b   : > { %2509 = vmatpush2.msra.mxu1 %v2222_v36  ;;  %v9032_v36 = vld [vmem:[#allocation43_spill] sm:$0xff] }
 0x32c   : > { %2510 = vmatprep.subr.mxu1 %v2221_v14  ;;  %v2213_v14 = vmax.f32 %v9032_v36, 0.0  ;;  %v2206_v36 = vmax.f32 %v9039_v15, 0.0 }
 0x32d   : > { %2511 = vmatpush2.msra.mxu1 %v2220_v30  ;;  %v9034_v30 = vld [vmem:[#allocation41_spill] sm:$0xff] }
 0x32e   : > { %2512 = vmatprep.subr.mxu1 %v2219_v50  ;;  %v2211_v50 = vmax.f32 %v9034_v30, 0.0  ;;  %v6550_v30 = vsub.s32 0, %v6464_v43 }
 0x32f   : > { %2513 = vmatpush2.msra.mxu1 %v2218_v24  ;;  %v9036_v24 = vld [vmem:[#allocation39_spill] sm:$0xff] }
 0x330   : > { %2514 = vmatprep.subr.mxu1 %v2217_v1  ;;  %v2209_v1 = vmax.f32 %v9036_v24, 0.0  ;;  %v9042_v24 = vld [vmem:[#allocation33_spill] sm:$0xff] }
 0x331   : > { %2515 = vmatpush2.msra.mxu1 %v2216_v18  ;;  %v9038_v18 = vld [vmem:[#allocation37_spill] sm:$0xff] }
 0x332   : > { %2516 = vmatprep.subr.mxu1 %v2215_v52  ;;  %v2207_v52 = vmax.f32 %v9038_v18, 0.0  ;;  %v9044_v18 = vld [vmem:[#allocation31_spill] sm:$0xff] }
 0x333   : > { %2517 = vmatpush2.msra.mxu1 %v2214_v12  ;;  %v9040_v12 = vld [vmem:[#allocation35_spill] sm:$0xff] }
 0x334   : > { %2518 = vmatprep.subr.mxu1 %v2213_v14  ;;  %v2205_v14 = vmax.f32 %v9040_v12, 0.0  ;;  %v9045_v12 = vld [vmem:[#allocation30_spill] sm:$0xff] }
 0x335   : > { %2519 = vmatpush2.msra.mxu1 %v2212_v6  ;;  %v2204_v6 = vmax.f32 %v9041_v9, 0.0  ;;  %v2200_v11 = vmax.f32 %v9045_v12, 0.0  ;;  %v9050_v9 = vld [vmem:[#allocation89_spill] sm:$0xff] }
 0x336   : > { %2520 = vmatprep.subr.mxu1 %v2211_v50  ;;  %v2442_v50 = vsub.s32 3, %v6464_v43 }
 0x337   : > { %2521 = vmatpush2.msra.mxu1 %v2210_v17  ;;  %v2203_v17 = vmax.f32 %v9042_v24, 0.0  ;;  %v9049_v24 = vld [vmem:[#allocation90_spill] sm:$0xff] }
 0x338   : > { %2522 = vmatprep.subr.mxu1 %v2209_v1  ;;  %v9043_v1 = vld [vmem:[#allocation32_spill] sm:$0xff]  ;;  %v2443_v61 = vrot.slane %v6480_v37, %v2442_v50  ;;  %v9052_v50 = vld [vmem:[#allocation87_spill] sm:$0xff] }
 0x339   : > { %2523 = vmatpush2.msra.mxu1 %v2208_v40  ;;  %v2202_v3 = vmax.f32 %v9043_v1, 0.0  ;;  %v2201_v40 = vmax.f32 %v9044_v18, 0.0  ;;  %v2260_v18 = vmax.f32 %v9049_v24, 0.0  ;;  %v2259_v1 = vmax.f32 %v9050_v9, 0.0  ;;  %v9059_v24 = vld [vmem:[#allocation80_spill] sm:$0xff] }
 0x33a   : > { %2524 = vmatprep.subr.mxu1 %v2207_v52  ;;  %v2431_v52 = vrot.slane %v6480_v37, %v6550_v30 }
 0x33b   : > { %2525 = vmatpush2.msra.mxu1 %v2206_v36  ;;  %v9046_v36 = vld [vmem:[#allocation93_spill] sm:$0xff] }
 0x33c   : > { %2526 = vmatprep.subr.mxu1 %v2205_v14  ;;  %v2263_v49 = vmax.f32 %v9046_v36, 0.0  ;;  %v9047_v14 = vld [vmem:[#allocation92_spill] sm:$0xff]  ;;  %v9053_v36 = vld [vmem:[#allocation86_spill] sm:$0xff] }
 0x33d   : > { %2527 = vmatpush2.msra.mxu1 %v2204_v6  ;;  %v2262_v15 = vmax.f32 %v9047_v14, 0.0  ;;  %v9048_v6 = vld [vmem:[#allocation91_spill] sm:$0xff]  ;;  %v2256_v14 = vmax.f32 %v9053_v36, 0.0  ;;  %v9063_v36 = vld [vmem:[#allocation76_spill] sm:$0xff] }
 0x33e   : > { %2528 = vmatprep.subr.mxu1 %v2203_v17  ;;  %v2261_v17 = vmax.f32 %v9048_v6, 0.0 }
 0x33f   : > { %2529 = vmatpush2.msra.mxu1 %v2202_v3  ;;  %v9051_v3 = vld [vmem:[#allocation88_spill] sm:$0xff] }
 0x340   : > { %2530 = vmatprep.subr.mxu1 %v2201_v40  ;;  %v2258_v12 = vmax.f32 %v9051_v3, 0.0  ;;  %v2257_v40 = vmax.f32 %v9052_v50, 0.0  ;;  %v2250_v50 = vmax.f32 %v9059_v24, 0.0  ;;  %v9061_v3 = vld [vmem:[#allocation78_spill] sm:$0xff] }
 0x341   : > { %2531 = vmatpush2.msra.mxu1 %v2200_v11  ;;  %v9054_v11 = vld [vmem:[#allocation85_spill] sm:$0xff]  ;;  %v9069_v24 = vld [vmem:[#allocation70_spill] sm:$0xff] }
 0x342   : > { %2533 = vmatmul.mubr.f32.vlgmr.msra.gmra.mxu1 %v2431_v52  ;;  %2539 = vmatprep.subr.mxu1 %v2263_v49  ;;  %v2255_v49 = vmax.f32 %v9054_v11, 0.0  ;;  %v9055_v52 = vld [vmem:[#allocation84_spill] sm:$0xff]  ;;  %v2248_v11 = vmax.f32 %v9061_v3, 0.0 }
 0x343   : > { %2540 = vmatpush1.msra.mxu1 %v2262_v15  ;;  %2603 = vmatprep.mubr.f32.mxu1 %v2443_v61  ;;  %v2254_v6 = vmax.f32 %v9055_v52, 0.0  ;;  %v9056_v15 = vld [vmem:[#allocation83_spill] sm:$0xff]  ;;  %v9065_v52 = vld [vmem:[#allocation74_spill] sm:$0xff]  ;;  %v9071_v3 = vld [vmem:[#allocation68_spill] sm:$0xff] }
 0x344   : > { %2541 = vmatprep.subr.mxu1 %v2261_v17  ;;  %v2253_v61 = vmax.f32 %v9056_v15, 0.0  ;;  %v9057_v17 = vld [vmem:[#allocation82_spill] sm:$0xff]  ;;  %v2246_v15 = vmax.f32 %v9063_v36, 0.0 }
 0x345   : > { %2542 = vmatpush1.msra.mxu1 %v2260_v18  ;;  %v2252_v9 = vmax.f32 %v9057_v17, 0.0  ;;  %v9058_v18 = vld [vmem:[#allocation81_spill] sm:$0xff]  ;;  %v9067_v17 = vld [vmem:[#allocation72_spill] sm:$0xff]  ;;  %v9073_v36 = vld [vmem:[#allocation66_spill] sm:$0xff] }
 0x346   : > { %2543 = vmatprep.subr.mxu1 %v2259_v1  ;;  %v2251_v1 = vmax.f32 %v9058_v18, 0.0  ;;  %v2244_v18 = vmax.f32 %v9065_v52, 0.0  ;;  %v9075_v52 = vld [vmem:[#allocation64_spill] sm:$0xff] }
 0x347   : > { %2544 = vmatpush1.msra.mxu1 %v2258_v12  ;;  %v9060_v12 = vld [vmem:[#allocation79_spill] sm:$0xff] }
 0x348   : > { %2545 = vmatprep.subr.mxu1 %v2257_v40  ;;  %v2249_v40 = vmax.f32 %v9060_v12, 0.0  ;;  %v2242_v12 = vmax.f32 %v9067_v17, 0.0  ;;  %v9077_v17 = vld [vmem:[#allocation62_spill] sm:$0xff] }
 0x349   : > { %2546 = vmatpush1.msra.mxu1 %v2256_v14  ;;  %v9062_v14 = vld [vmem:[#allocation77_spill] sm:$0xff] }
 0x34a   : > { %2547 = vmatprep.subr.mxu1 %v2255_v49  ;;  %v2247_v49 = vmax.f32 %v9062_v14, 0.0  ;;  %v2240_v14 = vmax.f32 %v9069_v24, 0.0  ;;  %v9079_v24 = vld [vmem:[#allocation124_spill] sm:$0xff] }
 0x34b   : > { %2548 = vmatpush1.msra.mxu1 %v2254_v6  ;;  %v9064_v6 = vld [vmem:[#allocation75_spill] sm:$0xff] }
 0x34c   : > { %2549 = vmatprep.subr.mxu1 %v2253_v61  ;;  %v2245_v61 = vmax.f32 %v9064_v6, 0.0  ;;  %v2238_v6 = vmax.f32 %v9071_v3, 0.0  ;;  %v9082_v3 = vld [vmem:[#allocation120_spill] sm:$0xff] }
 0x34d   : > { %2550 = vmatpush1.msra.mxu1 %v2252_v9  ;;  %v9066_v9 = vld [vmem:[#allocation73_spill] sm:$0xff] }
 0x34e   : > { %2551 = vmatprep.subr.mxu1 %v2251_v1  ;;  %v2243_v1 = vmax.f32 %v9066_v9, 0.0  ;;  %v2236_v9 = vmax.f32 %v9073_v36, 0.0  ;;  %v9084_v36 = vld [vmem:[#allocation118_spill] sm:$0xff] }
 0x34f   : > { %2552 = vmatpush1.msra.mxu1 %v2250_v50  ;;  %v9068_v50 = vld [vmem:[#allocation71_spill] sm:$0xff] }
 0x350   : > { %2553 = vmatprep.subr.mxu1 %v2249_v40  ;;  %v2241_v40 = vmax.f32 %v9068_v50, 0.0  ;;  %v2234_v50 = vmax.f32 %v9075_v52, 0.0  ;;  %v9110_v52 = vld [vmem:[#allocation156_spill] sm:$0xff] }
 0x351   : > { %2554 = vmatpush1.msra.mxu1 %v2248_v11  ;;  %v9070_v11 = vld [vmem:[#allocation69_spill] sm:$0xff] }
 0x352   : > { %2555 = vmatprep.subr.mxu1 %v2247_v49  ;;  %v2239_v49 = vmax.f32 %v9070_v11, 0.0  ;;  %v2232_v11 = vmax.f32 %v9077_v17, 0.0 }
 0x353   : > { %2556 = vmatpush1.msra.mxu1 %v2246_v15  ;;  %v9072_v15 = vld [vmem:[#allocation67_spill] sm:$0xff] }
 0x354   : > { %2557 = vmatprep.subr.mxu1 %v2245_v61  ;;  %v2237_v61 = vmax.f32 %v9072_v15, 0.0  ;;  %v2294_v15 = vmax.f32 %v9079_v24, 0.0  ;;  %v9086_v24 = vld [vmem:[#allocation116_spill] sm:$0xff] }
 0x355   : > { %2558 = vmatpush1.msra.mxu1 %v2244_v18  ;;  %v9074_v18 = vld [vmem:[#allocation65_spill] sm:$0xff] }
 0x356   : > { %2559 = vmatprep.subr.mxu1 %v2243_v1  ;;  %v2235_v1 = vmax.f32 %v9074_v18, 0.0 }
 0x357   : > { %2560 = vmatpush1.msra.mxu1 %v2242_v12  ;;  %v9076_v12 = vld [vmem:[#allocation63_spill] sm:$0xff] }
 0x358   : > { %2561 = vmatprep.subr.mxu1 %v2241_v40  ;;  %v2233_v40 = vmax.f32 %v9076_v12, 0.0  ;;  %v2290_v12 = vmax.f32 %v9082_v3, 0.0  ;;  %v9090_v3 = vld [vmem:[#allocation112_spill] sm:$0xff] }
 0x359   : > { %2562 = vmatpush1.msra.mxu1 %v2240_v14  ;;  %v9078_v14 = vld [vmem:[#allocation125_spill] sm:$0xff] }
 0x35a   : > { %2563 = vmatprep.subr.mxu1 %v2239_v49  ;;  %v2295_v49 = vmax.f32 %v9078_v14, 0.0  ;;  %v2288_v14 = vmax.f32 %v9084_v36, 0.0  ;;  %v9092_v36 = vld [vmem:[#allocation110_spill] sm:$0xff] }
 0x35b   : > { %2564 = vmatpush1.msra.mxu1 %v2238_v6  ;;  %v2293_v6 = vmax.f32 %v5812_v46, 0.0  ;;  %v2286_v46 = vmax.f32 %v9086_v24, 0.0  ;;  %v9094_v24 = vld [vmem:[#allocation108_spill] sm:$0xff] }
 0x35c   : > { %2565 = vmatprep.subr.mxu1 %v2237_v61  ;;  %v9080_v61 = vld [vmem:[#allocation122_spill] sm:$0xff] }
 0x35d   : > { %2566 = vmatpush1.msra.mxu1 %v2236_v9  ;;  %v2292_v18 = vmax.f32 %v9080_v61, 0.0  ;;  %v9081_v9 = vld [vmem:[#allocation121_spill] sm:$0xff]  ;;  %v9088_v61 = vld [vmem:[#allocation114_spill] sm:$0xff] }
 0x35e   : > { %2567 = vmatprep.subr.mxu1 %v2235_v1  ;;  %v2291_v1 = vmax.f32 %v9081_v9, 0.0  ;;  %v2284_v9 = vmax.f32 %v9088_v61, 0.0  ;;  %v9096_v61 = vld [vmem:[#allocation106_spill] sm:$0xff] }
 0x35f   : > { %2568 = vmatpush1.msra.mxu1 %v2234_v50  ;;  %v9083_v50 = vld [vmem:[#allocation119_spill] sm:$0xff] }
 0x360   : > { %2569 = vmatprep.subr.mxu1 %v2233_v40  ;;  %v2289_v40 = vmax.f32 %v9083_v50, 0.0  ;;  %v2282_v50 = vmax.f32 %v9090_v3, 0.0  ;;  %v9098_v3 = vld [vmem:[#allocation104_spill] sm:$0xff] }
 0x361   : > { %2570 = vmatpush1.msra.mxu1 %v2232_v11  ;;  %v9085_v11 = vld [vmem:[#allocation117_spill] sm:$0xff] }
 0x362   : > { %2571 = vmatprep.subr.mxu1 %v2295_v49  ;;  %v2287_v49 = vmax.f32 %v9085_v11, 0.0  ;;  %v2280_v11 = vmax.f32 %v9092_v36, 0.0  ;;  %v9100_v36 = vld [vmem:[#allocation102_spill] sm:$0xff] }
 0x363   : > { %2572 = vmatpush2.msra.mxu1 %v2294_v15  ;;  %v9087_v15 = vld [vmem:[#allocation115_spill] sm:$0xff] }
 0x364   : > { %2573 = vmatprep.subr.mxu1 %v2293_v6  ;;  %v2285_v6 = vmax.f32 %v9087_v15, 0.0  ;;  %v2278_v15 = vmax.f32 %v9094_v24, 0.0  ;;  %v9102_v24 = vld [vmem:[#allocation100_spill] sm:$0xff] }
 0x365   : > { %2574 = vmatpush2.msra.mxu1 %v2292_v18  ;;  %v9089_v18 = vld [vmem:[#allocation113_spill] sm:$0xff] }
 0x366   : > { %2575 = vmatprep.subr.mxu1 %v2291_v1  ;;  %v2283_v1 = vmax.f32 %v9089_v18, 0.0  ;;  %v2276_v18 = vmax.f32 %v9096_v61, 0.0  ;;  %v9104_v61 = vld [vmem:[#allocation98_spill] sm:$0xff] }
 0x367   : > { %2576 = vmatpush2.msra.mxu1 %v2290_v12  ;;  %v9091_v12 = vld [vmem:[#allocation111_spill] sm:$0xff] }
 0x368   : > { %2577 = vmatprep.subr.mxu1 %v2289_v40  ;;  %v2281_v40 = vmax.f32 %v9091_v12, 0.0  ;;  %v2274_v12 = vmax.f32 %v9098_v3, 0.0  ;;  %v2268_v3 = vmax.f32 %v9104_v61, 0.0  ;;  %v9109_v61 = vld [vmem:[#allocation157_spill] sm:$0xff] }
 0x369   : > { %2578 = vmatpush2.msra.mxu1 %v2288_v14  ;;  %v9093_v14 = vld [vmem:[#allocation109_spill] sm:$0xff] }
 0x36a   : > { %2579 = vmatprep.subr.mxu1 %v2287_v49  ;;  %v2279_v49 = vmax.f32 %v9093_v14, 0.0  ;;  %v2272_v14 = vmax.f32 %v9100_v36, 0.0 }
 0x36b   : > { %2580 = vmatpush2.msra.mxu1 %v2286_v46  ;;  %v9095_v46 = vld [vmem:[#allocation107_spill] sm:$0xff] }
 0x36c   : > { %2581 = vmatprep.subr.mxu1 %v2285_v6  ;;  %v2277_v6 = vmax.f32 %v9095_v46, 0.0  ;;  %v2270_v46 = vmax.f32 %v9102_v24, 0.0 }
 0x36d   : > { %2582 = vmatpush2.msra.mxu1 %v2284_v9  ;;  %v9097_v9 = vld [vmem:[#allocation105_spill] sm:$0xff] }
 0x36e   : > { %2583 = vmatprep.subr.mxu1 %v2283_v1  ;;  %v2275_v1 = vmax.f32 %v9097_v9, 0.0  ;;  %v2438_v9 = vsub.s32 2, %v6464_v43 }
 0x36f   : > { %2584 = vmatpush2.msra.mxu1 %v2282_v50  ;;  %v9099_v50 = vld [vmem:[#allocation103_spill] sm:$0xff] }
 0x370   : > { %2585 = vmatprep.subr.mxu1 %v2281_v40  ;;  %v2273_v40 = vmax.f32 %v9099_v50, 0.0 }
 0x371   : > { %2586 = vmatpush2.msra.mxu1 %v2280_v11  ;;  %v9101_v11 = vld [vmem:[#allocation101_spill] sm:$0xff] }
 0x372   : > { %2587 = vmatprep.subr.mxu1 %v2279_v49  ;;  %v2271_v49 = vmax.f32 %v9101_v11, 0.0  ;;  %v9107_v11 = vld [vmem:[#allocation95_spill] sm:$0xff] }
 0x373   : > { %2588 = vmatpush2.msra.mxu1 %v2278_v15  ;;  %v9103_v15 = vld [vmem:[#allocation99_spill] sm:$0xff]  ;;  %v2265_v36 = vmax.f32 %v9107_v11, 0.0 }
 0x374   : > { %2589 = vmatprep.subr.mxu1 %v2277_v6  ;;  %v2269_v6 = vmax.f32 %v9103_v15, 0.0 }
 0x375   : > { %2590 = vmatpush2.msra.mxu1 %v2276_v18  ;;  %v2450_v18 = vsub.s32 5, %v6464_v43 }
 0x376   : > { %2591 = vmatprep.subr.mxu1 %v2275_v1  ;;  %v9105_v1 = vld [vmem:[#allocation97_spill] sm:$0xff] }
 0x377   : > { %2592 = vmatpush2.msra.mxu1 %v2274_v12  ;;  %v2267_v50 = vmax.f32 %v9105_v1, 0.0  ;;  %v9106_v12 = vld [vmem:[#allocation96_spill] sm:$0xff]  ;;  %v2451_v24 = vrot.slane %v6480_v37, %v2450_v18  ;;  %v9111_v1 = vld [vmem:[#allocation155_spill] sm:$0xff] }
 0x378   : > { %2593 = vmatprep.subr.mxu1 %v2273_v40  ;;  %v2266_v40 = vmax.f32 %v9106_v12, 0.0  ;;  %v2325_v17 = vmax.f32 %v9111_v1, 0.0  ;;  %v9115_v18 = vld [vmem:[#allocation151_spill] sm:$0xff] }
 0x379   : > { %2594 = vmatpush2.msra.mxu1 %v2272_v14  ;;  %v2439_v14 = vrot.slane %v6480_v37, %v2438_v9  ;;  %v9113_v9 = vld [vmem:[#allocation153_spill] sm:$0xff] }
 0x37a   : > { %2595 = vmatprep.subr.mxu1 %v2271_v49  ;;  %v9108_v49 = vld [vmem:[#allocation94_spill] sm:$0xff]  ;;  %v2323_v11 = vmax.f32 %v9113_v9, 0.0 }
 0x37b   : > { %2596 = vmatpush2.msra.mxu1 %v2270_v46  ;;  %v2264_v15 = vmax.f32 %v9108_v49, 0.0  ;;  %v2327_v46 = vmax.f32 %v9109_v61, 0.0  ;;  %v2321_v61 = vmax.f32 %v9115_v18, 0.0  ;;  %v9120_v9 = vld [vmem:[#allocation146_spill] sm:$0xff]  ;;  %v9122_v18 = vld [vmem:[#allocation144_spill] sm:$0xff] }
 0x37c   : > { %2597 = vmatprep.subr.mxu1 %v2269_v6  ;;  %v2326_v6 = vmax.f32 %v9110_v52, 0.0 }
 0x37d   : > { %2598 = vmatpush2.msra.mxu1 %v2268_v3  ;;  %v9112_v3 = vld [vmem:[#allocation154_spill] sm:$0xff] }
 0x37e   : > { %2599 = vmatprep.subr.mxu1 %v2267_v50  ;;  %v2324_v50 = vmax.f32 %v9112_v3, 0.0  ;;  %v9121_v3 = vld [vmem:[#allocation145_spill] sm:$0xff] }
 0x37f   : > { %2600 = vmatpush2.msra.mxu1 %v2266_v40  ;;  %v9114_v40 = vld [vmem:[#allocation152_spill] sm:$0xff] }
 0x380   : > { %2601 = vmatprep.subr.mxu1 %v2265_v36  ;;  %v2322_v12 = vmax.f32 %v9114_v40, 0.0  ;;  %v9116_v36 = vld [vmem:[#allocation150_spill] sm:$0xff]  ;;  %v9123_v40 = vld [vmem:[#allocation143_spill] sm:$0xff] }
 0x381   : > { %2602 = vmatpush2.msra.mxu1 %v2264_v15  ;;  %v2320_v52 = vmax.f32 %v9116_v36, 0.0  ;;  %v9117_v15 = vld [vmem:[#allocation149_spill] sm:$0xff] }
 0x382   : > { %2604 = vmatmul.mubr.f32.vlgmr.msra.gmra.mxu1 %v2439_v14  ;;  %2610 = vmatprep.subr.mxu1 %v2327_v46  ;;  %v2319_v1 = vmax.f32 %v9117_v15, 0.0  ;;  %v9118_v14 = vld [vmem:[#allocation148_spill] sm:$0xff]  ;;  %v9124_v15 = vld [vmem:[#allocation142_spill] sm:$0xff] }
 0x383   : > { %2611 = vmatpush1.msra.mxu1 %v2326_v6  ;;  %2674 = vmatprep.mubr.f32.mxu1 %v2451_v24  ;;  %v2318_v46 = vmax.f32 %v9118_v14, 0.0  ;;  %v9119_v6 = vld [vmem:[#allocation147_spill] sm:$0xff] }
 0x384   : > { %2612 = vmatprep.subr.mxu1 %v2325_v17  ;;  %v2317_v24 = vmax.f32 %v9119_v6, 0.0  ;;  %v2316_v17 = vmax.f32 %v9120_v9, 0.0  ;;  %v9126_v6 = vld [vmem:[#allocation140_spill] sm:$0xff] }
 0x385   : > { %2613 = vmatpush1.msra.mxu1 %v2324_v50  ;;  %v2315_v50 = vmax.f32 %v9121_v3, 0.0  ;;  %v9128_v3 = vld [vmem:[#allocation138_spill] sm:$0xff] }
 0x386   : > { %2614 = vmatprep.subr.mxu1 %v2323_v11  ;;  %v2314_v11 = vmax.f32 %v9122_v18, 0.0  ;;  %v9132_v18 = vld [vmem:[#allocation134_spill] sm:$0xff] }
 0x387   : > { %2615 = vmatpush1.msra.mxu1 %v2322_v12  ;;  %v2313_v12 = vmax.f32 %v9123_v40, 0.0  ;;  %v9130_v40 = vld [vmem:[#allocation136_spill] sm:$0xff] }
 0x388   : > { %2616 = vmatprep.subr.mxu1 %v2321_v61  ;;  %v2312_v61 = vmax.f32 %v9124_v15, 0.0  ;;  %v9134_v15 = vld [vmem:[#allocation132_spill] sm:$0xff] }
 0x389   : > { %2617 = vmatpush1.msra.mxu1 %v2320_v52  ;;  %v9125_v52 = vld [vmem:[#allocation141_spill] sm:$0xff] }
 0x38a   : > { %2618 = vmatprep.subr.mxu1 %v2319_v1  ;;  %v2311_v36 = vmax.f32 %v9125_v52, 0.0  ;;  %v2310_v1 = vmax.f32 %v9126_v6, 0.0  ;;  %v2304_v52 = vmax.f32 %v9132_v18, 0.0  ;;  %v9136_v6 = vld [vmem:[#allocation130_spill] sm:$0xff]  ;;  %v9141_v18 = vld [vmem:[#allocation189_spill] sm:$0xff] }
 0x38b   : > { %2619 = vmatpush1.msra.mxu1 %v2318_v46  ;;  %v9127_v46 = vld [vmem:[#allocation139_spill] sm:$0xff] }
 0x38c   : > { %2620 = vmatprep.subr.mxu1 %v2317_v24  ;;  %v2309_v14 = vmax.f32 %v9127_v46, 0.0  ;;  %v2308_v24 = vmax.f32 %v9128_v3, 0.0  ;;  %v2302_v46 = vmax.f32 %v9134_v15, 0.0  ;;  %v9138_v3 = vld [vmem:[#allocation128_spill] sm:$0xff]  ;;  %v9143_v15 = vld [vmem:[#allocation187_spill] sm:$0xff] }
 0x38d   : > { %2621 = vmatpush1.msra.mxu1 %v2316_v17  ;;  %v9129_v17 = vld [vmem:[#allocation137_spill] sm:$0xff] }
 0x38e   : > { %2622 = vmatprep.subr.mxu1 %v2315_v50  ;;  %v2307_v9 = vmax.f32 %v9129_v17, 0.0  ;;  %v2306_v50 = vmax.f32 %v9130_v40, 0.0  ;;  %v2300_v17 = vmax.f32 %v9136_v6, 0.0  ;;  %v9140_v40 = vld [vmem:[#allocation126_spill] sm:$0xff]  ;;  %v9145_v6 = vld [vmem:[#allocation185_spill] sm:$0xff] }
 0x38f   : > { %2623 = vmatpush1.msra.mxu1 %v2314_v11  ;;  %v9131_v11 = vld [vmem:[#allocation135_spill] sm:$0xff] }
 0x390   : > { %2624 = vmatprep.subr.mxu1 %v2313_v12  ;;  %v2305_v12 = vmax.f32 %v9131_v11, 0.0  ;;  %v2298_v11 = vmax.f32 %v9138_v3, 0.0  ;;  %v9147_v3 = vld [vmem:[#allocation183_spill] sm:$0xff] }
 0x391   : > { %2625 = vmatpush1.msra.mxu1 %v2312_v61  ;;  %v9133_v61 = vld [vmem:[#allocation133_spill] sm:$0xff] }
 0x392   : > { %2626 = vmatprep.subr.mxu1 %v2311_v36  ;;  %v2303_v36 = vmax.f32 %v9133_v61, 0.0  ;;  %v2296_v61 = vmax.f32 %v9140_v40, 0.0  ;;  %v9174_v40 = vld [vmem:[#allocation220_spill] sm:$0xff] }
 0x393   : > { %2627 = vmatpush1.msra.mxu1 %v2310_v1  ;;  %v9135_v1 = vld [vmem:[#allocation131_spill] sm:$0xff]  ;;  %v2390_v49 = vmax.f32 %v9174_v40, 0.0  ;;  %v9184_v40 = vld [vmem:[#allocation209_spill] sm:$0xff] }
 0x394   : > { %2628 = vmatprep.subr.mxu1 %v2309_v14  ;;  %v2301_v14 = vmax.f32 %v9135_v1, 0.0 }
 0x395   : > { %2629 = vmatpush1.msra.mxu1 %v2308_v24  ;;  %v9137_v24 = vld [vmem:[#allocation129_spill] sm:$0xff] }
 0x396   : > { %2630 = vmatprep.subr.mxu1 %v2307_v9  ;;  %v2299_v9 = vmax.f32 %v9137_v24, 0.0 }
 0x397   : > { %2631 = vmatpush1.msra.mxu1 %v2306_v50  ;;  %v9139_v50 = vld [vmem:[#allocation127_spill] sm:$0xff] }
 0x398   : > { %2632 = vmatprep.subr.mxu1 %v2305_v12  ;;  %v2297_v12 = vmax.f32 %v9139_v50, 0.0 }
 0x399   : > { %2633 = vmatpush1.msra.mxu1 %v2304_v52  ;;  %v2359_v52 = vmax.f32 %v9141_v18, 0.0  ;;  %v9148_v18 = vld [vmem:[#allocation182_spill] sm:$0xff] }
 0x39a   : > { %2634 = vmatprep.subr.mxu1 %v2303_v36  ;;  %v9142_v36 = vld [vmem:[#allocation188_spill] sm:$0xff] }
 0x39b   : > { %2635 = vmatpush1.msra.mxu1 %v2302_v46  ;;  %v2358_v1 = vmax.f32 %v9142_v36, 0.0  ;;  %v2357_v46 = vmax.f32 %v9143_v15, 0.0  ;;  %v9149_v36 = vld [vmem:[#allocation181_spill] sm:$0xff]  ;;  %v9150_v15 = vld [vmem:[#allocation180_spill] sm:$0xff] }
 0x39c   : > { %2636 = vmatprep.subr.mxu1 %v2301_v14  ;;  %v9144_v14 = vld [vmem:[#allocation186_spill] sm:$0xff] }
 0x39d   : > { %2637 = vmatpush1.msra.mxu1 %v2300_v17  ;;  %v2356_v24 = vmax.f32 %v9144_v14, 0.0  ;;  %v2355_v17 = vmax.f32 %v9145_v6, 0.0  ;;  %v9151_v14 = vld [vmem:[#allocation179_spill] sm:$0xff]  ;;  %v9152_v6 = vld [vmem:[#allocation178_spill] sm:$0xff] }
 0x39e   : > { %2638 = vmatprep.subr.mxu1 %v2299_v9  ;;  %v9146_v9 = vld [vmem:[#allocation184_spill] sm:$0xff] }
 0x39f   : > { %2639 = vmatpush1.msra.mxu1 %v2298_v11  ;;  %v2354_v50 = vmax.f32 %v9146_v9, 0.0  ;;  %v2353_v11 = vmax.f32 %v9147_v3, 0.0  ;;  %v9153_v9 = vld [vmem:[#allocation177_spill] sm:$0xff]  ;;  %v9154_v3 = vld [vmem:[#allocation176_spill] sm:$0xff] }
 0x3a0   : > { %2640 = vmatprep.subr.mxu1 %v2297_v12  ;;  %v2352_v12 = vmax.f32 %v9148_v18, 0.0  ;;  %v9155_v18 = vld [vmem:[#allocation175_spill] sm:$0xff] }
 0x3a1   : > { %2641 = vmatpush1.msra.mxu1 %v2296_v61  ;;  %v2351_v61 = vmax.f32 %v9149_v36, 0.0  ;;  %v9156_v36 = vld [vmem:[#allocation174_spill] sm:$0xff] }
 0x3a2   : > { %2642 = vmatprep.subr.mxu1 %v2359_v52  ;;  %v2350_v52 = vmax.f32 %v9150_v15, 0.0  ;;  %v9157_v15 = vld [vmem:[#allocation173_spill] sm:$0xff] }
 0x3a3   : > { %2643 = vmatpush2.msra.mxu1 %v2358_v1  ;;  %v2349_v1 = vmax.f32 %v9151_v14, 0.0  ;;  %v9158_v14 = vld [vmem:[#allocation172_spill] sm:$0xff] }
 0x3a4   : > { %2644 = vmatprep.subr.mxu1 %v2357_v46  ;;  %v2348_v46 = vmax.f32 %v9152_v6, 0.0  ;;  %v9159_v6 = vld [vmem:[#allocation171_spill] sm:$0xff] }
 0x3a5   : > { %2645 = vmatpush2.msra.mxu1 %v2356_v24  ;;  %v2347_v24 = vmax.f32 %v9153_v9, 0.0  ;;  %v9160_v9 = vld [vmem:[#allocation170_spill] sm:$0xff] }
 0x3a6   : > { %2646 = vmatprep.subr.mxu1 %v2355_v17  ;;  %v2346_v17 = vmax.f32 %v9154_v3, 0.0  ;;  %v9161_v3 = vld [vmem:[#allocation169_spill] sm:$0xff] }
 0x3a7   : > { %2647 = vmatpush2.msra.mxu1 %v2354_v50  ;;  %v2345_v50 = vmax.f32 %v9155_v18, 0.0  ;;  %v9162_v18 = vld [vmem:[#allocation168_spill] sm:$0xff] }
 0x3a8   : > { %2648 = vmatprep.subr.mxu1 %v2353_v11  ;;  %v2344_v11 = vmax.f32 %v9156_v36, 0.0  ;;  %v9163_v36 = vld [vmem:[#allocation167_spill] sm:$0xff] }
 0x3a9   : > { %2649 = vmatpush2.msra.mxu1 %v2352_v12  ;;  %v2343_v12 = vmax.f32 %v9157_v15, 0.0  ;;  %v9164_v15 = vld [vmem:[#allocation166_spill] sm:$0xff] }
 0x3aa   : > { %2650 = vmatprep.subr.mxu1 %v2351_v61  ;;  %v2342_v61 = vmax.f32 %v9158_v14, 0.0  ;;  %v9165_v14 = vld [vmem:[#allocation165_spill] sm:$0xff] }
 0x3ab   : > { %2651 = vmatpush2.msra.mxu1 %v2350_v52  ;;  %v2341_v52 = vmax.f32 %v9159_v6, 0.0  ;;  %v9166_v6 = vld [vmem:[#allocation164_spill] sm:$0xff] }
 0x3ac   : > { %2652 = vmatprep.subr.mxu1 %v2349_v1  ;;  %v2340_v1 = vmax.f32 %v9160_v9, 0.0  ;;  %v9167_v9 = vld [vmem:[#allocation163_spill] sm:$0xff] }
 0x3ad   : > { %2653 = vmatpush2.msra.mxu1 %v2348_v46  ;;  %v2339_v46 = vmax.f32 %v9161_v3, 0.0  ;;  %v9168_v3 = vld [vmem:[#allocation162_spill] sm:$0xff] }
 0x3ae   : > { %2654 = vmatprep.subr.mxu1 %v2347_v24  ;;  %v2338_v24 = vmax.f32 %v9162_v18, 0.0  ;;  %v2332_v18 = vmax.f32 %v9168_v3, 0.0  ;;  %v9173_v3 = vld [vmem:[#allocation221_spill] sm:$0xff] }
 0x3af   : > { %2655 = vmatpush2.msra.mxu1 %v2346_v17  ;;  %v2337_v17 = vmax.f32 %v9163_v36, 0.0 }
 0x3b0   : > { %2656 = vmatprep.subr.mxu1 %v2345_v50  ;;  %v2336_v50 = vmax.f32 %v9164_v15, 0.0 }
 0x3b1   : > { %2657 = vmatpush2.msra.mxu1 %v2344_v11  ;;  %v2335_v11 = vmax.f32 %v9165_v14, 0.0 }
 0x3b2   : > { %2658 = vmatprep.subr.mxu1 %v2343_v12  ;;  %v2334_v12 = vmax.f32 %v9166_v6, 0.0 }
 0x3b3   : > { %2659 = vmatpush2.msra.mxu1 %v2342_v61  ;;  %v2333_v61 = vmax.f32 %v9167_v9, 0.0  ;;  %v9172_v9 = vld [vmem:[#allocation158_spill] sm:$0xff] }
 0x3b4   : > { %2660 = vmatprep.subr.mxu1 %v2341_v52  ;;  %v2446_v52 = vsub.s32 4, %v6464_v43 }
 0x3b5   : > { %2661 = vmatpush2.msra.mxu1 %v2340_v1  ;;  %v2458_v1 = vsub.s32 7, %v6464_v43 }
 0x3b6   : > { %2662 = vmatprep.subr.mxu1 %v2339_v46  ;;  %v9169_v46 = vld [vmem:[#allocation161_spill] sm:$0xff] }
 0x3b7   : > { %2663 = vmatpush2.msra.mxu1 %v2338_v24  ;;  %v2331_v36 = vmax.f32 %v9169_v46, 0.0  ;;  %v9170_v24 = vld [vmem:[#allocation160_spill] sm:$0xff]  ;;  %v2459_v6 = vrot.slane %v6480_v37, %v2458_v1 }
 0x3b8   : > { %2664 = vmatprep.subr.mxu1 %v2337_v17  ;;  %v2330_v15 = vmax.f32 %v9170_v24, 0.0  ;;  %v9171_v17 = vld [vmem:[#allocation159_spill] sm:$0xff] }
 0x3b9   : > { %2665 = vmatpush2.msra.mxu1 %v2336_v50  ;;  %v2329_v14 = vmax.f32 %v9171_v17, 0.0  ;;  %v2447_v50 = vrot.slane %v6480_v37, %v2446_v52  ;;  %v9178_v37 = vld [vmem:[#allocation215_spill] sm:$0xff] }
 0x3ba   : > { %2666 = vmatprep.subr.mxu1 %v2335_v11  ;;  %v2328_v11 = vmax.f32 %v9172_v9, 0.0  ;;  %v2385_v1 = vmax.f32 %v9178_v37, 0.0  ;;  %v9185_v37 = vld [vmem:[#allocation208_spill] sm:$0xff] }
 0x3bb   : > { %2667 = vmatpush2.msra.mxu1 %v2334_v12  ;;  %v2391_v12 = vmax.f32 %v9173_v3, 0.0 }
 0x3bc   : > { %2668 = vmatprep.subr.mxu1 %v2333_v61  ;;  %v9175_v61 = vld [vmem:[#allocation219_spill] sm:$0xff] }
 0x3bd   : > { %2669 = vmatpush2.msra.mxu1 %v2332_v18  ;;  %v2389_v46 = vmax.f32 %v9175_v61, 0.0  ;;  %v9176_v18 = vld [vmem:[#allocation218_spill] sm:$0xff] }
 0x3be   : > { %2670 = vmatprep.subr.mxu1 %v2331_v36  ;;  %v2388_v17 = vmax.f32 %v9176_v18, 0.0  ;;  %v2387_v36 = vmax.f32 %v6277_v20, 0.0  ;;  %v9183_v20 = vld [vmem:[#allocation210_spill] sm:$0xff]  ;;  %v9186_v18 = vld [vmem:[#allocation207_spill] sm:$0xff] }
 0x3bf   : > { %2671 = vmatpush2.msra.mxu1 %v2330_v15  ;;  %v9177_v15 = vld [vmem:[#allocation216_spill] sm:$0xff] }
 0x3c0   : > { %2672 = vmatprep.subr.mxu1 %v2329_v14  ;;  %v2386_v52 = vmax.f32 %v9177_v15, 0.0  ;;  %v9179_v14 = vld [vmem:[#allocation214_spill] sm:$0xff]  ;;  %v9188_v15 = vld [vmem:[#allocation205_spill] sm:$0xff] }
 0x3c1   : > { %2673 = vmatpush2.msra.mxu1 %v2328_v11  ;;  %v2384_v3 = vmax.f32 %v9179_v14, 0.0  ;;  %v9180_v11 = vld [vmem:[#allocation213_spill] sm:$0xff]  ;;  %v9190_v14 = vld [vmem:[#allocation203_spill] sm:$0xff] }
 0x3c2   : > { %2675 = vmatmul.mubr.f32.vlgmr.msra.gmra.mxu1 %v2447_v50  ;;  %2681 = vmatprep.subr.mxu1 %v2391_v12  ;;  %v2383_v61 = vmax.f32 %v9180_v11, 0.0  ;;  %v9181_v50 = vld [vmem:[#allocation212_spill] sm:$0xff]  ;;  %v9187_v11 = vld [vmem:[#allocation206_spill] sm:$0xff] }
 0x3c3   : > { %2682 = vmatpush1.msra.mxu1 %v2390_v49  ;;  %2745 = vmatprep.mubr.f32.mxu1 %v2459_v6  ;;  %v2382_v12 = vmax.f32 %v9181_v50, 0.0  ;;  %v9182_v49 = vld [vmem:[#allocation211_spill] sm:$0xff]  ;;  %v9192_v50 = vld [vmem:[#allocation201_spill] sm:$0xff] }
 0x3c4   : > { %2683 = vmatprep.subr.mxu1 %v2389_v46  ;;  %v2381_v6 = vmax.f32 %v9182_v49, 0.0  ;;  %v2380_v46 = vmax.f32 %v9183_v20, 0.0  ;;  %v9189_v49 = vld [vmem:[#allocation204_spill] sm:$0xff]  ;;  %v9194_v20 = vld [vmem:[#allocation199_spill] sm:$0xff] }
 0x3c5   : > { %2684 = vmatpush1.msra.mxu1 %v2388_v17  ;;  %v2379_v17 = vmax.f32 %v9184_v40, 0.0  ;;  %v9191_v40 = vld [vmem:[#allocation202_spill] sm:$0xff] }
 0x3c6   : > { %2685 = vmatprep.subr.mxu1 %v2387_v36  ;;  %v2378_v36 = vmax.f32 %v9185_v37, 0.0  ;;  %v9196_v37 = vld [vmem:[#allocation197_spill] sm:$0xff] }
 0x3c7   : > { %2686 = vmatpush1.msra.mxu1 %v2386_v52  ;;  %v2377_v52 = vmax.f32 %v9186_v18, 0.0  ;;  %v9193_v18 = vld [vmem:[#allocation200_spill] sm:$0xff] }
 0x3c8   : > { %2687 = vmatprep.subr.mxu1 %v2385_v1  ;;  %v2376_v1 = vmax.f32 %v9187_v11, 0.0  ;;  %v9198_v11 = vld [vmem:[#allocation195_spill] sm:$0xff] }
 0x3c9   : > { %2688 = vmatpush1.msra.mxu1 %v2384_v3  ;;  %v2375_v3 = vmax.f32 %v9188_v15, 0.0  ;;  %v9195_v15 = vld [vmem:[#allocation198_spill] sm:$0xff] }
 0x3ca   : > { %2689 = vmatprep.subr.mxu1 %v2383_v61  ;;  %v2374_v61 = vmax.f32 %v9189_v49, 0.0  ;;  %v9200_v49 = vld [vmem:[#allocation193_spill] sm:$0xff] }
 0x3cb   : > { %2690 = vmatpush1.msra.mxu1 %v2382_v12  ;;  %v2373_v12 = vmax.f32 %v9190_v14, 0.0  ;;  %v9197_v14 = vld [vmem:[#allocation196_spill] sm:$0xff] }
 0x3cc   : > { %2691 = vmatprep.subr.mxu1 %v2381_v6  ;;  %v2372_v6 = vmax.f32 %v9191_v40, 0.0  ;;  %v9202_v40 = vld [vmem:[#allocation191_spill] sm:$0xff] }
 0x3cd   : > { %2692 = vmatpush1.msra.mxu1 %v2380_v46  ;;  %v2371_v46 = vmax.f32 %v9192_v50, 0.0  ;;  %v9199_v50 = vld [vmem:[#allocation194_spill] sm:$0xff] }
 0x3ce   : > { %2693 = vmatprep.subr.mxu1 %v2379_v17  ;;  %v2370_v17 = vmax.f32 %v9193_v18, 0.0  ;;  %v9204_v18 = vld [vmem:[#allocation248_spill] sm:$0xff] }
 0x3cf   : > { %2694 = vmatpush1.msra.mxu1 %v2378_v36  ;;  %v2369_v36 = vmax.f32 %v9194_v20, 0.0  ;;  %v9201_v20 = vld [vmem:[#allocation192_spill] sm:$0xff] }
 0x3d0   : > { %2695 = vmatprep.subr.mxu1 %v2377_v52  ;;  %v2368_v52 = vmax.f32 %v9195_v15, 0.0 }
 0x3d1   : > { %2696 = vmatpush1.msra.mxu1 %v2376_v1  ;;  %v2367_v1 = vmax.f32 %v9196_v37, 0.0  ;;  %v9203_v37 = vld [vmem:[#allocation190_spill] sm:$0xff] }
 0x3d2   : > { %2697 = vmatprep.subr.mxu1 %v2375_v3  ;;  %v2366_v3 = vmax.f32 %v9197_v14, 0.0 }
 0x3d3   : > { %2698 = vmatpush1.msra.mxu1 %v2374_v61  ;;  %v2365_v61 = vmax.f32 %v9198_v11, 0.0  ;;  %v9205_v11 = vld [vmem:[#allocation246_spill] sm:$0xff] }
 0x3d4   : > { %2699 = vmatprep.subr.mxu1 %v2373_v12  ;;  %v2364_v12 = vmax.f32 %v9199_v50, 0.0 }
 0x3d5   : > { %2700 = vmatpush1.msra.mxu1 %v2372_v6  ;;  %v2363_v6 = vmax.f32 %v9200_v49, 0.0 }
 0x3d6   : > { %2701 = vmatprep.subr.mxu1 %v2371_v46  ;;  %v2362_v46 = vmax.f32 %v9201_v20, 0.0 }
 0x3d7   : > { %2702 = vmatpush1.msra.mxu1 %v2370_v17  ;;  %v2361_v17 = vmax.f32 %v9202_v40, 0.0 }
 0x3d8   : > { %2703 = vmatprep.subr.mxu1 %v2369_v36  ;;  %v2360_v36 = vmax.f32 %v9203_v37, 0.0 }
 0x3d9   : > { %2704 = vmatpush1.msra.mxu1 %v2368_v52  ;;  %v2423_v52 = vmax.f32 %v9204_v18, 0.0  ;;  %v9206_v18 = vld [vmem:[#allocation229_spill] sm:$0xff] }
 0x3da   : > { %2705 = vmatprep.subr.mxu1 %v2367_v1  ;;  %v2422_v1 = vmax.f32 %v6411_v63, 0.0 }
 0x3db   : > { %2706 = vmatpush1.msra.mxu1 %v2366_v3  ;;  %v2421_v3 = vmax.f32 %v9205_v11, 0.0  ;;  %v9207_v11 = vld [vmem:[#allocation224_spill] sm:$0xff] }
 0x3dc   : > { %2707 = vmatprep.subr.mxu1 %v2365_v61  ;;  %v2420_v61 = vmax.f32 %v6407_v41, 0.0 }
 0x3dd   : > { %2708 = vmatpush1.msra.mxu1 %v2364_v12  ;;  %v2419_v12 = vmax.f32 %v6405_v48, 0.0  ;;  %v2396_v48 = vmax.f32 %v9207_v11, 0.0 }
 0x3de   : > { %2709 = vmatprep.subr.mxu1 %v2363_v6  ;;  %v2418_v6 = vmax.f32 %v6403_v60, 0.0 }
 0x3df   : > { %2710 = vmatpush1.msra.mxu1 %v2362_v46  ;;  %v2417_v46 = vmax.f32 %v6401_v47, 0.0 }
 0x3e0   : > { %2711 = vmatprep.subr.mxu1 %v2361_v17  ;;  %v2416_v17 = vmax.f32 %v6399_v39, 0.0 }
 0x3e1   : > { %2712 = vmatpush1.msra.mxu1 %v2360_v36  ;;  %v2415_v36 = vmax.f32 %v6397_v32, 0.0 }
 0x3e2   : > { %2713 = vmatprep.subr.mxu1 %v2423_v52  ;;  %v2414_v52 = vmax.f32 %v6395_v38, 0.0 }
 0x3e3   : > { %2714 = vmatpush2.msra.mxu1 %v2422_v1  ;;  %v2413_v1 = vmax.f32 %v6393_v51, 0.0 }
 0x3e4   : > { %2715 = vmatprep.subr.mxu1 %v2421_v3  ;;  %v2412_v3 = vmax.f32 %v6391_v42, 0.0 }
 0x3e5   : > { %2716 = vmatpush2.msra.mxu1 %v2420_v61  ;;  %v2411_v61 = vmax.f32 %v6389_v23, 0.0 }
 0x3e6   : > { %2717 = vmatprep.subr.mxu1 %v2419_v12  ;;  %v2410_v12 = vmax.f32 %v6387_v56, 0.0 }
 0x3e7   : > { %2718 = vmatpush2.msra.mxu1 %v2418_v6  ;;  %v2409_v6 = vmax.f32 %v6385_v5, 0.0 }
 0x3e8   : > { %2719 = vmatprep.subr.mxu1 %v2417_v46  ;;  %v2408_v46 = vmax.f32 %v6383_v45, 0.0 }
 0x3e9   : > { %2720 = vmatpush2.msra.mxu1 %v2416_v17  ;;  %v2407_v17 = vmax.f32 %v6381_v54, 0.0 }
 0x3ea   : > { %2721 = vmatprep.subr.mxu1 %v2415_v36  ;;  %v2406_v36 = vmax.f32 %v6375_v53, 0.0 }
 0x3eb   : > { %2722 = vmatpush2.msra.mxu1 %v2414_v52  ;;  %v2405_v52 = vmax.f32 %v6369_v57, 0.0 }
 0x3ec   : > { %2723 = vmatprep.subr.mxu1 %v2413_v1  ;;  %v2404_v1 = vmax.f32 %v9206_v18, 0.0 }
 0x3ed   : > { %2724 = vmatpush2.msra.mxu1 %v2412_v3  ;;  %v2403_v3 = vmax.f32 %v6357_v58, 0.0 }
 0x3ee   : > { %2725 = vmatprep.subr.mxu1 %v2411_v61  ;;  %v2402_v61 = vmax.f32 %v6351_v59, 0.0 }
 0x3ef   : > { %2726 = vmatpush2.msra.mxu1 %v2410_v12  ;;  %v2401_v12 = vmax.f32 %v6345_v2, 0.0 }
 0x3f0   : > { %2727 = vmatprep.subr.mxu1 %v2409_v6  ;;  %v2400_v6 = vmax.f32 %v6339_v44, 0.0 }
 0x3f1   : > { %2728 = vmatpush2.msra.mxu1 %v2408_v46  ;;  %v2399_v46 = vmax.f32 %v6333_v35, 0.0  ;;  %v2426_v35 = vstv %s2425_s17  ;;  %s4600_s17 = scalar_lea.vmem %s8204_s30, 16384 }
 0x3f2   : > { %2729 = vmatprep.subr.mxu1 %v2407_v17  ;;  %v2398_v17 = vmax.f32 %v6327_v26, 0.0  ;;  %p4601_p12 = scmp.ne.s32.totalorder %s8204_s30, %s4600_s17  ;;  %p4608_p2 = scmp.lt.s32.totalorder %s4606_s28, %s4600_s17 }
 0x3f3   : > { %2730 = vmatpush2.msra.mxu1 %v2406_v36  ;;  %v2397_v36 = vmax.f32 %v6321_v62, 0.0 }
 0x3f4   : > { %2731 = vmatprep.subr.mxu1 %v2405_v52  ;;  %v2454_v52 = vsub.s32 6, %v6464_v43  ;;  %p4602_p13 = pnand %p4601_p12, %p4788_p4  ;;  %p4609_p3 = por %p4608_p2, %p4607_p1 }
 0x3f5   : > { %2732 = vmatpush2.msra.mxu1 %v2404_v1  ;;  %v9208_v1 = vld [vmem:[#allocation223_spill] sm:$0xff] }
 0x3f6   : > { %2733 = vmatprep.subr.mxu1 %v2403_v3  ;;  %v2395_v47 = vmax.f32 %v9208_v1, 0.0  ;;  %v2394_v3 = vmax.f32 %v6303_v55, 0.0  ;;  %p4603_p0 = pneg %p4602_p13 }
 0x3f7   : > { %2734 = vmatpush2.msra.mxu1 %v2402_v61  ;;  %v9209_v61 = vld [vmem:[#allocation222_spill] sm:$0xff] }
 0x3f8   : > { %2735 = vmatprep.subr.mxu1 %v2401_v12  ;;  %v2393_v32 = vmax.f32 %v9209_v61, 0.0  ;;  %v4599_v12 = vld [vmem:[%s8306_s2] sm:$0xff]  ;;  %p4610_p5 = pnand %p4609_p3, %p4603_p0 }
 0x3f9   : > { %2736 = vmatpush2.msra.mxu1 %v2400_v6  ;;  %v2455_v6 = vrot.slane %v4599_v12, %v2454_v52 }
 0x3fa   : > { %2737 = vmatprep.subr.mxu1 %v2399_v46  ;;  %v2392_v46 = vmax.f32 %v6291_v29, 0.0 }
 0x3fb   : > { %2738 = vmatpush2.msra.mxu1 %v2398_v17  ;;  %v1946_v17 = vpop.f32.mrf.mxu1 }
 0x3fc   : > { %2739 = vmatprep.subr.mxu1 %v2397_v36 }
 0x3fd   : > { %2740 = vmatpush2.msra.mxu1 %v2396_v48  ;;  %v1948_v51 = vpop.f32.mrf.mxu1 }
 0x3fe   : > { %2741 = vmatprep.subr.mxu1 %v2395_v47 }
 0x3ff   : > { %2742 = vmatpush2.msra.mxu1 %v2394_v3  ;;  %v2017_v36 = vpop.f32.mrf.mxu1 }
 0x400   : > { %2743 = vmatprep.subr.mxu1 %v2393_v32  ;;  %v2018_v56 = vadd.f32 %v2017_v36, %v1946_v17 }
 0x401   : > { %2744 = vmatpush2.msra.mxu1 %v2392_v46  ;;  %v2019_v23 = vpop.f32.mrf.mxu1 }
 0x402   : > { %2746 = vmatmul.mubr.f32.vlgmr.msra.gmra.mxu1 %v2455_v6 }
 0x403   : > { %v2088_v5 = vpop.f32.mrf.mxu1 }
 0x404   : > { %v2089_v45 = vadd.f32 %v2088_v5, %v2018_v56 }
 0x405   : > { %v2090_v48 = vpop.f32.mrf.mxu1 }
 0x407   : > { %v2159_v54 = vpop.f32.mrf.mxu1 }
 0x408   : > { %v2160_v53 = vadd.f32 %v2159_v54, %v2089_v45 }
 0x409   : > { %v2161_v57 = vpop.f32.mrf.mxu1 }
 0x40b   : > { %v2534_v47 = vpop.f32.mrf.mxu1 }
 0x40c   : > { %v2535_v62 = vadd.f32 %v2534_v47, %v2426_v35 }
 0x40d   : > { %v2536_v58 = vpop.f32.mrf.mxu1 }
 0x40e   : > { %v2537_v3 = vadd.f32 %v2536_v58, %v2426_v35  ;;  %v2020_v58 = vadd.f32 %v2019_v23, %v1948_v51  ;;  %v4710_v23 = vmov 1966171168  }
 0x40f   : > { %v3946_v5 = vunpack.c.l.s4 %v4710_v23  ;;  %v9219_v23 = vld [vmem:[#allocation46_spill] sm:$0xff] }
 0x442   : > { %v2605_v2 = vpop.f32.mrf.mxu1 }
 0x443   : > { %v2606_v32 = vadd.f32 %v2605_v2, %v2535_v62  ;;  %v2091_v62 = vadd.f32 %v2090_v48, %v2020_v58 }
 0x444   : > { %v2607_v52 = vpop.f32.mrf.mxu1 }
 0x445   : > { %v2608_v6 = vadd.f32 %v2607_v52, %v2537_v3  ;;  %v2164_v52 = vmax.f32 %v2160_v53, 1e-24 }
 0x482   : > { %v2676_v12 = vpop.f32.mrf.mxu1 }
 0x483   : > { %v2677_v1 = vadd.f32 %v2676_v12, %v2606_v32 }
 0x484   : > { %v2678_v46 = vpop.f32.mrf.mxu1 }
 0x485   : > { %v2679_v49 = vadd.f32 %v2678_v46, %v2608_v6  ;;  %v3947_v46 = vunpack.c.0.s8 %v3946_v5 }
 0x4c2   : > { %v2747_v61 = vpop.f32.mrf.mxu1 }
 0x4c3   : > { %v2748_v40 = vadd.f32 %v2747_v61, %v2677_v1  ;;  %v2162_v1 = vadd.f32 %v2161_v57, %v2091_v62 }
 0x4c4   : > { %v2749_v63 = vpop.f32.mrf.mxu1 }
 0x4c5   : > { %v2754_v41 = vmin.f32 %v2748_v40, 20.0  ;;  %v2750_v60 = vadd.f32 %v2749_v63, %v2679_v49  ;;  %v2165_v63 = vmax.f32 %v2162_v1, 1e-24  ;;  %vm2752_vm3 = vcmp.gt.f32.partialorder %v2748_v40, 20.0  ;;  %v9211_v1 = vld [vmem:[#allocation30_spill] sm:$0xff] }
 0x4c7   : > { %v2756_v39 = vmul.f32 1.442695, %v2754_v41  ;;  %v2755_v38 = vmin.f32 %v2750_v60, 20.0  ;;  %vm2753_vm5 = vcmp.gt.f32.partialorder %v2750_v60, 20.0 }
 0x4c9   : > { %4587 = vpow2.f32 %v2756_v39  ;;  %v2758_v42 = vmul.f32 1.442695, %v2755_v38 }
 0x4cb   : > { %4589 = vpow2.f32 %v2758_v42 }
 0x4d6   : > { %v4588_v47 = vpop.eup %4587 }
 0x4d7   : > { %v2760_v2 = vadd.f32 1.0, %v4588_v47  ;;  %v2763_v41 = vmul.f32 -0.5, %v4588_v47  ;;  %v2766_v42 = vand.u32 2147483647, %v4588_v47 }
 0x4d8   : > { %v4590_v35 = vpop.eup %4589 }
 0x4d9   : > { %4591 = vlog2.f32 %v2760_v2  ;;  %v2769_v12 = vadd.f32 1.0, %v4590_v35  ;;  %v2772_v49 = vmul.f32 -0.5, %v4590_v35  ;;  %v2764_v39 = vadd.f32 1.0, %v2763_v41  ;;  %v9213_v41 = vld [vmem:[#allocation34_spill] sm:$0xff] }
 0x4da   : > { %v2775_v54 = vand.u32 2147483647, %v4590_v35  ;;  %vm2767_vm2 = vcmp.lt.f32.partialorder %v2766_v42, 0.0004427343  ;;  %v6774_v2 = vsub.s32 %v3947_v46, %v6464_v43  ;;  %v9216_v42 = vld [vmem:[#allocation40_spill] sm:$0xff] }
 0x4db   : > { %4593 = vlog2.f32 %v2769_v12  ;;  %v2773_v38 = vadd.f32 1.0, %v2772_v49  ;;  %v2765_v51 = vmul.f32 %v4588_v47, %v2764_v39  ;;  %v9214_v49 = vld [vmem:[#allocation36_spill] sm:$0xff]  ;;  %v9215_v39 = vld [vmem:[#allocation38_spill] sm:$0xff] }
 0x4dc   : > { %4595 = vrsqrt.f32 %v2164_v52  ;;  %vm2776_vm4 = vcmp.lt.f32.partialorder %v2775_v54, 0.0004427343  ;;  %9210 = vst [vmem:[#allocation17_spill] sm:$0xff] %v6774_v2  ;;  %v9245_v52 = vld [vmem:[#allocation74_spill] sm:$0xff] }
 0x4dd   : > { %4597 = vrsqrt.f32 %v2165_v63  ;;  %v2774_v17 = vmul.f32 %v4590_v35, %v2773_v38  ;;  %v9212_v63 = vld [vmem:[#allocation32_spill] sm:$0xff] }
 0x4e6   : > { %v4592_v56 = vpop.eup %4591 }
 0x4e7   : > { %v2762_v45 = vmul.f32 0.6931472, %v4592_v56  ;;  %v9217_v56 = vld [vmem:[#allocation42_spill] sm:$0xff] }
 0x4e8   : > { %v4594_v61 = vpop.eup %4593 }
 0x4e9   : > { %v2768_v53 = vsel %vm2767_vm2, %v2765_v51, %v2762_v45  ;;  %v2771_v57 = vmul.f32 0.6931472, %v4594_v61  ;;  %v4596_v36 = vpop.eup %4595  ;;  %v9218_v45 = vld [vmem:[#allocation44_spill] sm:$0xff] }
 0x4ea   : > { %v6765_v48 = vsel %vm2752_vm3, %v2748_v40, %v2768_v53  ;;  %v4598_v58 = vpop.eup %4597  ;;  %v9220_v61 = vld [vmem:[#allocation48_spill] sm:$0xff] }
 0x4eb   : > { %v2780_v3 = vmul.f32 %v4596_v36, %v6765_v48  ;;  %v2777_v32 = vsel %vm2776_vm4, %v2774_v17, %v2771_v57  ;;  %v9221_v57 = vld [vmem:[#allocation50_spill] sm:$0xff]  ;;  %v9223_v36 = vld [vmem:[#allocation52_spill] sm:$0xff] }
 0x4ec   : > { %v6771_v47 = vsel %vm2753_vm5, %v2750_v60, %v2777_v32  ;;  %v9225_v32 = vld [vmem:[#allocation54_spill] sm:$0xff] }
 0x4ed   : > { %v6769_v6 = vrot.slane %v2780_v3, %v6550_v30  ;;  %v6785_v62 = vmul.f32 %v4598_v58, %v6771_v47  ;;  %v9227_v58 = vld [vmem:[#allocation56_spill] sm:$0xff] }
 0x4ef   : > { %v6778_v35 = vmul.f32 %v6769_v6, %v9013_v21  ;;  %v6782_v40 = vmul.f32 %v6769_v6, %v9011_v27  ;;  %v6791_v60 = vmul.f32 %v6769_v6, %v9009_v33  ;;  %v6795_v43 = vmul.f32 %v6769_v6, %v9007_v0 }
 0x4f0   : > { %v6799_v21 = vmul.f32 %v6769_v6, %v9005_v8  ;;  %v6803_v27 = vmul.f32 %v6769_v6, %v5097_v4  ;;  %v6807_v12 = vmul.f32 %v6769_v6, %v5106_v7  ;;  %v6811_v33 = vmul.f32 %v6769_v6, %v5115_v10 }
 0x4f1   : > { %v6815_v0 = vmul.f32 %v6769_v6, %v5124_v13  ;;  %v6819_v8 = vmul.f32 %v6769_v6, %v5133_v16  ;;  %v6823_v4 = vmul.f32 %v6769_v6, %v5142_v19  ;;  %v6827_v7 = vmul.f32 %v6769_v6, %v5151_v22 }
 0x4f2   : > { %v6831_v10 = vmul.f32 %v6769_v6, %v5160_v25  ;;  %v6835_v13 = vmul.f32 %v6769_v6, %v5169_v28  ;;  %v6839_v16 = vmul.f32 %v6769_v6, %v5178_v31  ;;  %v6843_v19 = vmul.f32 %v6769_v6, %v5187_v34 }
 0x4f3   : > { %v6847_v22 = vmul.f32 %v6769_v6, %v9211_v1  ;;  %v6851_v25 = vmul.f32 %v6769_v6, %v9212_v63  ;;  %v6855_v28 = vmul.f32 %v6769_v6, %v9213_v41  ;;  %v6859_v31 = vmul.f32 %v6769_v6, %v9214_v49  ;;  %v9229_v63 = vld [vmem:[#allocation58_spill] sm:$0xff]  ;;  %v9231_v49 = vld [vmem:[#allocation60_spill] sm:$0xff] }
 0x4f4   : > { %v6863_v34 = vmul.f32 %v6769_v6, %v9215_v39  ;;  %v6867_v38 = vmul.f32 %v6769_v6, %v9216_v42  ;;  %v6871_v54 = vmul.f32 %v6769_v6, %v9217_v56  ;;  %v6875_v51 = vmul.f32 %v6769_v6, %v9218_v45  ;;  %v9233_v42 = vld [vmem:[#allocation62_spill] sm:$0xff]  ;;  %v9235_v45 = vld [vmem:[#allocation64_spill] sm:$0xff] }
 0x4f5   : > { %v6879_v5 = vmul.f32 %v6769_v6, %v9219_v23  ;;  %v6883_v53 = vmul.f32 %v6769_v6, %v9220_v61  ;;  %v6887_v17 = vmul.f32 %v6769_v6, %v9221_v57  ;;  %v6891_v3 = vmul.f32 %v6769_v6, %v9223_v36  ;;  %v9237_v61 = vld [vmem:[#allocation66_spill] sm:$0xff]  ;;  %v9239_v36 = vld [vmem:[#allocation68_spill] sm:$0xff] }
 0x4f6   : > { %v6895_v46 = vmul.f32 %v6769_v6, %v9225_v32  ;;  %v6899_v1 = vmul.f32 %v6769_v6, %v9227_v58  ;;  %v6903_v41 = vmul.f32 %v6769_v6, %v9229_v63  ;;  %v6907_v39 = vmul.f32 %v6769_v6, %v9231_v49  ;;  %v9241_v58 = vld [vmem:[#allocation70_spill] sm:$0xff]  ;;  %v9243_v49 = vld [vmem:[#allocation72_spill] sm:$0xff] }
 0x4f7   : > { %9222 = vst [vmem:[#allocation15_spill] sm:$0xff] %v6887_v17  ;;  %9224 = vst [vmem:[#allocation13_spill] sm:$0xff] %v6891_v3  ;;  %v6911_v56 = vmul.f32 %v6769_v6, %v9233_v42  ;;  %v6915_v23 = vmul.f32 %v6769_v6, %v9235_v45  ;;  %v6919_v57 = vmul.f32 %v6769_v6, %v9237_v61  ;;  %v9447_v3 = vld [vmem:[#allocation59_spill] sm:$0xff]  ;;  %v9449_v17 = vld [vmem:[#allocation61_spill] sm:$0xff] }
 0x4f8   : > { %9226 = vst [vmem:[#allocation11_spill] sm:$0xff] %v6895_v46  ;;  %9228 = vst [vmem:[#allocation9_spill] sm:$0xff] %v6899_v1  ;;  %v6923_v32 = vmul.f32 %v6769_v6, %v9239_v36  ;;  %v6927_v63 = vmul.f32 %v6769_v6, %v9241_v58  ;;  %v6931_v42 = vmul.f32 %v6769_v6, %v9243_v49  ;;  %v9443_v1 = vld [vmem:[#allocation55_spill] sm:$0xff]  ;;  %v9445_v46 = vld [vmem:[#allocation57_spill] sm:$0xff] }
 0x4f9   : > { %9230 = vst [vmem:[#allocation160_spill] sm:$0xff] %v6903_v41  ;;  %9232 = vst [vmem:[#allocation158_spill] sm:$0xff] %v6907_v39  ;;  %v6935_v45 = vmul.f32 %v6769_v6, %v9245_v52  ;;  %v9439_v39 = vld [vmem:[#allocation51_spill] sm:$0xff]  ;;  %v9441_v41 = vld [vmem:[#allocation53_spill] sm:$0xff] }
 0x4fa   : > { %9234 = vst [vmem:[#allocation198_spill] sm:$0xff] %v6911_v56  ;;  %9236 = vst [vmem:[#allocation196_spill] sm:$0xff] %v6915_v23  ;;  %v9247_v23 = vld [vmem:[#allocation76_spill] sm:$0xff]  ;;  %v9438_v56 = vld [vmem:[#allocation49_spill] sm:$0xff] }
 0x4fb   : > { %9238 = vst [vmem:[#allocation194_spill] sm:$0xff] %v6919_v57  ;;  %9240 = vst [vmem:[#allocation192_spill] sm:$0xff] %v6923_v32  ;;  %v6939_v61 = vmul.f32 %v6769_v6, %v9247_v23  ;;  %v9249_v57 = vld [vmem:[#allocation78_spill] sm:$0xff]  ;;  %v9251_v32 = vld [vmem:[#allocation80_spill] sm:$0xff] }
 0x4fc   : > { %9242 = vst [vmem:[#allocation190_spill] sm:$0xff] %v6927_v63  ;;  %9244 = vst [vmem:[#allocation229_spill] sm:$0xff] %v6931_v42  ;;  %v6943_v36 = vmul.f32 %v6769_v6, %v9249_v57  ;;  %v6947_v58 = vmul.f32 %v6769_v6, %v9251_v32  ;;  %v9253_v63 = vld [vmem:[#allocation82_spill] sm:$0xff]  ;;  %v9255_v42 = vld [vmem:[#allocation84_spill] sm:$0xff] }
 0x4fd   : > { %9246 = vst [vmem:[#allocation224_spill] sm:$0xff] %v6935_v45  ;;  %9248 = vst [vmem:[#allocation30_spill] sm:$0xff] %v6939_v61  ;;  %v6951_v49 = vmul.f32 %v6769_v6, %v9253_v63  ;;  %v6955_v52 = vmul.f32 %v6769_v6, %v9255_v42  ;;  %v9257_v45 = vld [vmem:[#allocation86_spill] sm:$0xff]  ;;  %v9259_v61 = vld [vmem:[#allocation88_spill] sm:$0xff] }
 0x4fe   : > { %9250 = vst [vmem:[#allocation32_spill] sm:$0xff] %v6943_v36  ;;  %9252 = vst [vmem:[#allocation34_spill] sm:$0xff] %v6947_v58  ;;  %v6959_v23 = vmul.f32 %v6769_v6, %v9257_v45  ;;  %v6963_v57 = vmul.f32 %v6769_v6, %v9259_v61  ;;  %v9261_v36 = vld [vmem:[#allocation90_spill] sm:$0xff]  ;;  %v9263_v58 = vld [vmem:[#allocation92_spill] sm:$0xff] }
 0x4ff   : > { %9254 = vst [vmem:[#allocation36_spill] sm:$0xff] %v6951_v49  ;;  %9256 = vst [vmem:[#allocation38_spill] sm:$0xff] %v6955_v52  ;;  %v6967_v32 = vmul.f32 %v6769_v6, %v9261_v36  ;;  %v6971_v63 = vmul.f32 %v6769_v6, %v9263_v58  ;;  %v9265_v49 = vld [vmem:[#allocation94_spill] sm:$0xff]  ;;  %v9267_v52 = vld [vmem:[#allocation96_spill] sm:$0xff] }
 0x500   : > { %9258 = vst [vmem:[#allocation40_spill] sm:$0xff] %v6959_v23  ;;  %9260 = vst [vmem:[#allocation42_spill] sm:$0xff] %v6963_v57  ;;  %v6975_v42 = vmul.f32 %v6769_v6, %v9265_v49  ;;  %v6979_v45 = vmul.f32 %v6769_v6, %v9267_v52  ;;  %v9269_v23 = vld [vmem:[#allocation98_spill] sm:$0xff]  ;;  %v9271_v57 = vld [vmem:[#allocation100_spill] sm:$0xff] }
 0x501   : > { %9262 = vst [vmem:[#allocation44_spill] sm:$0xff] %v6967_v32  ;;  %9264 = vst [vmem:[#allocation46_spill] sm:$0xff] %v6971_v63  ;;  %v6983_v61 = vmul.f32 %v6769_v6, %v9269_v23  ;;  %v6987_v36 = vmul.f32 %v6769_v6, %v9271_v57  ;;  %v9273_v32 = vld [vmem:[#allocation102_spill] sm:$0xff]  ;;  %v9275_v63 = vld [vmem:[#allocation104_spill] sm:$0xff] }
 0x502   : > { %9266 = vst [vmem:[#allocation48_spill] sm:$0xff] %v6975_v42  ;;  %9268 = vst [vmem:[#allocation50_spill] sm:$0xff] %v6979_v45  ;;  %v6991_v58 = vmul.f32 %v6769_v6, %v9273_v32  ;;  %v6995_v49 = vmul.f32 %v6769_v6, %v9275_v63  ;;  %v9277_v42 = vld [vmem:[#allocation106_spill] sm:$0xff]  ;;  %v9279_v45 = vld [vmem:[#allocation108_spill] sm:$0xff] }
 0x503   : > { %9270 = vst [vmem:[#allocation52_spill] sm:$0xff] %v6983_v61  ;;  %9272 = vst [vmem:[#allocation54_spill] sm:$0xff] %v6987_v36  ;;  %v6999_v52 = vmul.f32 %v6769_v6, %v9277_v42  ;;  %v7003_v23 = vmul.f32 %v6769_v6, %v9279_v45  ;;  %v9281_v61 = vld [vmem:[#allocation110_spill] sm:$0xff]  ;;  %v9283_v36 = vld [vmem:[#allocation112_spill] sm:$0xff] }
 0x504   : > { %9274 = vst [vmem:[#allocation56_spill] sm:$0xff] %v6991_v58  ;;  %9276 = vst [vmem:[#allocation58_spill] sm:$0xff] %v6995_v49  ;;  %v7007_v57 = vmul.f32 %v6769_v6, %v9281_v61  ;;  %v7011_v32 = vmul.f32 %v6769_v6, %v9283_v36  ;;  %v9285_v58 = vld [vmem:[#allocation114_spill] sm:$0xff]  ;;  %v9287_v49 = vld [vmem:[#allocation116_spill] sm:$0xff] }
 0x505   : > { %9278 = vst [vmem:[#allocation60_spill] sm:$0xff] %v6999_v52  ;;  %9280 = vst [vmem:[#allocation62_spill] sm:$0xff] %v7003_v23  ;;  %v7015_v63 = vmul.f32 %v6769_v6, %v9285_v58  ;;  %v7019_v42 = vmul.f32 %v6769_v6, %v9287_v49  ;;  %v9289_v52 = vld [vmem:[#allocation118_spill] sm:$0xff]  ;;  %v9291_v23 = vld [vmem:[#allocation120_spill] sm:$0xff] }
 0x506   : > { %9282 = vst [vmem:[#allocation64_spill] sm:$0xff] %v7007_v57  ;;  %9284 = vst [vmem:[#allocation66_spill] sm:$0xff] %v7011_v32  ;;  %v7023_v45 = vmul.f32 %v6769_v6, %v9289_v52  ;;  %v7027_v61 = vmul.f32 %v6769_v6, %v9291_v23  ;;  %v9293_v57 = vld [vmem:[#allocation122_spill] sm:$0xff]  ;;  %v9295_v32 = vld [vmem:[#allocation124_spill] sm:$0xff] }
 0x507   : > { %9286 = vst [vmem:[#allocation68_spill] sm:$0xff] %v7015_v63  ;;  %9288 = vst [vmem:[#allocation70_spill] sm:$0xff] %v7019_v42  ;;  %v7031_v36 = vmul.f32 %v6769_v6, %v9293_v57  ;;  %v7035_v58 = vmul.f32 %v6769_v6, %v9295_v32  ;;  %v9297_v63 = vld [vmem:[#allocation126_spill] sm:$0xff]  ;;  %v9299_v42 = vld [vmem:[#allocation128_spill] sm:$0xff] }
 0x508   : > { %9290 = vst [vmem:[#allocation72_spill] sm:$0xff] %v7023_v45  ;;  %9292 = vst [vmem:[#allocation74_spill] sm:$0xff] %v7027_v61  ;;  %v7039_v49 = vmul.f32 %v6769_v6, %v9297_v63  ;;  %v7043_v52 = vmul.f32 %v6769_v6, %v9299_v42  ;;  %v9301_v45 = vld [vmem:[#allocation130_spill] sm:$0xff]  ;;  %v9303_v61 = vld [vmem:[#allocation132_spill] sm:$0xff] }
 0x509   : > { %9294 = vst [vmem:[#allocation76_spill] sm:$0xff] %v7031_v36  ;;  %9296 = vst [vmem:[#allocation78_spill] sm:$0xff] %v7035_v58  ;;  %v7047_v23 = vmul.f32 %v6769_v6, %v9301_v45  ;;  %v7051_v57 = vmul.f32 %v6769_v6, %v9303_v61  ;;  %v9305_v36 = vld [vmem:[#allocation134_spill] sm:$0xff]  ;;  %v9307_v58 = vld [vmem:[#allocation136_spill] sm:$0xff] }
 0x50a   : > { %9298 = vst [vmem:[#allocation80_spill] sm:$0xff] %v7039_v49  ;;  %9300 = vst [vmem:[#allocation82_spill] sm:$0xff] %v7043_v52  ;;  %v7055_v32 = vmul.f32 %v6769_v6, %v9305_v36  ;;  %v7059_v63 = vmul.f32 %v6769_v6, %v9307_v58  ;;  %v9309_v49 = vld [vmem:[#allocation138_spill] sm:$0xff]  ;;  %v9311_v52 = vld [vmem:[#allocation140_spill] sm:$0xff] }
 0x50b   : > { %9302 = vst [vmem:[#allocation84_spill] sm:$0xff] %v7047_v23  ;;  %9304 = vst [vmem:[#allocation86_spill] sm:$0xff] %v7051_v57  ;;  %v7063_v42 = vmul.f32 %v6769_v6, %v9309_v49  ;;  %v7067_v45 = vmul.f32 %v6769_v6, %v9311_v52  ;;  %v9313_v23 = vld [vmem:[#allocation142_spill] sm:$0xff]  ;;  %v9315_v57 = vld [vmem:[#allocation144_spill] sm:$0xff] }
 0x50c   : > { %9306 = vst [vmem:[#allocation88_spill] sm:$0xff] %v7055_v32  ;;  %9308 = vst [vmem:[#allocation90_spill] sm:$0xff] %v7059_v63  ;;  %v7071_v61 = vmul.f32 %v6769_v6, %v9313_v23  ;;  %v7075_v36 = vmul.f32 %v6769_v6, %v9315_v57  ;;  %v9317_v32 = vld [vmem:[#allocation146_spill] sm:$0xff]  ;;  %v9319_v63 = vld [vmem:[#allocation148_spill] sm:$0xff] }
 0x50d   : > { %9310 = vst [vmem:[#allocation92_spill] sm:$0xff] %v7063_v42  ;;  %9312 = vst [vmem:[#allocation94_spill] sm:$0xff] %v7067_v45  ;;  %v7079_v58 = vmul.f32 %v6769_v6, %v9317_v32  ;;  %v7083_v49 = vmul.f32 %v6769_v6, %v9319_v63  ;;  %v9321_v42 = vld [vmem:[#allocation150_spill] sm:$0xff]  ;;  %v9323_v45 = vld [vmem:[#allocation152_spill] sm:$0xff]  ;;  %v7103_v63 = vmul.f32 %v6769_v6, %v9172_v9 }
 0x50e   : > { %9314 = vst [vmem:[#allocation96_spill] sm:$0xff] %v7071_v61  ;;  %9316 = vst [vmem:[#allocation98_spill] sm:$0xff] %v7075_v36  ;;  %v7087_v52 = vmul.f32 %v6769_v6, %v9321_v42  ;;  %v7091_v23 = vmul.f32 %v6769_v6, %v9323_v45  ;;  %v9325_v61 = vld [vmem:[#allocation154_spill] sm:$0xff]  ;;  %v9327_v36 = vld [vmem:[#allocation156_spill] sm:$0xff]  ;;  %v7107_v42 = vmul.f32 %v6769_v6, %v9170_v24 }
 0x50f   : > { %9318 = vst [vmem:[#allocation100_spill] sm:$0xff] %v7079_v58  ;;  %9320 = vst [vmem:[#allocation102_spill] sm:$0xff] %v7083_v49  ;;  %v7095_v57 = vmul.f32 %v6769_v6, %v9325_v61  ;;  %v7099_v32 = vmul.f32 %v6769_v6, %v9327_v36  ;;  %v9436_v49 = vld [vmem:[#allocation45_spill] sm:$0xff]  ;;  %v9437_v58 = vld [vmem:[#allocation47_spill] sm:$0xff] }
 0x510   : > { %9322 = vst [vmem:[#allocation104_spill] sm:$0xff] %v7087_v52  ;;  %9324 = vst [vmem:[#allocation106_spill] sm:$0xff] %v7091_v23  ;;  %v9331_v52 = vld [vmem:[#allocation162_spill] sm:$0xff]  ;;  %v9333_v23 = vld [vmem:[#allocation164_spill] sm:$0xff] }
 0x511   : > { %9326 = vst [vmem:[#allocation108_spill] sm:$0xff] %v7095_v57  ;;  %9328 = vst [vmem:[#allocation110_spill] sm:$0xff] %v7099_v32  ;;  %v7111_v45 = vmul.f32 %v6769_v6, %v9331_v52  ;;  %v7115_v61 = vmul.f32 %v6769_v6, %v9333_v23  ;;  %v9335_v57 = vld [vmem:[#allocation166_spill] sm:$0xff]  ;;  %v9337_v32 = vld [vmem:[#allocation168_spill] sm:$0xff] }
 0x512   : > { %9329 = vst [vmem:[#allocation112_spill] sm:$0xff] %v7103_v63  ;;  %9330 = vst [vmem:[#allocation114_spill] sm:$0xff] %v7107_v42  ;;  %v7119_v36 = vmul.f32 %v6769_v6, %v9335_v57  ;;  %v7123_v9 = vmul.f32 %v6769_v6, %v9337_v32  ;;  %v9339_v63 = vld [vmem:[#allocation170_spill] sm:$0xff]  ;;  %v9341_v42 = vld [vmem:[#allocation172_spill] sm:$0xff] }
 0x513   : > { %9332 = vst [vmem:[#allocation116_spill] sm:$0xff] %v7111_v45  ;;  %9334 = vst [vmem:[#allocation118_spill] sm:$0xff] %v7115_v61  ;;  %v7127_v24 = vmul.f32 %v6769_v6, %v9339_v63  ;;  %v7131_v52 = vmul.f32 %v6769_v6, %v9341_v42  ;;  %v9343_v45 = vld [vmem:[#allocation174_spill] sm:$0xff]  ;;  %v9345_v61 = vld [vmem:[#allocation176_spill] sm:$0xff] }
 0x514   : > { %9336 = vst [vmem:[#allocation120_spill] sm:$0xff] %v7119_v36  ;;  %9338 = vst [vmem:[#allocation122_spill] sm:$0xff] %v7123_v9  ;;  %v7135_v23 = vmul.f32 %v6769_v6, %v9343_v45  ;;  %v7139_v57 = vmul.f32 %v6769_v6, %v9345_v61  ;;  %v9347_v36 = vld [vmem:[#allocation178_spill] sm:$0xff]  ;;  %v9349_v9 = vld [vmem:[#allocation180_spill] sm:$0xff] }
 0x515   : > { %9340 = vst [vmem:[#allocation124_spill] sm:$0xff] %v7127_v24  ;;  %9342 = vst [vmem:[#allocation126_spill] sm:$0xff] %v7131_v52  ;;  %v7143_v32 = vmul.f32 %v6769_v6, %v9347_v36  ;;  %v7147_v63 = vmul.f32 %v6769_v6, %v9349_v9  ;;  %v9351_v24 = vld [vmem:[#allocation182_spill] sm:$0xff]  ;;  %v9353_v52 = vld [vmem:[#allocation184_spill] sm:$0xff]  ;;  %v7167_v9 = vmul.f32 %v6769_v6, %v9203_v37 }
 0x516   : > { %9344 = vst [vmem:[#allocation128_spill] sm:$0xff] %v7135_v23  ;;  %9346 = vst [vmem:[#allocation130_spill] sm:$0xff] %v7139_v57  ;;  %v7151_v42 = vmul.f32 %v6769_v6, %v9351_v24  ;;  %v7155_v45 = vmul.f32 %v6769_v6, %v9353_v52  ;;  %v9355_v23 = vld [vmem:[#allocation186_spill] sm:$0xff]  ;;  %v9357_v57 = vld [vmem:[#allocation188_spill] sm:$0xff]  ;;  %v7171_v24 = vmul.f32 %v6769_v6, %v9201_v20 }
 0x517   : > { %9348 = vst [vmem:[#allocation132_spill] sm:$0xff] %v7143_v32  ;;  %9350 = vst [vmem:[#allocation134_spill] sm:$0xff] %v7147_v63  ;;  %v7159_v61 = vmul.f32 %v6769_v6, %v9355_v23  ;;  %v7163_v36 = vmul.f32 %v6769_v6, %v9357_v57  ;;  %v7175_v52 = vmul.f32 %v6769_v6, %v9199_v50  ;;  %v9434_v63 = vld [vmem:[#allocation41_spill] sm:$0xff]  ;;  %v9435_v32 = vld [vmem:[#allocation43_spill] sm:$0xff] }
 0x518   : > { %9352 = vst [vmem:[#allocation136_spill] sm:$0xff] %v7151_v42  ;;  %9354 = vst [vmem:[#allocation138_spill] sm:$0xff] %v7155_v45  ;;  %v7179_v23 = vmul.f32 %v6769_v6, %v9197_v14  ;;  %v7183_v57 = vmul.f32 %v6769_v6, %v9195_v15  ;;  %v9432_v45 = vld [vmem:[#allocation37_spill] sm:$0xff]  ;;  %v9433_v42 = vld [vmem:[#allocation39_spill] sm:$0xff] }
 0x519   : > { %9356 = vst [vmem:[#allocation140_spill] sm:$0xff] %v7159_v61  ;;  %9358 = vst [vmem:[#allocation142_spill] sm:$0xff] %v7163_v36  ;;  %v9364_v36 = vld [vmem:[#allocation200_spill] sm:$0xff]  ;;  %v9431_v61 = vld [vmem:[#allocation35_spill] sm:$0xff] }
 0x51a   : > { %9359 = vst [vmem:[#allocation144_spill] sm:$0xff] %v7167_v9  ;;  %9360 = vst [vmem:[#allocation146_spill] sm:$0xff] %v7171_v24  ;;  %v7187_v37 = vmul.f32 %v6769_v6, %v9364_v36  ;;  %v9366_v9 = vld [vmem:[#allocation202_spill] sm:$0xff]  ;;  %v9368_v24 = vld [vmem:[#allocation204_spill] sm:$0xff] }
 0x51b   : > { %9361 = vst [vmem:[#allocation148_spill] sm:$0xff] %v7175_v52  ;;  %9362 = vst [vmem:[#allocation150_spill] sm:$0xff] %v7179_v23  ;;  %v7191_v20 = vmul.f32 %v6769_v6, %v9366_v9  ;;  %v7195_v50 = vmul.f32 %v6769_v6, %v9368_v24  ;;  %v9370_v52 = vld [vmem:[#allocation206_spill] sm:$0xff]  ;;  %v9372_v23 = vld [vmem:[#allocation208_spill] sm:$0xff] }
 0x51c   : > { %9363 = vst [vmem:[#allocation152_spill] sm:$0xff] %v7183_v57  ;;  %9365 = vst [vmem:[#allocation154_spill] sm:$0xff] %v7187_v37  ;;  %v7199_v14 = vmul.f32 %v6769_v6, %v9370_v52  ;;  %v7203_v15 = vmul.f32 %v6769_v6, %v9372_v23  ;;  %v9374_v57 = vld [vmem:[#allocation210_spill] sm:$0xff]  ;;  %v9376_v37 = vld [vmem:[#allocation212_spill] sm:$0xff] }
 0x51d   : > { %9367 = vst [vmem:[#allocation156_spill] sm:$0xff] %v7191_v20  ;;  %9369 = vst [vmem:[#allocation162_spill] sm:$0xff] %v7195_v50  ;;  %v7207_v36 = vmul.f32 %v6769_v6, %v9374_v57  ;;  %v7211_v9 = vmul.f32 %v6769_v6, %v9376_v37  ;;  %v9378_v20 = vld [vmem:[#allocation214_spill] sm:$0xff]  ;;  %v9380_v50 = vld [vmem:[#allocation216_spill] sm:$0xff]  ;;  %v7231_v37 = vmul.f32 %v6769_v6, %v6291_v29 }
 0x51e   : > { %9371 = vst [vmem:[#allocation164_spill] sm:$0xff] %v7199_v14  ;;  %9373 = vst [vmem:[#allocation166_spill] sm:$0xff] %v7203_v15  ;;  %v7215_v24 = vmul.f32 %v6769_v6, %v9378_v20  ;;  %v7219_v52 = vmul.f32 %v6769_v6, %v9380_v50  ;;  %v9382_v14 = vld [vmem:[#allocation218_spill] sm:$0xff]  ;;  %v9384_v15 = vld [vmem:[#allocation220_spill] sm:$0xff]  ;;  %v7235_v20 = vmul.f32 %v6769_v6, %v6303_v55 }
 0x51f   : > { %9375 = vst [vmem:[#allocation168_spill] sm:$0xff] %v7207_v36  ;;  %9377 = vst [vmem:[#allocation170_spill] sm:$0xff] %v7211_v9  ;;  %v7223_v23 = vmul.f32 %v6769_v6, %v9382_v14  ;;  %v7227_v57 = vmul.f32 %v6769_v6, %v9384_v15  ;;  %v7239_v50 = vmul.f32 %v6769_v6, %v9207_v11  ;;  %v9429_v9 = vld [vmem:[#allocation31_spill] sm:$0xff]  ;;  %v9430_v36 = vld [vmem:[#allocation33_spill] sm:$0xff] }
 0x520   : > { %9379 = vst [vmem:[#allocation172_spill] sm:$0xff] %v7215_v24  ;;  %9381 = vst [vmem:[#allocation174_spill] sm:$0xff] %v7219_v52  ;;  %v7243_v14 = vmul.f32 %v6769_v6, %v6327_v26  ;;  %v7247_v15 = vmul.f32 %v6769_v6, %v6339_v44  ;;  %v7251_v29 = vmul.f32 %v6769_v6, %v6351_v59  ;;  %v9427_v52 = vld [vmem:[#allocation28_spill] sm:$0xff]  ;;  %v9428_v24 = vld [vmem:[#allocation29_spill] sm:$0xff] }
 0x521   : > { %9383 = vst [vmem:[#allocation176_spill] sm:$0xff] %v7223_v23  ;;  %9385 = vst [vmem:[#allocation178_spill] sm:$0xff] %v7227_v57  ;;  %v7255_v55 = vmul.f32 %v6769_v6, %v9206_v18  ;;  %v9425_v57 = vld [vmem:[#allocation26_spill] sm:$0xff]  ;;  %v9426_v23 = vld [vmem:[#allocation27_spill] sm:$0xff] }
 0x522   : > { %9386 = vst [vmem:[#allocation180_spill] sm:$0xff] %v7231_v37  ;;  %9387 = vst [vmem:[#allocation182_spill] sm:$0xff] %v7235_v20  ;;  %v9393_v20 = vld [vmem:[#allocation231_spill] sm:$0xff]  ;;  %v9424_v37 = vld [vmem:[#allocation25_spill] sm:$0xff] }
 0x523   : > { %9388 = vst [vmem:[#allocation184_spill] sm:$0xff] %v7239_v50  ;;  %9389 = vst [vmem:[#allocation186_spill] sm:$0xff] %v7243_v14  ;;  %v7259_v11 = vmul.f32 %v6769_v6, %v9393_v20  ;;  %v9395_v50 = vld [vmem:[#allocation233_spill] sm:$0xff]  ;;  %v9397_v14 = vld [vmem:[#allocation235_spill] sm:$0xff] }
 0x524   : > { %9390 = vst [vmem:[#allocation188_spill] sm:$0xff] %v7247_v15  ;;  %9391 = vst [vmem:[#allocation200_spill] sm:$0xff] %v7251_v29  ;;  %v7263_v26 = vmul.f32 %v6769_v6, %v9395_v50  ;;  %v7267_v44 = vmul.f32 %v6769_v6, %v9397_v14  ;;  %v9399_v15 = vld [vmem:[#allocation237_spill] sm:$0xff]  ;;  %v9401_v29 = vld [vmem:[#allocation239_spill] sm:$0xff]  ;;  %v7283_v50 = vrot.slane %v6785_v62, %v6550_v30 }
 0x525   : > { %9392 = vst [vmem:[#allocation202_spill] sm:$0xff] %v7255_v55  ;;  %9394 = vst [vmem:[#allocation204_spill] sm:$0xff] %v7259_v11  ;;  %v7271_v59 = vmul.f32 %v6769_v6, %v9399_v15  ;;  %v7275_v18 = vmul.f32 %v6769_v6, %v9401_v29  ;;  %v9403_v55 = vld [vmem:[#allocation241_spill] sm:$0xff]  ;;  %v9413_v30 = vld [vmem:[#allocation10_spill] sm:$0xff] }
 0x526   : > { %9396 = vst [vmem:[#allocation206_spill] sm:$0xff] %v7263_v26  ;;  %9398 = vst [vmem:[#allocation208_spill] sm:$0xff] %v7267_v44  ;;  %v7279_v20 = vmul.f32 %v6769_v6, %v9403_v55  ;;  %v9405_v26 = vld [vmem:[#allocation243_spill] sm:$0xff]  ;;  %v9407_v44 = vld [vmem:[#allocation245_spill] sm:$0xff]  ;;  %v9411_v55 = vcombine.low %v6765_v48, %v6771_v47  ;;  %v7305_v62 = vmul.f32 %v7283_v50, %v9413_v30 }
 0x527   : > { %9400 = vst [vmem:[#allocation210_spill] sm:$0xff] %v7271_v59  ;;  %9402 = vst [vmem:[#allocation212_spill] sm:$0xff] %v7275_v18  ;;  %v7287_v14 = vmul.f32 %v6769_v6, %v9405_v26  ;;  %v7291_v15 = vmul.f32 %v6769_v6, %v9407_v44  ;;  %v9409_v59 = vld [vmem:[#allocation247_spill] sm:$0xff]  ;;  %v9414_v26 = vld [vmem:[#allocation12_spill] sm:$0xff] }
 0x528   : > { %9404 = vst [vmem:[#allocation214_spill] sm:$0xff] %v7279_v20  ;;  %v7295_v29 = vmul.f32 %v6769_v6, %v9409_v59  ;;  %v7301_v20 = vrot.slane %v9411_v55, %v6774_v2  ;;  %v9415_v44 = vld [vmem:[#allocation14_spill] sm:$0xff]  ;;  %v9416_v6 = vld [vmem:[#allocation16_spill] sm:$0xff]  ;;  %v9418_v47 = vld [vmem:[#allocation19_spill] sm:$0xff] }
 0x529   : > { %9406 = vst [vmem:[#allocation216_spill] sm:$0xff] %v7287_v14  ;;  %9408 = vst [vmem:[#allocation218_spill] sm:$0xff] %v7291_v15  ;;  %v7309_v14 = vmul.f32 %v7283_v50, %v9414_v26  ;;  %v7313_v15 = vmul.f32 %v7283_v50, %v9415_v44  ;;  %v7317_v59 = vmul.f32 %v7283_v50, %v9416_v6  ;;  %v9419_v30 = vld [vmem:[#allocation20_spill] sm:$0xff]  ;;  %v9421_v2 = vld [vmem:[#allocation22_spill] sm:$0xff] }
 0x52a   : > { %9410 = vst [vmem:[#allocation220_spill] sm:$0xff] %v7295_v29  ;;  %9412 = vst [vmem:[#allocation231_spill] sm:$0xff] %v7301_v20  ;;  %v9417_v29 = vld [vmem:[#allocation18_spill] sm:$0xff]  ;;  %v7325_v55 = vmul.f32 %v7283_v50, %v9418_v47  ;;  %v7329_v26 = vmul.f32 %v7283_v50, %v9419_v30  ;;  %v9420_v20 = vld [vmem:[#allocation21_spill] sm:$0xff]  ;;  %v7337_v6 = vmul.f32 %v7283_v50, %v9421_v2 }
 0x52b   : > { %v7321_v48 = vmul.f32 %v7283_v50, %v9417_v29  ;;  %v7333_v44 = vmul.f32 %v7283_v50, %v9420_v20  ;;  %v9422_v18 = vld [vmem:[#allocation23_spill] sm:$0xff]  ;;  %v9423_v11 = vld [vmem:[#allocation24_spill] sm:$0xff]  ;;  %v7349_v30 = vmul.f32 %v7283_v50, %v9424_v37  ;;  %v7353_v20 = vmul.f32 %v7283_v50, %v9425_v57 }
 0x52c   : > { %v7341_v29 = vmul.f32 %v7283_v50, %v9422_v18  ;;  %v7345_v47 = vmul.f32 %v7283_v50, %v9423_v11  ;;  %v7357_v2 = vmul.f32 %v7283_v50, %v9426_v23  ;;  %v7361_v18 = vmul.f32 %v7283_v50, %v9427_v52 }
 0x52d   : > { %v7365_v11 = vmul.f32 %v7283_v50, %v9428_v24  ;;  %v7369_v37 = vmul.f32 %v7283_v50, %v9429_v9  ;;  %v7373_v57 = vmul.f32 %v7283_v50, %v9430_v36  ;;  %v7377_v23 = vmul.f32 %v7283_v50, %v9431_v61 }
 0x52e   : > { %v7381_v52 = vmul.f32 %v7283_v50, %v9432_v45  ;;  %v7385_v24 = vmul.f32 %v7283_v50, %v9433_v42  ;;  %v7389_v9 = vmul.f32 %v7283_v50, %v9434_v63  ;;  %v7393_v36 = vmul.f32 %v7283_v50, %v9435_v32 }
 0x52f   : > { %v7397_v61 = vmul.f32 %v7283_v50, %v9436_v49  ;;  %v7401_v45 = vmul.f32 %v7283_v50, %v9437_v58  ;;  %v7405_v42 = vmul.f32 %v7283_v50, %v9438_v56  ;;  %v7409_v63 = vmul.f32 %v7283_v50, %v9439_v39 }
 0x530   : > { %v7413_v32 = vmul.f32 %v7283_v50, %v9441_v41  ;;  %v7417_v49 = vmul.f32 %v7283_v50, %v9443_v1  ;;  %v7421_v58 = vmul.f32 %v7283_v50, %v9445_v46  ;;  %v7425_v56 = vmul.f32 %v7283_v50, %v9447_v3 }
 0x531   : > { %9440 = vst [vmem:[#allocation233_spill] sm:$0xff] %v7409_v63  ;;  %v7429_v39 = vmul.f32 %v7283_v50, %v9449_v17  ;;  %v9451_v63 = vld [vmem:[#allocation63_spill] sm:$0xff] }
 0x532   : > { %9442 = vst [vmem:[#allocation235_spill] sm:$0xff] %v7413_v32  ;;  %9444 = vst [vmem:[#allocation237_spill] sm:$0xff] %v7417_v49  ;;  %v7433_v41 = vmul.f32 %v7283_v50, %v9451_v63  ;;  %v9453_v32 = vld [vmem:[#allocation65_spill] sm:$0xff]  ;;  %v9455_v49 = vld [vmem:[#allocation67_spill] sm:$0xff] }
 0x533   : > { %9446 = vst [vmem:[#allocation239_spill] sm:$0xff] %v7421_v58  ;;  %9448 = vst [vmem:[#allocation241_spill] sm:$0xff] %v7425_v56  ;;  %v7437_v1 = vmul.f32 %v7283_v50, %v9453_v32  ;;  %v7441_v46 = vmul.f32 %v7283_v50, %v9455_v49  ;;  %v9457_v58 = vld [vmem:[#allocation69_spill] sm:$0xff]  ;;  %v9459_v56 = vld [vmem:[#allocation71_spill] sm:$0xff] }
 0x534   : > { %9450 = vst [vmem:[#allocation243_spill] sm:$0xff] %v7429_v39  ;;  %9452 = vst [vmem:[#allocation245_spill] sm:$0xff] %v7433_v41  ;;  %v7445_v3 = vmul.f32 %v7283_v50, %v9457_v58  ;;  %v7449_v17 = vmul.f32 %v7283_v50, %v9459_v56  ;;  %v9461_v39 = vld [vmem:[#allocation73_spill] sm:$0xff]  ;;  %v9463_v41 = vld [vmem:[#allocation75_spill] sm:$0xff] }
 0x535   : > { %9454 = vst [vmem:[#allocation247_spill] sm:$0xff] %v7437_v1  ;;  %9456 = vst [vmem:[#allocation10_spill] sm:$0xff] %v7441_v46  ;;  %v7453_v63 = vmul.f32 %v7283_v50, %v9461_v39  ;;  %v7457_v32 = vmul.f32 %v7283_v50, %v9463_v41  ;;  %v9465_v1 = vld [vmem:[#allocation77_spill] sm:$0xff]  ;;  %v9467_v46 = vld [vmem:[#allocation79_spill] sm:$0xff] }
 0x536   : > { %9458 = vst [vmem:[#allocation12_spill] sm:$0xff] %v7445_v3  ;;  %9460 = vst [vmem:[#allocation14_spill] sm:$0xff] %v7449_v17  ;;  %v7461_v49 = vmul.f32 %v7283_v50, %v9465_v1  ;;  %v7465_v58 = vmul.f32 %v7283_v50, %v9467_v46  ;;  %v9469_v3 = vld [vmem:[#allocation81_spill] sm:$0xff]  ;;  %v9471_v17 = vld [vmem:[#allocation83_spill] sm:$0xff] }
 0x537   : > { %9462 = vst [vmem:[#allocation16_spill] sm:$0xff] %v7453_v63  ;;  %9464 = vst [vmem:[#allocation18_spill] sm:$0xff] %v7457_v32  ;;  %v7469_v56 = vmul.f32 %v7283_v50, %v9469_v3  ;;  %v7473_v39 = vmul.f32 %v7283_v50, %v9471_v17  ;;  %v9473_v63 = vld [vmem:[#allocation85_spill] sm:$0xff]  ;;  %v9475_v32 = vld [vmem:[#allocation87_spill] sm:$0xff] }
 0x538   : > { %9466 = vst [vmem:[#allocation19_spill] sm:$0xff] %v7461_v49  ;;  %9468 = vst [vmem:[#allocation20_spill] sm:$0xff] %v7465_v58  ;;  %v7477_v41 = vmul.f32 %v7283_v50, %v9473_v63  ;;  %v7481_v1 = vmul.f32 %v7283_v50, %v9475_v32  ;;  %v9477_v49 = vld [vmem:[#allocation89_spill] sm:$0xff]  ;;  %v9479_v58 = vld [vmem:[#allocation91_spill] sm:$0xff] }
 0x539   : > { %9470 = vst [vmem:[#allocation21_spill] sm:$0xff] %v7469_v56  ;;  %9472 = vst [vmem:[#allocation22_spill] sm:$0xff] %v7473_v39  ;;  %v7485_v46 = vmul.f32 %v7283_v50, %v9477_v49  ;;  %v7489_v3 = vmul.f32 %v7283_v50, %v9479_v58  ;;  %v9481_v56 = vld [vmem:[#allocation93_spill] sm:$0xff]  ;;  %v9483_v39 = vld [vmem:[#allocation95_spill] sm:$0xff] }
 0x53a   : > { %9474 = vst [vmem:[#allocation23_spill] sm:$0xff] %v7477_v41  ;;  %9476 = vst [vmem:[#allocation24_spill] sm:$0xff] %v7481_v1  ;;  %v7493_v17 = vmul.f32 %v7283_v50, %v9481_v56  ;;  %v7497_v63 = vmul.f32 %v7283_v50, %v9483_v39  ;;  %v9485_v41 = vld [vmem:[#allocation97_spill] sm:$0xff]  ;;  %v9487_v1 = vld [vmem:[#allocation99_spill] sm:$0xff] }
 0x53b   : > { %9478 = vst [vmem:[#allocation25_spill] sm:$0xff] %v7485_v46  ;;  %9480 = vst [vmem:[#allocation26_spill] sm:$0xff] %v7489_v3  ;;  %v7501_v32 = vmul.f32 %v7283_v50, %v9485_v41  ;;  %v7505_v49 = vmul.f32 %v7283_v50, %v9487_v1  ;;  %v9489_v46 = vld [vmem:[#allocation101_spill] sm:$0xff]  ;;  %v9491_v3 = vld [vmem:[#allocation103_spill] sm:$0xff] }
 0x53c   : > { %9482 = vst [vmem:[#allocation27_spill] sm:$0xff] %v7493_v17  ;;  %9484 = vst [vmem:[#allocation28_spill] sm:$0xff] %v7497_v63  ;;  %v7509_v58 = vmul.f32 %v7283_v50, %v9489_v46  ;;  %v7513_v56 = vmul.f32 %v7283_v50, %v9491_v3  ;;  %v9493_v17 = vld [vmem:[#allocation105_spill] sm:$0xff]  ;;  %v9495_v63 = vld [vmem:[#allocation107_spill] sm:$0xff] }
 0x53d   : > { %9486 = vst [vmem:[#allocation29_spill] sm:$0xff] %v7501_v32  ;;  %9488 = vst [vmem:[#allocation31_spill] sm:$0xff] %v7505_v49  ;;  %v7517_v39 = vmul.f32 %v7283_v50, %v9493_v17  ;;  %v7521_v41 = vmul.f32 %v7283_v50, %v9495_v63  ;;  %v9497_v32 = vld [vmem:[#allocation109_spill] sm:$0xff]  ;;  %v9499_v49 = vld [vmem:[#allocation111_spill] sm:$0xff] }
 0x53e   : > { %9490 = vst [vmem:[#allocation33_spill] sm:$0xff] %v7509_v58  ;;  %9492 = vst [vmem:[#allocation35_spill] sm:$0xff] %v7513_v56  ;;  %v7525_v1 = vmul.f32 %v7283_v50, %v9497_v32  ;;  %v7529_v46 = vmul.f32 %v7283_v50, %v9499_v49  ;;  %v9501_v58 = vld [vmem:[#allocation113_spill] sm:$0xff]  ;;  %v9503_v56 = vld [vmem:[#allocation115_spill] sm:$0xff] }
 0x53f   : > { %9494 = vst [vmem:[#allocation37_spill] sm:$0xff] %v7517_v39  ;;  %9496 = vst [vmem:[#allocation39_spill] sm:$0xff] %v7521_v41  ;;  %v7533_v3 = vmul.f32 %v7283_v50, %v9501_v58  ;;  %v7537_v17 = vmul.f32 %v7283_v50, %v9503_v56  ;;  %v9505_v39 = vld [vmem:[#allocation117_spill] sm:$0xff]  ;;  %v9507_v41 = vld [vmem:[#allocation119_spill] sm:$0xff] }
 0x540   : > { %9498 = vst [vmem:[#allocation41_spill] sm:$0xff] %v7525_v1  ;;  %9500 = vst [vmem:[#allocation43_spill] sm:$0xff] %v7529_v46  ;;  %v7541_v63 = vmul.f32 %v7283_v50, %v9505_v39  ;;  %v7545_v32 = vmul.f32 %v7283_v50, %v9507_v41  ;;  %v9509_v1 = vld [vmem:[#allocation121_spill] sm:$0xff]  ;;  %v9511_v46 = vld [vmem:[#allocation123_spill] sm:$0xff] }
 0x541   : > { %9502 = vst [vmem:[#allocation45_spill] sm:$0xff] %v7533_v3  ;;  %9504 = vst [vmem:[#allocation47_spill] sm:$0xff] %v7537_v17  ;;  %v7549_v49 = vmul.f32 %v7283_v50, %v9509_v1  ;;  %v7553_v58 = vmul.f32 %v7283_v50, %v9511_v46  ;;  %v9513_v3 = vld [vmem:[#allocation125_spill] sm:$0xff]  ;;  %v9515_v17 = vld [vmem:[#allocation127_spill] sm:$0xff] }
 0x542   : > { %9506 = vst [vmem:[#allocation49_spill] sm:$0xff] %v7541_v63  ;;  %9508 = vst [vmem:[#allocation51_spill] sm:$0xff] %v7545_v32  ;;  %v7557_v56 = vmul.f32 %v7283_v50, %v9513_v3  ;;  %v7561_v39 = vmul.f32 %v7283_v50, %v9515_v17  ;;  %v9517_v63 = vld [vmem:[#allocation129_spill] sm:$0xff]  ;;  %v9519_v32 = vld [vmem:[#allocation131_spill] sm:$0xff] }
 0x543   : > { %9510 = vst [vmem:[#allocation53_spill] sm:$0xff] %v7549_v49  ;;  %9512 = vst [vmem:[#allocation55_spill] sm:$0xff] %v7553_v58  ;;  %v7565_v41 = vmul.f32 %v7283_v50, %v9517_v63  ;;  %v7569_v1 = vmul.f32 %v7283_v50, %v9519_v32  ;;  %v9521_v49 = vld [vmem:[#allocation133_spill] sm:$0xff]  ;;  %v9523_v58 = vld [vmem:[#allocation135_spill] sm:$0xff] }
 0x544   : > { %9514 = vst [vmem:[#allocation57_spill] sm:$0xff] %v7557_v56  ;;  %9516 = vst [vmem:[#allocation59_spill] sm:$0xff] %v7561_v39  ;;  %v7573_v46 = vmul.f32 %v7283_v50, %v9521_v49  ;;  %v7577_v3 = vmul.f32 %v7283_v50, %v9523_v58  ;;  %v9525_v56 = vld [vmem:[#allocation137_spill] sm:$0xff]  ;;  %v9527_v39 = vld [vmem:[#allocation139_spill] sm:$0xff] }
 0x545   : > { %9518 = vst [vmem:[#allocation61_spill] sm:$0xff] %v7565_v41  ;;  %9520 = vst [vmem:[#allocation63_spill] sm:$0xff] %v7569_v1  ;;  %v7581_v17 = vmul.f32 %v7283_v50, %v9525_v56  ;;  %v7585_v63 = vmul.f32 %v7283_v50, %v9527_v39  ;;  %v9529_v41 = vld [vmem:[#allocation141_spill] sm:$0xff]  ;;  %v9531_v1 = vld [vmem:[#allocation143_spill] sm:$0xff] }
 0x546   : > { %9522 = vst [vmem:[#allocation65_spill] sm:$0xff] %v7573_v46  ;;  %9524 = vst [vmem:[#allocation67_spill] sm:$0xff] %v7577_v3  ;;  %v7589_v32 = vmul.f32 %v7283_v50, %v9529_v41  ;;  %v7593_v49 = vmul.f32 %v7283_v50, %v9531_v1  ;;  %v9533_v46 = vld [vmem:[#allocation145_spill] sm:$0xff]  ;;  %v9535_v3 = vld [vmem:[#allocation147_spill] sm:$0xff] }
 0x547   : > { %9526 = vst [vmem:[#allocation69_spill] sm:$0xff] %v7581_v17  ;;  %9528 = vst [vmem:[#allocation71_spill] sm:$0xff] %v7585_v63  ;;  %v7597_v58 = vmul.f32 %v7283_v50, %v9533_v46  ;;  %v7601_v56 = vmul.f32 %v7283_v50, %v9535_v3  ;;  %v9537_v17 = vld [vmem:[#allocation149_spill] sm:$0xff]  ;;  %v9539_v63 = vld [vmem:[#allocation151_spill] sm:$0xff] }
 0x548   : > { %9530 = vst [vmem:[#allocation73_spill] sm:$0xff] %v7589_v32  ;;  %9532 = vst [vmem:[#allocation75_spill] sm:$0xff] %v7593_v49  ;;  %v7605_v39 = vmul.f32 %v7283_v50, %v9537_v17  ;;  %v7609_v41 = vmul.f32 %v7283_v50, %v9539_v63  ;;  %v9541_v32 = vld [vmem:[#allocation153_spill] sm:$0xff]  ;;  %v9543_v49 = vld [vmem:[#allocation155_spill] sm:$0xff] }
 0x549   : > { %9534 = vst [vmem:[#allocation77_spill] sm:$0xff] %v7597_v58  ;;  %9536 = vst [vmem:[#allocation79_spill] sm:$0xff] %v7601_v56  ;;  %v7613_v1 = vmul.f32 %v7283_v50, %v9541_v32  ;;  %v7617_v46 = vmul.f32 %v7283_v50, %v9543_v49  ;;  %v9545_v58 = vld [vmem:[#allocation157_spill] sm:$0xff]  ;;  %v9547_v56 = vld [vmem:[#allocation159_spill] sm:$0xff] }
 0x54a   : > { %9538 = vst [vmem:[#allocation81_spill] sm:$0xff] %v7605_v39  ;;  %9540 = vst [vmem:[#allocation83_spill] sm:$0xff] %v7609_v41  ;;  %v7621_v3 = vmul.f32 %v7283_v50, %v9545_v58  ;;  %v7625_v17 = vmul.f32 %v7283_v50, %v9547_v56  ;;  %v9549_v39 = vld [vmem:[#allocation161_spill] sm:$0xff]  ;;  %v9551_v41 = vld [vmem:[#allocation163_spill] sm:$0xff] }
 0x54b   : > { %9542 = vst [vmem:[#allocation85_spill] sm:$0xff] %v7613_v1  ;;  %9544 = vst [vmem:[#allocation87_spill] sm:$0xff] %v7617_v46  ;;  %v7629_v63 = vmul.f32 %v7283_v50, %v9549_v39  ;;  %v7633_v32 = vmul.f32 %v7283_v50, %v9551_v41  ;;  %v9553_v1 = vld [vmem:[#allocation165_spill] sm:$0xff]  ;;  %v9555_v46 = vld [vmem:[#allocation167_spill] sm:$0xff] }
 0x54c   : > { %9546 = vst [vmem:[#allocation89_spill] sm:$0xff] %v7621_v3  ;;  %9548 = vst [vmem:[#allocation91_spill] sm:$0xff] %v7625_v17  ;;  %v7637_v49 = vmul.f32 %v7283_v50, %v9553_v1  ;;  %v7641_v58 = vmul.f32 %v7283_v50, %v9555_v46  ;;  %v9557_v3 = vld [vmem:[#allocation169_spill] sm:$0xff]  ;;  %v9559_v17 = vld [vmem:[#allocation171_spill] sm:$0xff] }
 0x54d   : > { %9550 = vst [vmem:[#allocation93_spill] sm:$0xff] %v7629_v63  ;;  %9552 = vst [vmem:[#allocation95_spill] sm:$0xff] %v7633_v32  ;;  %v7645_v56 = vmul.f32 %v7283_v50, %v9557_v3  ;;  %v7649_v39 = vmul.f32 %v7283_v50, %v9559_v17  ;;  %v9561_v63 = vld [vmem:[#allocation173_spill] sm:$0xff]  ;;  %v9563_v32 = vld [vmem:[#allocation175_spill] sm:$0xff] }
 0x54e   : > { %9554 = vst [vmem:[#allocation97_spill] sm:$0xff] %v7637_v49  ;;  %9556 = vst [vmem:[#allocation99_spill] sm:$0xff] %v7641_v58  ;;  %v7653_v41 = vmul.f32 %v7283_v50, %v9561_v63  ;;  %v7657_v1 = vmul.f32 %v7283_v50, %v9563_v32  ;;  %v9565_v49 = vld [vmem:[#allocation177_spill] sm:$0xff]  ;;  %v9567_v58 = vld [vmem:[#allocation179_spill] sm:$0xff] }
 0x54f   : > { %9558 = vst [vmem:[#allocation101_spill] sm:$0xff] %v7645_v56  ;;  %9560 = vst [vmem:[#allocation103_spill] sm:$0xff] %v7649_v39  ;;  %v7661_v46 = vmul.f32 %v7283_v50, %v9565_v49  ;;  %v7665_v3 = vmul.f32 %v7283_v50, %v9567_v58  ;;  %v9569_v56 = vld [vmem:[#allocation181_spill] sm:$0xff]  ;;  %v9571_v39 = vld [vmem:[#allocation183_spill] sm:$0xff] }
 0x550   : > { %9562 = vst [vmem:[#allocation105_spill] sm:$0xff] %v7653_v41  ;;  %9564 = vst [vmem:[#allocation107_spill] sm:$0xff] %v7657_v1  ;;  %v7669_v17 = vmul.f32 %v7283_v50, %v9569_v56  ;;  %v7673_v63 = vmul.f32 %v7283_v50, %v9571_v39  ;;  %v9573_v41 = vld [vmem:[#allocation185_spill] sm:$0xff]  ;;  %v9575_v1 = vld [vmem:[#allocation187_spill] sm:$0xff] }
 0x551   : > { %9566 = vst [vmem:[#allocation109_spill] sm:$0xff] %v7661_v46  ;;  %9568 = vst [vmem:[#allocation111_spill] sm:$0xff] %v7665_v3  ;;  %v7677_v32 = vmul.f32 %v7283_v50, %v9573_v41  ;;  %v7681_v49 = vmul.f32 %v7283_v50, %v9575_v1  ;;  %v9577_v46 = vld [vmem:[#allocation189_spill] sm:$0xff]  ;;  %v9579_v3 = vld [vmem:[#allocation191_spill] sm:$0xff] }
 0x552   : > { %9570 = vst [vmem:[#allocation113_spill] sm:$0xff] %v7669_v17  ;;  %9572 = vst [vmem:[#allocation115_spill] sm:$0xff] %v7673_v63  ;;  %v7685_v58 = vmul.f32 %v7283_v50, %v9577_v46  ;;  %v7689_v56 = vmul.f32 %v7283_v50, %v9579_v3  ;;  %v9581_v17 = vld [vmem:[#allocation193_spill] sm:$0xff]  ;;  %v9583_v63 = vld [vmem:[#allocation195_spill] sm:$0xff] }
 0x553   : > { %9574 = vst [vmem:[#allocation117_spill] sm:$0xff] %v7677_v32  ;;  %9576 = vst [vmem:[#allocation119_spill] sm:$0xff] %v7681_v49  ;;  %v7693_v39 = vmul.f32 %v7283_v50, %v9581_v17  ;;  %v7697_v41 = vmul.f32 %v7283_v50, %v9583_v63  ;;  %v9585_v32 = vld [vmem:[#allocation197_spill] sm:$0xff]  ;;  %v9587_v46 = vld [vmem:[#allocation199_spill] sm:$0xff] }
 0x554   : > { %9578 = vst [vmem:[#allocation121_spill] sm:$0xff] %v7685_v58  ;;  %9580 = vst [vmem:[#allocation123_spill] sm:$0xff] %v7689_v56  ;;  %v7701_v1 = vmul.f32 %v7283_v50, %v9585_v32  ;;  %v7708_v58 = vmul.f32 %v7283_v50, %v9587_v46  ;;  %v9589_v3 = vld [vmem:[#allocation201_spill] sm:$0xff]  ;;  %v9591_v17 = vld [vmem:[#allocation203_spill] sm:$0xff] }
 0x555   : > { %9582 = vst [vmem:[#allocation125_spill] sm:$0xff] %v7693_v39  ;;  %9584 = vst [vmem:[#allocation127_spill] sm:$0xff] %v7697_v41  ;;  %v7712_v56 = vmul.f32 %v7283_v50, %v9589_v3  ;;  %v7716_v39 = vmul.f32 %v7283_v50, %v9591_v17  ;;  %v9593_v63 = vld [vmem:[#allocation205_spill] sm:$0xff]  ;;  %v9595_v32 = vld [vmem:[#allocation207_spill] sm:$0xff] }
 0x556   : > { %9586 = vst [vmem:[#allocation129_spill] sm:$0xff] %v7701_v1  ;;  %9588 = vst [vmem:[#allocation131_spill] sm:$0xff] %v7708_v58  ;;  %v7720_v41 = vmul.f32 %v7283_v50, %v9593_v63  ;;  %v7724_v1 = vmul.f32 %v7283_v50, %v9595_v32  ;;  %v9597_v49 = vld [vmem:[#allocation209_spill] sm:$0xff]  ;;  %v9599_v58 = vld [vmem:[#allocation211_spill] sm:$0xff] }
 0x557   : > { %9590 = vst [vmem:[#allocation133_spill] sm:$0xff] %v7712_v56  ;;  %9592 = vst [vmem:[#allocation135_spill] sm:$0xff] %v7716_v39  ;;  %v7728_v46 = vmul.f32 %v7283_v50, %v9597_v49  ;;  %v7732_v3 = vmul.f32 %v7283_v50, %v9599_v58  ;;  %v9601_v56 = vld [vmem:[#allocation213_spill] sm:$0xff]  ;;  %v9603_v39 = vld [vmem:[#allocation215_spill] sm:$0xff] }
 0x558   : > { %9594 = vst [vmem:[#allocation137_spill] sm:$0xff] %v7720_v41  ;;  %9596 = vst [vmem:[#allocation139_spill] sm:$0xff] %v7724_v1  ;;  %v7736_v17 = vmul.f32 %v7283_v50, %v9601_v56  ;;  %v7740_v63 = vmul.f32 %v7283_v50, %v9603_v39  ;;  %v9605_v41 = vld [vmem:[#allocation217_spill] sm:$0xff]  ;;  %v9607_v1 = vld [vmem:[#allocation219_spill] sm:$0xff] }
 0x559   : > { %9598 = vst [vmem:[#allocation141_spill] sm:$0xff] %v7728_v46  ;;  %9600 = vst [vmem:[#allocation143_spill] sm:$0xff] %v7732_v3  ;;  %v7744_v32 = vmul.f32 %v7283_v50, %v9605_v41  ;;  %v7748_v49 = vmul.f32 %v7283_v50, %v9607_v1  ;;  %v9609_v46 = vld [vmem:[#allocation221_spill] sm:$0xff]  ;;  %v9611_v3 = vld [vmem:[#allocation222_spill] sm:$0xff] }
 0x55a   : > { %9602 = vst [vmem:[#allocation145_spill] sm:$0xff] %v7736_v17  ;;  %9604 = vst [vmem:[#allocation147_spill] sm:$0xff] %v7740_v63  ;;  %v7752_v58 = vmul.f32 %v7283_v50, %v9609_v46  ;;  %v7757_v56 = vmul.f32 %v7283_v50, %v9611_v3  ;;  %v9613_v17 = vld [vmem:[#allocation223_spill] sm:$0xff]  ;;  %v9615_v63 = vld [vmem:[#allocation225_spill] sm:$0xff] }
 0x55b   : > { %9606 = vst [vmem:[#allocation149_spill] sm:$0xff] %v7744_v32  ;;  %9608 = vst [vmem:[#allocation151_spill] sm:$0xff] %v7748_v49  ;;  %v7761_v39 = vmul.f32 %v7283_v50, %v9613_v17  ;;  %v7765_v41 = vmul.f32 %v7283_v50, %v9615_v63  ;;  %v9617_v32 = vld [vmem:[#allocation226_spill] sm:$0xff]  ;;  %v9619_v49 = vld [vmem:[#allocation227_spill] sm:$0xff] }
 0x55c   : > { %9610 = vst [vmem:[#allocation153_spill] sm:$0xff] %v7752_v58  ;;  %9612 = vst [vmem:[#allocation155_spill] sm:$0xff] %v7757_v56  ;;  %v7769_v1 = vmul.f32 %v7283_v50, %v9617_v32  ;;  %v7773_v46 = vmul.f32 %v7283_v50, %v9619_v49  ;;  %v9621_v58 = vld [vmem:[#allocation228_spill] sm:$0xff]  ;;  %v9623_v56 = vld [vmem:[#allocation230_spill] sm:$0xff] }
 0x55d   : > { %9614 = vst [vmem:[#allocation157_spill] sm:$0xff] %v7761_v39  ;;  %9616 = vst [vmem:[#allocation159_spill] sm:$0xff] %v7765_v41  ;;  %v7777_v3 = vmul.f32 %v7283_v50, %v9621_v58  ;;  %v7781_v17 = vmul.f32 %v7283_v50, %v9623_v56  ;;  %v9625_v39 = vld [vmem:[#allocation232_spill] sm:$0xff]  ;;  %v9627_v41 = vld [vmem:[#allocation234_spill] sm:$0xff] }
 0x55e   : > { %9618 = vst [vmem:[#allocation161_spill] sm:$0xff] %v7769_v1  ;;  %9620 = vst [vmem:[#allocation163_spill] sm:$0xff] %v7773_v46  ;;  %v7785_v63 = vmul.f32 %v7283_v50, %v9625_v39  ;;  %v7789_v32 = vmul.f32 %v7283_v50, %v9627_v41  ;;  %v9629_v1 = vld [vmem:[#allocation236_spill] sm:$0xff]  ;;  %v9631_v46 = vld [vmem:[#allocation238_spill] sm:$0xff] }
 0x55f   : > { %9622 = vst [vmem:[#allocation165_spill] sm:$0xff] %v7777_v3  ;;  %9624 = vst [vmem:[#allocation167_spill] sm:$0xff] %v7781_v17  ;;  %v7793_v49 = vmul.f32 %v7283_v50, %v9629_v1  ;;  %v7797_v58 = vmul.f32 %v7283_v50, %v9631_v46  ;;  %v9632_v3 = vld [vmem:[#allocation240_spill] sm:$0xff]  ;;  %v9634_v17 = vld [vmem:[#allocation242_spill] sm:$0xff] }
 0x560   : > { %9626 = vst [vmem:[#allocation169_spill] sm:$0xff] %v7785_v63  ;;  %9628 = vst [vmem:[#allocation171_spill] sm:$0xff] %v7789_v32  ;;  %v7801_v56 = vmul.f32 %v7283_v50, %v9632_v3  ;;  %v7805_v39 = vmul.f32 %v7283_v50, %v9634_v17  ;;  %v9635_v63 = vld [vmem:[#allocation244_spill] sm:$0xff]  ;;  %v9636_v32 = vld [vmem:[#allocation246_spill] sm:$0xff]  ;;  %v4392_v3 = vpack.c.bf16 %v7305_v62, %v6778_v35 }
 0x561   : > { %9630 = vst [vmem:[#allocation173_spill] sm:$0xff] %v7793_v49  ;;  %v7809_v41 = vmul.f32 %v7283_v50, %v9635_v63  ;;  %v7813_v1 = vmul.f32 %v7283_v50, %v9636_v32  ;;  %v9638_v49 = vld [vmem:[#allocation248_spill] sm:$0xff]  ;;  %v4394_v17 = vpack.c.bf16 %v7313_v15, %v6791_v60  ;;  %v4395_v63 = vpack.c.bf16 %v7317_v59, %v6795_v43  ;;  %v9643_v15 = vld [vmem:[#allocation11_spill] sm:$0xff]  ;;  %v9644_v62 = vld [vmem:[#allocation237_spill] sm:$0xff] }
 0x562   : > { %9633 = vst [vmem:[#allocation175_spill] sm:$0xff] %v7801_v56  ;;  %v7817_v46 = vmul.f32 %v7283_v50, %v9638_v49  ;;  %v4393_v56 = vpack.c.bf16 %v7309_v14, %v6782_v40  ;;  %v4396_v32 = vpack.c.bf16 %v7321_v48, %v6799_v21  ;;  %v4398_v50 = vpack.c.bf16 %v7329_v26, %v6807_v12  ;;  %v9642_v14 = vld [vmem:[#allocation235_spill] sm:$0xff]  ;;  %v9645_v59 = vld [vmem:[#allocation9_spill] sm:$0xff] }
 0x563   : > { %9637 = vst [vmem:[#allocation177_spill] sm:$0xff] %v7813_v1  ;;  %v4397_v1 = vpack.c.bf16 %v7325_v55, %v6803_v27  ;;  %v4399_v35 = vpack.c.bf16 %v7333_v44, %v6811_v33  ;;  %v4400_v40 = vpack.c.bf16 %v7337_v6, %v6815_v0  ;;  %v4401_v60 = vpack.c.bf16 %v7341_v29, %v6819_v8  ;;  %v9646_v48 = vld [vmem:[#allocation239_spill] sm:$0xff]  ;;  %v9647_v55 = vld [vmem:[#allocation160_spill] sm:$0xff]  ;;  %v9648_v26 = vld [vmem:[#allocation241_spill] sm:$0xff] }
 0x564   : > { %v4402_v43 = vpack.c.bf16 %v7345_v47, %v6823_v4  ;;  %v4403_v21 = vpack.c.bf16 %v7349_v30, %v6827_v7  ;;  %3814 = vst [vmem:[%s7843_s3] sm:$0xff] %v4392_v3  ;;  %3815 = vst [vmem:[%s7843_s3 + $0x8] sm:$0xff] %v4393_v56  ;;  %v4404_v27 = vpack.c.bf16 %v7353_v20, %v6831_v10  ;;  %v9649_v6 = vld [vmem:[#allocation158_spill] sm:$0xff]  ;;  %v9650_v29 = vld [vmem:[#allocation243_spill] sm:$0xff] }
 0x565   : > { %3816 = vst [vmem:[%s7843_s3 + $0x10] sm:$0xff] %v4394_v17  ;;  %3817 = vst [vmem:[%s7843_s3 + $0x18] sm:$0xff] %v4395_v63  ;;  %v4405_v12 = vpack.c.bf16 %v7357_v2, %v6835_v13  ;;  %v4406_v33 = vpack.c.bf16 %v7361_v18, %v6839_v16  ;;  %v4407_v0 = vpack.c.bf16 %v7365_v11, %v6843_v19  ;;  %v9651_v30 = vld [vmem:[#allocation198_spill] sm:$0xff]  ;;  %v9652_v20 = vld [vmem:[#allocation245_spill] sm:$0xff] }
 0x566   : > { %3818 = vst [vmem:[%s7843_s3 + $0x20] sm:$0xff] %v4396_v32  ;;  %3819 = vst [vmem:[%s7843_s3 + $0x28] sm:$0xff] %v4397_v1  ;;  %v4408_v8 = vpack.c.bf16 %v7369_v37, %v6847_v22  ;;  %v4409_v4 = vpack.c.bf16 %v7373_v57, %v6851_v25  ;;  %v4410_v7 = vpack.c.bf16 %v7377_v23, %v6855_v28  ;;  %v9653_v18 = vld [vmem:[#allocation196_spill] sm:$0xff]  ;;  %v9654_v11 = vld [vmem:[#allocation247_spill] sm:$0xff] }
 0x567   : > { %3820 = vst [vmem:[%s7843_s3 + $0x30] sm:$0xff] %v4398_v50  ;;  %3821 = vst [vmem:[%s7843_s3 + $0x38] sm:$0xff] %v4399_v35  ;;  %v4411_v10 = vpack.c.bf16 %v7381_v52, %v6859_v31  ;;  %v4412_v13 = vpack.c.bf16 %v7385_v24, %v6863_v34  ;;  %v4413_v16 = vpack.c.bf16 %v7389_v9, %v6867_v38  ;;  %v9639_v31 = vld [vmem:[#allocation15_spill] sm:$0xff]  ;;  %v9640_v34 = vld [vmem:[#allocation233_spill] sm:$0xff] }
 0x568   : > { %3822 = vst [vmem:[%s7843_s3 + $0x40] sm:$0xff] %v4400_v40  ;;  %3823 = vst [vmem:[%s7843_s3 + $0x48] sm:$0xff] %v4401_v60  ;;  %v4414_v19 = vpack.c.bf16 %v7393_v36, %v6871_v54  ;;  %v4415_v22 = vpack.c.bf16 %v7397_v61, %v6875_v51  ;;  %v4416_v25 = vpack.c.bf16 %v7401_v45, %v6879_v5  ;;  %v9641_v54 = vld [vmem:[#allocation13_spill] sm:$0xff]  ;;  %v9655_v57 = vld [vmem:[#allocation194_spill] sm:$0xff] }
 0x569   : > { %3824 = vst [vmem:[%s7843_s3 + $0x50] sm:$0xff] %v4402_v43  ;;  %3825 = vst [vmem:[%s7843_s3 + $0x58] sm:$0xff] %v4403_v21  ;;  %v4417_v28 = vpack.c.bf16 %v7405_v42, %v6883_v53  ;;  %v4418_v38 = vpack.c.bf16 %v9640_v34, %v9639_v31  ;;  %v4419_v51 = vpack.c.bf16 %v9642_v14, %v9641_v54  ;;  %v9656_v23 = vld [vmem:[#allocation10_spill] sm:$0xff]  ;;  %v9657_v24 = vld [vmem:[#allocation192_spill] sm:$0xff] }
 0x56a   : > { %3826 = vst [vmem:[%s7843_s3 + $0x60] sm:$0xff] %v4404_v27  ;;  %3827 = vst [vmem:[%s7843_s3 + $0x68] sm:$0xff] %v4405_v12  ;;  %v4420_v5 = vpack.c.bf16 %v9644_v62, %v9643_v15  ;;  %v4421_v53 = vpack.c.bf16 %v9646_v48, %v9645_v59  ;;  %v4422_v44 = vpack.c.bf16 %v9648_v26, %v9647_v55  ;;  %v9658_v9 = vld [vmem:[#allocation12_spill] sm:$0xff]  ;;  %v9659_v61 = vld [vmem:[#allocation190_spill] sm:$0xff] }
 0x56b   : > { %3828 = vst [vmem:[%s7843_s3 + $0x70] sm:$0xff] %v4406_v33  ;;  %3829 = vst [vmem:[%s7843_s3 + $0x78] sm:$0xff] %v4407_v0  ;;  %v4423_v47 = vpack.c.bf16 %v9650_v29, %v9649_v6  ;;  %v4424_v2 = vpack.c.bf16 %v9652_v20, %v9651_v30  ;;  %v4425_v37 = vpack.c.bf16 %v9654_v11, %v9653_v18  ;;  %v9660_v45 = vld [vmem:[#allocation14_spill] sm:$0xff]  ;;  %v9661_v49 = vld [vmem:[#allocation229_spill] sm:$0xff] }
 0x56c   : > { %3830 = vst [vmem:[%s7843_s3 + $0x80] sm:$0xff] %v4408_v8  ;;  %3831 = vst [vmem:[%s7843_s3 + $0x88] sm:$0xff] %v4409_v4  ;;  %v4426_v52 = vpack.c.bf16 %v9656_v23, %v9655_v57  ;;  %v4427_v36 = vpack.c.bf16 %v9658_v9, %v9657_v24  ;;  %v4428_v42 = vpack.c.bf16 %v9660_v45, %v9659_v61  ;;  %v9662_v56 = vld [vmem:[#allocation16_spill] sm:$0xff]  ;;  %v9664_v17 = vld [vmem:[#allocation18_spill] sm:$0xff] }
 0x56d   : > { %3832 = vst [vmem:[%s7843_s3 + $0x90] sm:$0xff] %v4410_v7  ;;  %3833 = vst [vmem:[%s7843_s3 + $0x98] sm:$0xff] %v4411_v10  ;;  %v4429_v1 = vpack.c.bf16 %v9662_v56, %v9661_v49  ;;  %v9663_v3 = vld [vmem:[#allocation224_spill] sm:$0xff]  ;;  %v9665_v32 = vld [vmem:[#allocation30_spill] sm:$0xff] }
 0x56e   : > { %3834 = vst [vmem:[%s7843_s3 + $0xa0] sm:$0xff] %v4412_v13  ;;  %3835 = vst [vmem:[%s7843_s3 + $0xa8] sm:$0xff] %v4413_v16  ;;  %v4430_v63 = vpack.c.bf16 %v9664_v17, %v9663_v3  ;;  %v9666_v50 = vld [vmem:[#allocation19_spill] sm:$0xff]  ;;  %v9667_v40 = vld [vmem:[#allocation32_spill] sm:$0xff] }
 0x56f   : > { %3836 = vst [vmem:[%s7843_s3 + $0xb0] sm:$0xff] %v4414_v19  ;;  %3837 = vst [vmem:[%s7843_s3 + $0xb8] sm:$0xff] %v4415_v22  ;;  %v4431_v35 = vpack.c.bf16 %v9666_v50, %v9665_v32  ;;  %v9668_v60 = vld [vmem:[#allocation20_spill] sm:$0xff]  ;;  %v9669_v21 = vld [vmem:[#allocation34_spill] sm:$0xff] }
 0x570   : > { %3838 = vst [vmem:[%s7843_s3 + $0xc0] sm:$0xff] %v4416_v25  ;;  %3839 = vst [vmem:[%s7843_s3 + $0xc8] sm:$0xff] %v4417_v28  ;;  %v4432_v43 = vpack.c.bf16 %v9668_v60, %v9667_v40  ;;  %v9670_v27 = vld [vmem:[#allocation21_spill] sm:$0xff]  ;;  %v9671_v33 = vld [vmem:[#allocation36_spill] sm:$0xff] }
 0x571   : > { %3840 = vst [vmem:[%s7843_s3 + $0xd0] sm:$0xff] %v4418_v38  ;;  %3841 = vst [vmem:[%s7843_s3 + $0xd8] sm:$0xff] %v4419_v51  ;;  %v4433_v12 = vpack.c.bf16 %v9670_v27, %v9669_v21  ;;  %v9672_v0 = vld [vmem:[#allocation22_spill] sm:$0xff]  ;;  %v9674_v7 = vld [vmem:[#allocation23_spill] sm:$0xff] }
 0x572   : > { %3842 = vst [vmem:[%s7843_s3 + $0xe0] sm:$0xff] %v4420_v5  ;;  %3843 = vst [vmem:[%s7843_s3 + $0xe8] sm:$0xff] %v4421_v53  ;;  %v4434_v8 = vpack.c.bf16 %v9672_v0, %v9671_v33  ;;  %v9673_v4 = vld [vmem:[#allocation38_spill] sm:$0xff]  ;;  %v9675_v13 = vld [vmem:[#allocation40_spill] sm:$0xff] }
 0x573   : > { %3844 = vst [vmem:[%s7843_s3 + $0xf0] sm:$0xff] %v4422_v44  ;;  %3845 = vst [vmem:[%s7843_s3 + $0xf8] sm:$0xff] %v4423_v47  ;;  %v4435_v10 = vpack.c.bf16 %v9674_v7, %v9673_v4  ;;  %v9676_v16 = vld [vmem:[#allocation24_spill] sm:$0xff]  ;;  %v9677_v22 = vld [vmem:[#allocation42_spill] sm:$0xff] }
 0x574   : > { %3846 = vst [vmem:[%s7843_s3 + $0x100] sm:$0xff] %v4424_v2  ;;  %3847 = vst [vmem:[%s7843_s3 + $0x108] sm:$0xff] %v4425_v37  ;;  %v4436_v19 = vpack.c.bf16 %v9676_v16, %v9675_v13  ;;  %v9678_v25 = vld [vmem:[#allocation25_spill] sm:$0xff]  ;;  %v9679_v31 = vld [vmem:[#allocation44_spill] sm:$0xff] }
 0x575   : > { %3848 = vst [vmem:[%s7843_s3 + $0x110] sm:$0xff] %v4426_v52  ;;  %3849 = vst [vmem:[%s7843_s3 + $0x118] sm:$0xff] %v4427_v36  ;;  %v4437_v28 = vpack.c.bf16 %v9678_v25, %v9677_v22  ;;  %v9680_v34 = vld [vmem:[#allocation26_spill] sm:$0xff]  ;;  %v9682_v14 = vld [vmem:[#allocation27_spill] sm:$0xff] }
 0x576   : > { %v4438_v38 = vpack.c.bf16 %v9680_v34, %v9679_v31  ;;  %v9681_v54 = vld [vmem:[#allocation46_spill] sm:$0xff]  ;;  %3850 = vst [vmem:[%s7843_s3 + $0x120] sm:$0xff] %v4428_v42  ;;  %3851 = vst [vmem:[%s7843_s3 + $0x128] sm:$0xff] %v4429_v1  ;;  %v9683_v15 = vld [vmem:[#allocation48_spill] sm:$0xff] }
 0x577   : > { %v4439_v51 = vpack.c.bf16 %v9682_v14, %v9681_v54  ;;  %3852 = vst [vmem:[%s7843_s3 + $0x130] sm:$0xff] %v4430_v63  ;;  %3853 = vst [vmem:[%s7843_s3 + $0x138] sm:$0xff] %v4431_v35  ;;  %v9684_v62 = vld [vmem:[#allocation28_spill] sm:$0xff]  ;;  %v9685_v59 = vld [vmem:[#allocation50_spill] sm:$0xff] }
 0x578   : > { %v4440_v5 = vpack.c.bf16 %v9684_v62, %v9683_v15  ;;  %v9686_v48 = vld [vmem:[#allocation29_spill] sm:$0xff]  ;;  %v9687_v55 = vld [vmem:[#allocation52_spill] sm:$0xff]  ;;  %v9688_v26 = vld [vmem:[#allocation31_spill] sm:$0xff]  ;;  %3854 = vst [vmem:[%s7843_s3 + $0x140] sm:$0xff] %v4432_v43 }
 0x579   : > { %v4441_v53 = vpack.c.bf16 %v9686_v48, %v9685_v59  ;;  %v4442_v44 = vpack.c.bf16 %v9688_v26, %v9687_v55  ;;  %v9689_v6 = vld [vmem:[#allocation54_spill] sm:$0xff]  ;;  %v9690_v29 = vld [vmem:[#allocation33_spill] sm:$0xff]  ;;  %3855 = vst [vmem:[%s7843_s3 + $0x148] sm:$0xff] %v4433_v12  ;;  %3856 = vst [vmem:[%s7843_s3 + $0x150] sm:$0xff] %v4434_v8 }
 0x57a   : > { %v4443_v47 = vpack.c.bf16 %v9690_v29, %v9689_v6  ;;  %3857 = vst [vmem:[%s7843_s3 + $0x158] sm:$0xff] %v4435_v10  ;;  %v9691_v30 = vld [vmem:[#allocation56_spill] sm:$0xff]  ;;  %v9692_v20 = vld [vmem:[#allocation35_spill] sm:$0xff]  ;;  %v9693_v18 = vld [vmem:[#allocation58_spill] sm:$0xff] }
 0x57b   : > { %v4444_v2 = vpack.c.bf16 %v9692_v20, %v9691_v30  ;;  %v9694_v11 = vld [vmem:[#allocation37_spill] sm:$0xff]  ;;  %v9695_v57 = vld [vmem:[#allocation60_spill] sm:$0xff]  ;;  %v9696_v23 = vld [vmem:[#allocation39_spill] sm:$0xff]  ;;  %3858 = vst [vmem:[%s7843_s3 + $0x160] sm:$0xff] %v4436_v19 }
 0x57c   : > { %v4445_v37 = vpack.c.bf16 %v9694_v11, %v9693_v18  ;;  %v4446_v52 = vpack.c.bf16 %v9696_v23, %v9695_v57  ;;  %v9697_v24 = vld [vmem:[#allocation62_spill] sm:$0xff]  ;;  %v9698_v9 = vld [vmem:[#allocation41_spill] sm:$0xff]  ;;  %3859 = vst [vmem:[%s7843_s3 + $0x168] sm:$0xff] %v4437_v28  ;;  %3860 = vst [vmem:[%s7843_s3 + $0x170] sm:$0xff] %v4438_v38 }
 0x57d   : > { %v4447_v36 = vpack.c.bf16 %v9698_v9, %v9697_v24  ;;  %3861 = vst [vmem:[%s7843_s3 + $0x178] sm:$0xff] %v4439_v51  ;;  %v9699_v61 = vld [vmem:[#allocation64_spill] sm:$0xff]  ;;  %v9700_v45 = vld [vmem:[#allocation43_spill] sm:$0xff]  ;;  %v9701_v49 = vld [vmem:[#allocation66_spill] sm:$0xff] }
 0x57e   : > { %v4448_v42 = vpack.c.bf16 %v9700_v45, %v9699_v61  ;;  %v9702_v56 = vld [vmem:[#allocation45_spill] sm:$0xff]  ;;  %v9703_v3 = vld [vmem:[#allocation68_spill] sm:$0xff]  ;;  %v9704_v17 = vld [vmem:[#allocation47_spill] sm:$0xff]  ;;  %3862 = vst [vmem:[%s7843_s3 + $0x180] sm:$0xff] %v4440_v5 }
 0x57f   : > { %v4449_v1 = vpack.c.bf16 %v9702_v56, %v9701_v49  ;;  %v4450_v63 = vpack.c.bf16 %v9704_v17, %v9703_v3  ;;  %v9705_v32 = vld [vmem:[#allocation70_spill] sm:$0xff]  ;;  %v9706_v50 = vld [vmem:[#allocation49_spill] sm:$0xff]  ;;  %3863 = vst [vmem:[%s7843_s3 + $0x188] sm:$0xff] %v4441_v53  ;;  %3864 = vst [vmem:[%s7843_s3 + $0x190] sm:$0xff] %v4442_v44 }
 0x580   : > { %v4451_v35 = vpack.c.bf16 %v9706_v50, %v9705_v32  ;;  %3865 = vst [vmem:[%s7843_s3 + $0x198] sm:$0xff] %v4443_v47  ;;  %v9707_v40 = vld [vmem:[#allocation72_spill] sm:$0xff]  ;;  %v9708_v60 = vld [vmem:[#allocation51_spill] sm:$0xff]  ;;  %v9709_v21 = vld [vmem:[#allocation74_spill] sm:$0xff] }
 0x581   : > { %v4452_v43 = vpack.c.bf16 %v9708_v60, %v9707_v40  ;;  %v9710_v27 = vld [vmem:[#allocation53_spill] sm:$0xff]  ;;  %v9711_v33 = vld [vmem:[#allocation76_spill] sm:$0xff]  ;;  %v9712_v0 = vld [vmem:[#allocation55_spill] sm:$0xff]  ;;  %3866 = vst [vmem:[%s7843_s3 + $0x1a0] sm:$0xff] %v4444_v2 }
 0x582   : > { %v4453_v12 = vpack.c.bf16 %v9710_v27, %v9709_v21  ;;  %v4454_v8 = vpack.c.bf16 %v9712_v0, %v9711_v33  ;;  %v9713_v4 = vld [vmem:[#allocation78_spill] sm:$0xff]  ;;  %v9714_v7 = vld [vmem:[#allocation57_spill] sm:$0xff]  ;;  %3867 = vst [vmem:[%s7843_s3 + $0x1a8] sm:$0xff] %v4445_v37  ;;  %3868 = vst [vmem:[%s7843_s3 + $0x1b0] sm:$0xff] %v4446_v52 }
 0x583   : > { %v4455_v10 = vpack.c.bf16 %v9714_v7, %v9713_v4  ;;  %3869 = vst [vmem:[%s7843_s3 + $0x1b8] sm:$0xff] %v4447_v36  ;;  %v9715_v13 = vld [vmem:[#allocation80_spill] sm:$0xff]  ;;  %v9716_v16 = vld [vmem:[#allocation59_spill] sm:$0xff]  ;;  %v9717_v22 = vld [vmem:[#allocation82_spill] sm:$0xff] }
 0x584   : > { %v4456_v19 = vpack.c.bf16 %v9716_v16, %v9715_v13  ;;  %v9718_v25 = vld [vmem:[#allocation61_spill] sm:$0xff]  ;;  %v9719_v31 = vld [vmem:[#allocation84_spill] sm:$0xff]  ;;  %v9720_v34 = vld [vmem:[#allocation63_spill] sm:$0xff]  ;;  %3870 = vst [vmem:[%s7843_s3 + $0x1c0] sm:$0xff] %v4448_v42 }
 0x585   : > { %v4457_v28 = vpack.c.bf16 %v9718_v25, %v9717_v22  ;;  %v4458_v38 = vpack.c.bf16 %v9720_v34, %v9719_v31  ;;  %v9721_v54 = vld [vmem:[#allocation86_spill] sm:$0xff]  ;;  %v9722_v14 = vld [vmem:[#allocation65_spill] sm:$0xff]  ;;  %3871 = vst [vmem:[%s7843_s3 + $0x1c8] sm:$0xff] %v4449_v1  ;;  %3872 = vst [vmem:[%s7843_s3 + $0x1d0] sm:$0xff] %v4450_v63 }
 0x586   : > { %v4459_v51 = vpack.c.bf16 %v9722_v14, %v9721_v54  ;;  %3873 = vst [vmem:[%s7843_s3 + $0x1d8] sm:$0xff] %v4451_v35  ;;  %v9723_v15 = vld [vmem:[#allocation88_spill] sm:$0xff]  ;;  %v9724_v62 = vld [vmem:[#allocation67_spill] sm:$0xff]  ;;  %v9725_v59 = vld [vmem:[#allocation90_spill] sm:$0xff] }
 0x587   : > { %v4460_v5 = vpack.c.bf16 %v9724_v62, %v9723_v15  ;;  %v9726_v48 = vld [vmem:[#allocation69_spill] sm:$0xff]  ;;  %v9727_v55 = vld [vmem:[#allocation92_spill] sm:$0xff]  ;;  %v9728_v26 = vld [vmem:[#allocation71_spill] sm:$0xff]  ;;  %3874 = vst [vmem:[%s7843_s3 + $0x1e0] sm:$0xff] %v4452_v43 }
 0x588   : > { %v4461_v53 = vpack.c.bf16 %v9726_v48, %v9725_v59  ;;  %v4462_v44 = vpack.c.bf16 %v9728_v26, %v9727_v55  ;;  %v9729_v6 = vld [vmem:[#allocation94_spill] sm:$0xff]  ;;  %v9730_v29 = vld [vmem:[#allocation73_spill] sm:$0xff]  ;;  %3875 = vst [vmem:[%s7843_s3 + $0x1e8] sm:$0xff] %v4453_v12  ;;  %3876 = vst [vmem:[%s7843_s3 + $0x1f0] sm:$0xff] %v4454_v8 }
 0x589   : > { %v4463_v47 = vpack.c.bf16 %v9730_v29, %v9729_v6  ;;  %3877 = vst [vmem:[%s7843_s3 + $0x1f8] sm:$0xff] %v4455_v10  ;;  %v9731_v30 = vld [vmem:[#allocation96_spill] sm:$0xff]  ;;  %v9732_v20 = vld [vmem:[#allocation75_spill] sm:$0xff]  ;;  %v9733_v18 = vld [vmem:[#allocation98_spill] sm:$0xff] }
 0x58a   : > { %v4464_v2 = vpack.c.bf16 %v9732_v20, %v9731_v30  ;;  %v9734_v11 = vld [vmem:[#allocation77_spill] sm:$0xff]  ;;  %v9735_v57 = vld [vmem:[#allocation100_spill] sm:$0xff]  ;;  %v9736_v23 = vld [vmem:[#allocation79_spill] sm:$0xff]  ;;  %3878 = vst [vmem:[%s7843_s3 + $0x200] sm:$0xff] %v4456_v19 }
 0x58b   : > { %v4465_v37 = vpack.c.bf16 %v9734_v11, %v9733_v18  ;;  %v4466_v52 = vpack.c.bf16 %v9736_v23, %v9735_v57  ;;  %v9737_v24 = vld [vmem:[#allocation102_spill] sm:$0xff]  ;;  %v9738_v9 = vld [vmem:[#allocation81_spill] sm:$0xff]  ;;  %3879 = vst [vmem:[%s7843_s3 + $0x208] sm:$0xff] %v4457_v28  ;;  %3880 = vst [vmem:[%s7843_s3 + $0x210] sm:$0xff] %v4458_v38 }
 0x58c   : > { %v4467_v36 = vpack.c.bf16 %v9738_v9, %v9737_v24  ;;  %3881 = vst [vmem:[%s7843_s3 + $0x218] sm:$0xff] %v4459_v51  ;;  %v9739_v61 = vld [vmem:[#allocation104_spill] sm:$0xff]  ;;  %v9740_v45 = vld [vmem:[#allocation83_spill] sm:$0xff]  ;;  %v9741_v49 = vld [vmem:[#allocation106_spill] sm:$0xff] }
 0x58d   : > { %v4468_v42 = vpack.c.bf16 %v9740_v45, %v9739_v61  ;;  %v9742_v56 = vld [vmem:[#allocation85_spill] sm:$0xff]  ;;  %v9743_v3 = vld [vmem:[#allocation108_spill] sm:$0xff]  ;;  %v9744_v17 = vld [vmem:[#allocation87_spill] sm:$0xff]  ;;  %3882 = vst [vmem:[%s7843_s3 + $0x220] sm:$0xff] %v4460_v5  ;;  %v9779_v61 = vlaneseq }
 0x58e   : > { %v4469_v1 = vpack.c.bf16 %v9742_v56, %v9741_v49  ;;  %v4470_v63 = vpack.c.bf16 %v9744_v17, %v9743_v3  ;;  %v9745_v32 = vld [vmem:[#allocation110_spill] sm:$0xff]  ;;  %v9746_v50 = vld [vmem:[#allocation89_spill] sm:$0xff]  ;;  %3883 = vst [vmem:[%s7843_s3 + $0x228] sm:$0xff] %v4461_v53  ;;  %3884 = vst [vmem:[%s7843_s3 + $0x230] sm:$0xff] %v4462_v44 }
 0x58f   : > { %v4471_v35 = vpack.c.bf16 %v9746_v50, %v9745_v32  ;;  %3885 = vst [vmem:[%s7843_s3 + $0x238] sm:$0xff] %v4463_v47  ;;  %v9747_v40 = vld [vmem:[#allocation112_spill] sm:$0xff]  ;;  %v9748_v60 = vld [vmem:[#allocation91_spill] sm:$0xff]  ;;  %v9749_v21 = vld [vmem:[#allocation114_spill] sm:$0xff]  ;;  %vm8103_vm6 = vcmp.lt.s32.totalorder %v9779_v61, 256 }
 0x590   : > { %v4472_v43 = vpack.c.bf16 %v9748_v60, %v9747_v40  ;;  %v9750_v27 = vld [vmem:[#allocation93_spill] sm:$0xff]  ;;  %v9751_v33 = vld [vmem:[#allocation116_spill] sm:$0xff]  ;;  %v9752_v0 = vld [vmem:[#allocation95_spill] sm:$0xff]  ;;  %3886 = vst [vmem:[%s7843_s3 + $0x240] sm:$0xff] %v4464_v2 }
 0x591   : > { %v4473_v12 = vpack.c.bf16 %v9750_v27, %v9749_v21  ;;  %v4474_v8 = vpack.c.bf16 %v9752_v0, %v9751_v33  ;;  %v9753_v4 = vld [vmem:[#allocation118_spill] sm:$0xff]  ;;  %v9754_v7 = vld [vmem:[#allocation97_spill] sm:$0xff]  ;;  %3887 = vst [vmem:[%s7843_s3 + $0x248] sm:$0xff] %v4465_v37  ;;  %3888 = vst [vmem:[%s7843_s3 + $0x250] sm:$0xff] %v4466_v52 }
 0x592   : > { %v4475_v10 = vpack.c.bf16 %v9754_v7, %v9753_v4  ;;  %3889 = vst [vmem:[%s7843_s3 + $0x258] sm:$0xff] %v4467_v36  ;;  %v9755_v13 = vld [vmem:[#allocation120_spill] sm:$0xff]  ;;  %v9756_v16 = vld [vmem:[#allocation99_spill] sm:$0xff]  ;;  %v9757_v22 = vld [vmem:[#allocation122_spill] sm:$0xff] }
 0x593   : > { %v4476_v19 = vpack.c.bf16 %v9756_v16, %v9755_v13  ;;  %v9758_v25 = vld [vmem:[#allocation101_spill] sm:$0xff]  ;;  %v9759_v31 = vld [vmem:[#allocation124_spill] sm:$0xff]  ;;  %v9760_v34 = vld [vmem:[#allocation103_spill] sm:$0xff]  ;;  %3890 = vst [vmem:[%s7843_s3 + $0x260] sm:$0xff] %v4468_v42 }
 0x594   : > { %v4477_v28 = vpack.c.bf16 %v9758_v25, %v9757_v22  ;;  %v4478_v38 = vpack.c.bf16 %v9760_v34, %v9759_v31  ;;  %v9761_v54 = vld [vmem:[#allocation126_spill] sm:$0xff]  ;;  %v9762_v14 = vld [vmem:[#allocation105_spill] sm:$0xff]  ;;  %3891 = vst [vmem:[%s7843_s3 + $0x268] sm:$0xff] %v4469_v1  ;;  %3892 = vst [vmem:[%s7843_s3 + $0x270] sm:$0xff] %v4470_v63 }
 0x595   : > { %v4479_v51 = vpack.c.bf16 %v9762_v14, %v9761_v54  ;;  %3893 = vst [vmem:[%s7843_s3 + $0x278] sm:$0xff] %v4471_v35  ;;  %v9763_v15 = vld [vmem:[#allocation128_spill] sm:$0xff]  ;;  %v9764_v62 = vld [vmem:[#allocation107_spill] sm:$0xff]  ;;  %v9765_v59 = vld [vmem:[#allocation130_spill] sm:$0xff] }
 0x596   : > { %v4480_v5 = vpack.c.bf16 %v9764_v62, %v9763_v15  ;;  %v9766_v48 = vld [vmem:[#allocation109_spill] sm:$0xff]  ;;  %v9767_v55 = vld [vmem:[#allocation132_spill] sm:$0xff]  ;;  %v9768_v26 = vld [vmem:[#allocation111_spill] sm:$0xff]  ;;  %3894 = vst [vmem:[%s7843_s3 + $0x280] sm:$0xff] %v4472_v43 }
 0x597   : > { %v4481_v53 = vpack.c.bf16 %v9766_v48, %v9765_v59  ;;  %v4482_v44 = vpack.c.bf16 %v9768_v26, %v9767_v55  ;;  %v9769_v6 = vld [vmem:[#allocation134_spill] sm:$0xff]  ;;  %v9770_v29 = vld [vmem:[#allocation113_spill] sm:$0xff]  ;;  %3895 = vst [vmem:[%s7843_s3 + $0x288] sm:$0xff] %v4473_v12  ;;  %3896 = vst [vmem:[%s7843_s3 + $0x290] sm:$0xff] %v4474_v8 }
 0x598   : > { %v4483_v47 = vpack.c.bf16 %v9770_v29, %v9769_v6  ;;  %3897 = vst [vmem:[%s7843_s3 + $0x298] sm:$0xff] %v4475_v10  ;;  %v9771_v30 = vld [vmem:[#allocation136_spill] sm:$0xff]  ;;  %v9772_v20 = vld [vmem:[#allocation115_spill] sm:$0xff]  ;;  %v9773_v18 = vld [vmem:[#allocation138_spill] sm:$0xff] }
 0x599   : > { %v4484_v2 = vpack.c.bf16 %v9772_v20, %v9771_v30  ;;  %v9774_v11 = vld [vmem:[#allocation117_spill] sm:$0xff]  ;;  %v9775_v57 = vld [vmem:[#allocation140_spill] sm:$0xff]  ;;  %v9776_v23 = vld [vmem:[#allocation119_spill] sm:$0xff]  ;;  %3898 = vst [vmem:[%s7843_s3 + $0x2a0] sm:$0xff] %v4476_v19 }
 0x59a   : > { %v4485_v37 = vpack.c.bf16 %v9774_v11, %v9773_v18  ;;  %v4486_v52 = vpack.c.bf16 %v9776_v23, %v9775_v57  ;;  %v9777_v24 = vld [vmem:[#allocation142_spill] sm:$0xff]  ;;  %v9778_v9 = vld [vmem:[#allocation121_spill] sm:$0xff]  ;;  %3899 = vst [vmem:[%s7843_s3 + $0x2a8] sm:$0xff] %v4477_v28  ;;  %3900 = vst [vmem:[%s7843_s3 + $0x2b0] sm:$0xff] %v4478_v38 }
 0x59b   : > { %v4487_v36 = vpack.c.bf16 %v9778_v9, %v9777_v24  ;;  %3901 = vst [vmem:[%s7843_s3 + $0x2b8] sm:$0xff] %v4479_v51  ;;  %v9782_v42 = vld [vmem:[#allocation144_spill] sm:$0xff]  ;;  %v9783_v49 = vld [vmem:[#allocation123_spill] sm:$0xff]  ;;  %v9784_v1 = vld [vmem:[#allocation146_spill] sm:$0xff] }
 0x59c   : > { %v4488_v56 = vpack.c.bf16 %v9783_v49, %v9782_v42  ;;  %v9785_v3 = vld [vmem:[#allocation125_spill] sm:$0xff]  ;;  %v9786_v63 = vld [vmem:[#allocation148_spill] sm:$0xff]  ;;  %v9787_v32 = vld [vmem:[#allocation127_spill] sm:$0xff]  ;;  %3902 = vst [vmem:[%s7843_s3 + $0x2c0] sm:$0xff] %v4480_v5 }
 0x59d   : > { %v4489_v17 = vpack.c.bf16 %v9785_v3, %v9784_v1  ;;  %v4490_v50 = vpack.c.bf16 %v9787_v32, %v9786_v63  ;;  %v9788_v35 = vld [vmem:[#allocation150_spill] sm:$0xff]  ;;  %v9789_v40 = vld [vmem:[#allocation129_spill] sm:$0xff]  ;;  %3903 = vst [vmem:[%s7843_s3 + $0x2c8] sm:$0xff] %v4481_v53  ;;  %3904 = vst [vmem:[%s7843_s3 + $0x2d0] sm:$0xff] %v4482_v44 }
 0x59e   : > { %v4491_v60 = vpack.c.bf16 %v9789_v40, %v9788_v35  ;;  %3905 = vst [vmem:[%s7843_s3 + $0x2d8] sm:$0xff] %v4483_v47  ;;  %v9790_v43 = vld [vmem:[#allocation152_spill] sm:$0xff]  ;;  %v9791_v21 = vld [vmem:[#allocation131_spill] sm:$0xff]  ;;  %v9792_v12 = vld [vmem:[#allocation154_spill] sm:$0xff] }
 0x59f   : > { %v4492_v27 = vpack.c.bf16 %v9791_v21, %v9790_v43  ;;  %v9793_v33 = vld [vmem:[#allocation133_spill] sm:$0xff]  ;;  %v9794_v8 = vld [vmem:[#allocation156_spill] sm:$0xff]  ;;  %v9795_v4 = vld [vmem:[#allocation135_spill] sm:$0xff]  ;;  %3906 = vst [vmem:[%s7843_s3 + $0x2e0] sm:$0xff] %v4484_v2 }
 0x5a0   : > { %v4493_v0 = vpack.c.bf16 %v9793_v33, %v9792_v12  ;;  %v4494_v7 = vpack.c.bf16 %v9795_v4, %v9794_v8  ;;  %v9796_v10 = vld [vmem:[#allocation162_spill] sm:$0xff]  ;;  %v9797_v13 = vld [vmem:[#allocation137_spill] sm:$0xff]  ;;  %3907 = vst [vmem:[%s7843_s3 + $0x2e8] sm:$0xff] %v4485_v37  ;;  %3908 = vst [vmem:[%s7843_s3 + $0x2f0] sm:$0xff] %v4486_v52 }
 0x5a1   : > { %v4495_v16 = vpack.c.bf16 %v9797_v13, %v9796_v10  ;;  %3909 = vst [vmem:[%s7843_s3 + $0x2f8] sm:$0xff] %v4487_v36  ;;  %v9798_v19 = vld [vmem:[#allocation164_spill] sm:$0xff]  ;;  %v9799_v22 = vld [vmem:[#allocation139_spill] sm:$0xff]  ;;  %v9800_v28 = vld [vmem:[#allocation166_spill] sm:$0xff] }
 0x5a2   : > { %v4496_v25 = vpack.c.bf16 %v9799_v22, %v9798_v19  ;;  %v9801_v31 = vld [vmem:[#allocation141_spill] sm:$0xff]  ;;  %v9802_v38 = vld [vmem:[#allocation168_spill] sm:$0xff]  ;;  %v9803_v54 = vld [vmem:[#allocation143_spill] sm:$0xff]  ;;  %3910 = vst [vmem:[%s7843_s3 + $0x300] sm:$0xff] %v4488_v56 }
 0x5a3   : > { %v4497_v34 = vpack.c.bf16 %v9801_v31, %v9800_v28  ;;  %v4498_v14 = vpack.c.bf16 %v9803_v54, %v9802_v38  ;;  %v9804_v51 = vld [vmem:[#allocation170_spill] sm:$0xff]  ;;  %v9805_v15 = vld [vmem:[#allocation145_spill] sm:$0xff]  ;;  %3911 = vst [vmem:[%s7843_s3 + $0x308] sm:$0xff] %v4489_v17  ;;  %3912 = vst [vmem:[%s7843_s3 + $0x310] sm:$0xff] %v4490_v50 }
 0x5a4   : > { %v4499_v62 = vpack.c.bf16 %v9805_v15, %v9804_v51  ;;  %3913 = vst [vmem:[%s7843_s3 + $0x318] sm:$0xff] %v4491_v60  ;;  %v9806_v5 = vld [vmem:[#allocation172_spill] sm:$0xff]  ;;  %v9807_v59 = vld [vmem:[#allocation147_spill] sm:$0xff]  ;;  %v9808_v53 = vld [vmem:[#allocation174_spill] sm:$0xff] }
 0x5a5   : > { %v4500_v48 = vpack.c.bf16 %v9807_v59, %v9806_v5  ;;  %v9809_v55 = vld [vmem:[#allocation149_spill] sm:$0xff]  ;;  %v9810_v44 = vld [vmem:[#allocation176_spill] sm:$0xff]  ;;  %v9811_v6 = vld [vmem:[#allocation151_spill] sm:$0xff]  ;;  %3914 = vst [vmem:[%s7843_s3 + $0x320] sm:$0xff] %v4492_v27 }
 0x5a6   : > { %v4501_v26 = vpack.c.bf16 %v9809_v55, %v9808_v53  ;;  %v4502_v29 = vpack.c.bf16 %v9811_v6, %v9810_v44  ;;  %v9812_v47 = vld [vmem:[#allocation178_spill] sm:$0xff]  ;;  %v9813_v30 = vld [vmem:[#allocation153_spill] sm:$0xff]  ;;  %3915 = vst [vmem:[%s7843_s3 + $0x328] sm:$0xff] %v4493_v0  ;;  %3916 = vst [vmem:[%s7843_s3 + $0x330] sm:$0xff] %v4494_v7 }
 0x5a7   : > { %v4503_v20 = vpack.c.bf16 %v9813_v30, %v9812_v47  ;;  %3917 = vst [vmem:[%s7843_s3 + $0x338] sm:$0xff] %v4495_v16  ;;  %v9814_v2 = vld [vmem:[#allocation180_spill] sm:$0xff]  ;;  %v9815_v18 = vld [vmem:[#allocation155_spill] sm:$0xff]  ;;  %v9816_v37 = vld [vmem:[#allocation182_spill] sm:$0xff] }
 0x5a8   : > { %v4504_v11 = vpack.c.bf16 %v9815_v18, %v9814_v2  ;;  %v9817_v57 = vld [vmem:[#allocation157_spill] sm:$0xff]  ;;  %v9818_v52 = vld [vmem:[#allocation184_spill] sm:$0xff]  ;;  %v9819_v24 = vld [vmem:[#allocation159_spill] sm:$0xff]  ;;  %3918 = vst [vmem:[%s7843_s3 + $0x340] sm:$0xff] %v4496_v25 }
 0x5a9   : > { %v4505_v23 = vpack.c.bf16 %v9817_v57, %v9816_v37  ;;  %v4506_v9 = vpack.c.bf16 %v9819_v24, %v9818_v52  ;;  %v9820_v36 = vld [vmem:[#allocation186_spill] sm:$0xff]  ;;  %v9821_v61 = vld [vmem:[#allocation161_spill] sm:$0xff]  ;;  %3919 = vst [vmem:[%s7843_s3 + $0x348] sm:$0xff] %v4497_v34  ;;  %3920 = vst [vmem:[%s7843_s3 + $0x350] sm:$0xff] %v4498_v14 }
 0x5aa   : > { %v4507_v42 = vpack.c.bf16 %v9821_v61, %v9820_v36  ;;  %3921 = vst [vmem:[%s7843_s3 + $0x358] sm:$0xff] %v4499_v62  ;;  %v9822_v49 = vld [vmem:[#allocation188_spill] sm:$0xff]  ;;  %v9823_v56 = vld [vmem:[#allocation163_spill] sm:$0xff]  ;;  %v9825_v17 = vld [vmem:[#allocation165_spill] sm:$0xff] }
 0x5ab   : > { %v4508_v1 = vpack.c.bf16 %v9823_v56, %v9822_v49  ;;  %v9824_v3 = vld [vmem:[#allocation200_spill] sm:$0xff]  ;;  %v9826_v32 = vld [vmem:[#allocation202_spill] sm:$0xff]  ;;  %v9827_v50 = vld [vmem:[#allocation167_spill] sm:$0xff]  ;;  %3922 = vst [vmem:[%s7843_s3 + $0x360] sm:$0xff] %v4500_v48 }
 0x5ac   : > { %v4509_v63 = vpack.c.bf16 %v9825_v17, %v9824_v3  ;;  %v4510_v35 = vpack.c.bf16 %v9827_v50, %v9826_v32  ;;  %v9828_v40 = vld [vmem:[#allocation204_spill] sm:$0xff]  ;;  %v9829_v60 = vld [vmem:[#allocation169_spill] sm:$0xff]  ;;  %3923 = vst [vmem:[%s7843_s3 + $0x368] sm:$0xff] %v4501_v26  ;;  %3924 = vst [vmem:[%s7843_s3 + $0x370] sm:$0xff] %v4502_v29 }
 0x5ad   : > { %v4511_v43 = vpack.c.bf16 %v9829_v60, %v9828_v40  ;;  %3925 = vst [vmem:[%s7843_s3 + $0x378] sm:$0xff] %v4503_v20  ;;  %v9830_v21 = vld [vmem:[#allocation206_spill] sm:$0xff]  ;;  %v9831_v27 = vld [vmem:[#allocation171_spill] sm:$0xff]  ;;  %v9832_v33 = vld [vmem:[#allocation208_spill] sm:$0xff] }
 0x5ae   : > { %v4512_v12 = vpack.c.bf16 %v9831_v27, %v9830_v21  ;;  %v9833_v0 = vld [vmem:[#allocation173_spill] sm:$0xff]  ;;  %v9834_v4 = vld [vmem:[#allocation210_spill] sm:$0xff]  ;;  %v9835_v10 = vld [vmem:[#allocation212_spill] sm:$0xff]  ;;  %3926 = vst [vmem:[%s7843_s3 + $0x380] sm:$0xff] %v4504_v11 }
 0x5af   : > { %v4513_v8 = vpack.c.bf16 %v9833_v0, %v9832_v33  ;;  %v4514_v7 = vpack.c.bf16 %v7797_v58, %v9834_v4  ;;  %v9836_v13 = vld [vmem:[#allocation175_spill] sm:$0xff]  ;;  %3927 = vst [vmem:[%s7843_s3 + $0x388] sm:$0xff] %v4505_v23  ;;  %3928 = vst [vmem:[%s7843_s3 + $0x390] sm:$0xff] %v4506_v9  ;;  %v9837_v19 = vld [vmem:[#allocation214_spill] sm:$0xff] }
 0x5b0   : > { %v4515_v16 = vpack.c.bf16 %v9836_v13, %v9835_v10  ;;  %3929 = vst [vmem:[%s7843_s3 + $0x398] sm:$0xff] %v4507_v42  ;;  %v4516_v22 = vpack.c.bf16 %v7805_v39, %v9837_v19  ;;  %v9838_v25 = vld [vmem:[#allocation216_spill] sm:$0xff]  ;;  %v9839_v28 = vld [vmem:[#allocation218_spill] sm:$0xff]  ;;  %v9840_v31 = vld [vmem:[#allocation177_spill] sm:$0xff] }
 0x5b1   : > { %v4517_v58 = vpack.c.bf16 %v7809_v41, %v9838_v25  ;;  %v4518_v34 = vpack.c.bf16 %v9840_v31, %v9839_v28  ;;  %v9841_v38 = vld [vmem:[#allocation220_spill] sm:$0xff]  ;;  %3930 = vst [vmem:[%s7843_s3 + $0x3a0] sm:$0xff] %v4508_v1  ;;  %3931 = vst [vmem:[%s7843_s3 + $0x3a8] sm:$0xff] %v4509_v63  ;;  %v9842_v39 = vld [vmem:[#allocation17_spill] sm:$0xff] }
 0x5b2   : > { %v4519_v54 = vpack.c.bf16 %v7817_v46, %v9841_v38  ;;  %3932 = vst [vmem:[%s7843_s3 + $0x3b0] sm:$0xff] %v4510_v35  ;;  %3933 = vst [vmem:[%s7843_s3 + $0x3b8] sm:$0xff] %v4511_v43  ;;  %v9843_v41 = vld [vmem:[#allocation231_spill] sm:$0xff] }
 0x5b3   : > { %3934 = vst [vmem:[%s7843_s3 + $0x3c0] sm:$0xff] %v4512_v12  ;;  %3935 = vst [vmem:[%s7843_s3 + $0x3c8] sm:$0xff] %v4513_v8  ;;  %v3958_v14 = vrot.slane %v9843_v41, %v9842_v39 }
 0x5b4   : > { %3936 = vst [vmem:[%s7843_s3 + $0x3d0] sm:$0xff] %v4514_v7  ;;  %3937 = vst [vmem:[%s7843_s3 + $0x3d8] sm:$0xff] %v4515_v16 }
 0x5b5   : > { %3938 = vst [vmem:[%s7843_s3 + $0x3e0] sm:$0xff] %v4516_v22  ;;  %3939 = vst [vmem:[%s7843_s3 + $0x3e8] sm:$0xff] %v4517_v58 }
 0x5b6   : > { %3940 = vst [vmem:[%s7843_s3 + $0x3f0] sm:$0xff] %v4518_v34  ;;  %3941 = vst [vmem:[%s7843_s3 + $0x3f8] sm:$0xff] %v4519_v54 }
 0x5b7   : > { %4613 = shalt.err (!%p4610_p5)
}
 0x5b8   : > { %s4614_s3 = scalar_lea.hbm %s8172_s10, 16384  ;;  %s4618_s11 = scalar_lea.hbm %s8308_s4, 32768 }
 0x5b9   : > { %p4615_p6 = scmp.ne.s32.totalorder %s8172_s10, %s4614_s3  ;;  %p4619_p10 = scmp.lt.s32.totalorder %s8172_s10, %s8308_s4 }
 0x5ba   : > { %p4620_p11 = scmp.lt.s32.totalorder %s4618_s11, %s4614_s3 }
 0x5bb   : > { %p4616_p7 = pnand %p4615_p6, %p4788_p4 }
 0x5bc   : > { %p4621_p12 = por %p4620_p11, %p4619_p10 }
 0x5bd   : > { %p4617_p9 = pneg %p4616_p7 }
 0x5bf   : > { %p4622_p13 = pnand %p4621_p12, %p4617_p9 }
 0x5c1   : > { %4625 = shalt.err (!%p4622_p13)
}
 0x5c2   : > { %s4712_s17 = smov 128   ;;  %s4713_s19 = smov 8   ;;  %3964 = vst.msk [vmem:[%s8189_s12] sm:$0x3] %vm8103_vm6, %v3958_v14 }
 0x5c3   : > { %4522 = dma.vmem_to_hbm [thread:$0]  (%p4788_p4), %s8204_s30, 16384, %s8172_s10, %s3966_s16, %s4712_s17, %s4712_s17, %s4713_s19  }
 0x5c4   : > { %s3971_s26 = scalar_lea.sflag [#allocation6], %s7704_s18  ;;  %s4626_s28 = scalar_lea.vmem %s8229_s13, 32 }
 0x5c5   : > { %p4627_p0 = scmp.ne.s32.totalorder %s8229_s13, %s4626_s28  ;;  %s4714_s3 = smov [#allocation5]  }
 0x5c6   : > { %s4630_s8 = sshll.u32 %s4714_s3, 4  ;;  %s4631_s8 = int_to_ptr.vmem [resolvable:$false] %s4630_s8 }
 0x5c7   : > { %p4628_p1 = pnand %p4627_p0, %p4788_p4  ;;  %s4632_s9 = scalar_lea.vmem %s4631_s8, 64 }
 0x5c8   : > { %p4633_p3 = scmp.lt.s32.totalorder %s8229_s13, %s4631_s8  ;;  %p4634_p5 = scmp.lt.s32.totalorder %s4632_s9, %s4626_s28 }
 0x5c9   : > { %p4629_p2 = pneg %p4628_p1 }
 0x5ca   : > { %p4635_p6 = por %p4634_p5, %p4633_p3 }
 0x5cc   : > { %p4636_p7 = pnand %p4635_p6, %p4629_p2 }
 0x5ce   : > { %4639 = shalt.err (!%p4636_p7)
}
 0x5cf   : > { %s4640_s30 = scalar_lea.hbm %s8227_s15, 32  ;;  %s4644_s12 = scalar_lea.hbm %s8309_s5, 64 }
 0x5d0   : > { %p4641_p9 = scmp.ne.s32.totalorder %s8227_s15, %s4640_s30  ;;  %p4645_p12 = scmp.lt.s32.totalorder %s8227_s15, %s8309_s5 }
 0x5d1   : > { %p4646_p13 = scmp.lt.s32.totalorder %s4644_s12, %s4640_s30 }
 0x5d2   : > { %p4642_p10 = pnand %p4641_p9, %p4788_p4 }
 0x5d3   : > { %p4647_p0 = por %p4646_p13, %p4645_p12 }
 0x5d4   : > { %p4643_p11 = pneg %p4642_p10 }
 0x5d6   : > { %p4648_p1 = pnand %p4647_p0, %p4643_p11 }
 0x5d8   : > { %4651 = shalt.err (!%p4648_p1)
}
 0x5d9   : > { %4523 = dma.vmem_to_hbm [thread:$0]  (%p4788_p4), %s8229_s13, 32, %s8227_s15, %s3971_s26  }
 0x5da PF: > { %p4533_p2 = scmp.ge.s32.totalorder %s4706_s25, 2  ;;  %s4017_s23 = sand.u32 1, %s4686_s20  }
 0x5db   : > { %s4018_s14 = scalar_lea.sflag [#allocation4], %s4017_s23 }
 0x5dc   : > { %p4527_p3 = pnand %p4533_p2, %p4795_p8 }
 0x5de   : > { %p4528_p5 = pneg %p4527_p3 }
 0x5e0   : > { %4677 = dma.done.wait (%p4528_p5), %s4018_s14, 16384  }
 0x5e1   : > { %4679 = vsyncadd (%p4528_p5), %s4018_s14, 4294950912  ;;  %s4027_s17 = scalar_lea.sflag [#allocation6], %s4017_s23 }
 0x5e2   : > { %4681 = dma.done.wait (%p4528_p5), %s4027_s17, 32  }
 0x5e3   : > { %4683 = vsyncadd (%p4528_p5), %s4027_s17, 4294967264  ;;  %s23_s25 = sadd.s32 1, %s4706_s25   ;;  %s9844_s20 = smov %s4690_s21 }
 0x5e4   : > { %p20_p6 = scmp.ge.s32.totalorder %s23_s25, 4   ;;  %s9845_s21 = smov %s4694_s22 }
 0x5e5   : > { %s9846_s22 = smov %s4801_s7  ;;  %s9847_s23 = smov %s4702_s24 }
 0x5e6   : > { %s9848_s24 = smov %s9850_s27  ;;  %22 = sbr.rel (!%p20_p6) target bundleno = 8 (0x8), region = 88 }
 0x5eb   :  { %4032 = vsyncpa [#allocation4], 1 }
 0x5ec   :  { %4034 = vsyncpa [#allocation4 + $0x1], 1 }
 0x5ed   :  { %4035 = vsyncpa [#allocation6], 1 }
 0x5ee   :  { %4037 = vsyncpa [#allocation6 + $0x1], 1 }

</bundles_post_ra>
